<compile_context>
chip_gen: v7x
topology: tpu7x:2x2x1
jax: 0.10.0
libtpu: 0.0.40
codegen_flags: <defaults>
</compile_context>

<pallas_src>
import math
import functools

import jax
import jax.numpy as jnp
from jax.experimental import pallas as pl
from jax.experimental.pallas import tpu as pltpu

EPS = 1e-5
NEG_INF = -1e30          # exp(x + NEG_INF - max) underflows to exactly 0

ENC_NAMES = ("qkv_w", "qkv_b", "out_w", "mlp_w1", "mlp_b1", "mlp_w2", "misc")
DEC_NAMES = ("qkv_w", "qkv_b", "out_w", "cq_w", "ckv_w", "ckv_b", "cout_w",
             "mlp_w1", "mlp_b1", "mlp_w2", "misc")


def _round_up(x, m):
    return ((x + m - 1) // m) * m


# ----------------------------------------------------------------------------
# In-kernel building blocks (traced inline inside the fused kernel)
# ----------------------------------------------------------------------------
def _mha(q, k, v, out_w, out_b, head_masks, attn_bias=None):
    """Multi-head attention; heads packed in lanes [h*dh, (h+1)*dh).

    q/k/v: (Tq,Dp)/(Tk,Dp) with zeros in padded lanes; the softmax scale is
    pre-folded into the q projection.  Per-head work is kept 128-lane dense by
    masking q (for scores) and v (for values) with a per-head lane mask; the
    head outputs therefore land already concatenated and one lane-dense
    out-projection (Dp x Dp) finishes the block.
    """
    o = None
    for hm in head_masks:                          # static unroll (nheads == 2)
        s = jax.lax.dot_general(q * hm, k, (((1,), (1,)), ((), ())),
                                preferred_element_type=jnp.float32)
        if attn_bias is not None:
            s = s + attn_bias
        s = s - jnp.max(s, axis=-1, keepdims=True)
        p = jnp.exp(s)
        p = p * pl.reciprocal(jnp.sum(p, axis=-1, keepdims=True), approx=True)
        oh = jnp.dot(p, v * hm, preferred_element_type=jnp.float32)
        o = oh if o is None else o + oh
    return jnp.dot(o, out_w, preferred_element_type=jnp.float32) + out_b


def _residual_ln(x, y, g, b, inv_d):
    """LayerNorm(x + y) over the real feature width (zero-padded lanes stay 0)."""
    z = x + y
    mu = jnp.sum(z, axis=-1, keepdims=True) * inv_d
    var = jnp.maximum(jnp.sum(z * z, axis=-1, keepdims=True) * inv_d - mu * mu, 0.0)
    return (z - mu) * jax.lax.rsqrt(var + EPS) * g + b


# ----------------------------------------------------------------------------
# Single fused kernel: encoder stack + decoder stack + tgt_word_prj
# grid = (batch,)  ("parallel": one sequence per TensorCore on v7x)
# ----------------------------------------------------------------------------
def _nrtr_fused_kernel(src_ref, tgt_ref,
                       e_qkv_w, e_qkv_b, e_out_w, e_mlp_w1, e_mlp_b1, e_mlp_w2,
                       e_misc,
                       d_qkv_w, d_qkv_b, d_out_w, d_cq_w, d_ckv_w, d_ckv_b,
                       d_cout_w, d_mlp_w1, d_mlp_b1, d_mlp_w2, d_misc,
                       prj_w, out_ref,
                       *, nheads, dh, inv_d, num_enc, num_dec, src_real):
    Sp, Dp = src_ref.shape
    Tp = tgt_ref.shape[0]

    # --- masks: built once per grid step, reused by every (unrolled) layer ---
    lane = jax.lax.broadcasted_iota(jnp.int32, (1, Dp), 1)
    head_masks = [((lane >= h * dh) & (lane < (h + 1) * dh)).astype(jnp.float32)
                  for h in range(nheads)]

    enc_bias = None
    cross_bias = None
    if Sp != src_real:                      # static: mask padded memory keys
        kcol = jax.lax.broadcasted_iota(jnp.int32, (Sp, Sp), 1)
        enc_bias = jnp.where(kcol >= src_real, NEG_INF, 0.0).astype(jnp.float32)
        ccol = jax.lax.broadcasted_iota(jnp.int32, (Tp, Sp), 1)
        cross_bias = jnp.where(ccol >= src_real, NEG_INF, 0.0).astype(jnp.float32)

    row = jax.lax.broadcasted_iota(jnp.int32, (Tp, Tp), 0)
    col = jax.lax.broadcasted_iota(jnp.int32, (Tp, Tp), 1)
    causal = jnp.where(col > row, NEG_INF, 0.0).astype(jnp.float32)

    # --- encoder stack (statically unrolled; memory stays on-chip) ----------
    mem = src_ref[...]                                     # (Sp, Dp)
    for l in range(num_enc):
        misc = e_misc[l]                                   # (8, Dp)
        qkv = jnp.dot(mem, e_qkv_w[l],
                      preferred_element_type=jnp.float32) + e_qkv_b[l]
        a = _mha(qkv[:, :Dp], qkv[:, Dp:2 * Dp], qkv[:, 2 * Dp:],
                 e_out_w[l], misc[0:1, :], head_masks, enc_bias)
        t = _residual_ln(mem, a, misc[1:2, :], misc[2:3, :], inv_d)
        h = jnp.maximum(
            jnp.dot(t, e_mlp_w1[l], preferred_element_type=jnp.float32)
            + e_mlp_b1[l], 0.0)
        m = jnp.dot(h, e_mlp_w2[l],
                    preferred_element_type=jnp.float32) + misc[3:4, :]
        mem = _residual_ln(t, m, misc[4:5, :], misc[5:6, :], inv_d)

    # --- decoder stack + fused tgt_word_prj ----------------------------------
    t = tgt_ref[...]                                       # (Tp, Dp)
    for l in range(num_dec):
        misc = d_misc[l]                                   # (16, Dp)

        # masked self-attention
        qkv = jnp.dot(t, d_qkv_w[l],
                      preferred_element_type=jnp.float32) + d_qkv_b[l]
        a = _mha(qkv[:, :Dp], qkv[:, Dp:2 * Dp], qkv[:, 2 * Dp:],
                 d_out_w[l], misc[0:1, :], head_masks, causal)
        t = _residual_ln(t, a, misc[1:2, :], misc[2:3, :], inv_d)

        # cross-attention over the encoder memory
        q2 = jnp.dot(t, d_cq_w[l],
                     preferred_element_type=jnp.float32) + misc[3:4, :]
        kv = jnp.dot(mem, d_ckv_w[l],
                     preferred_element_type=jnp.float32) + d_ckv_b[l]
        a2 = _mha(q2, kv[:, :Dp], kv[:, Dp:],
                  d_cout_w[l], misc[4:5, :], head_masks, cross_bias)
        t = _residual_ln(t, a2, misc[5:6, :], misc[6:7, :], inv_d)

        # MLP (ReLU)
        h = jnp.maximum(
            jnp.dot(t, d_mlp_w1[l], preferred_element_type=jnp.float32)
            + d_mlp_b1[l], 0.0)
        m = jnp.dot(h, d_mlp_w2[l],
                    preferred_element_type=jnp.float32) + misc[7:8, :]
        t = _residual_ln(t, m, misc[8:9, :], misc[9:10, :], inv_d)

    # fused tgt_word_prj (no bias); lane-dense 128-wide padded output
    out_ref[...] = jnp.dot(t, prj_w[...], preferred_element_type=jnp.float32)


# ----------------------------------------------------------------------------
# pallas_call wrapper
# ----------------------------------------------------------------------------
def _run_fused(src_emb, tgt_emb, packed, cfg, src_real):
    B, Sp, Dp = src_emb.shape
    Tp = tgt_emb.shape[1]
    Vp = packed["prj_w"].shape[1]
    Fp = cfg["ff_pad"]
    nhead = cfg["nhead"]
    d_model = cfg["d_model"]

    enc, dec = packed["enc"], packed["dec"]
    num_enc = enc["qkv_w"].shape[0]
    num_dec = dec["qkv_w"].shape[0]

    weight_args = ([enc[n] for n in ENC_NAMES]
                   + [dec[n] for n in DEC_NAMES]
                   + [packed["prj_w"]])

    def whole_spec(a):
        # whole-array block, constant index -> DMA'd once for the entire call
        return pl.BlockSpec(a.shape, lambda b, _nd=a.ndim: (0,) * _nd)

    kernel = functools.partial(
        _nrtr_fused_kernel, nheads=nhead, dh=d_model // nhead,
        inv_d=1.0 / d_model, num_enc=num_enc, num_dec=num_dec,
        src_real=src_real)

    # rough cost hints so XLA can schedule/overlap the surrounding tiny ops
    def mm(m, k, n):
        return 2 * m * k * n

    enc_flops = num_enc * (mm(Sp, Dp, 3 * Dp)
                           + nhead * (mm(Sp, Dp, Sp) + mm(Sp, Sp, Dp))
                           + mm(Sp, Dp, Dp) + mm(Sp, Dp, Fp) + mm(Sp, Fp, Dp))
    dec_flops = num_dec * (mm(Tp, Dp, 3 * Dp)
                           + nhead * (mm(Tp, Dp, Tp) + mm(Tp, Tp, Dp))
                           + mm(Tp, Dp, Dp) + mm(Tp, Dp, Dp) + mm(Sp, Dp, 2 * Dp)
                           + nhead * (mm(Tp, Dp, Sp) + mm(Tp, Sp, Dp))
                           + mm(Tp, Dp, Dp) + mm(Tp, Dp, Fp) + mm(Tp, Fp, Dp))
    flops = B * (enc_flops + dec_flops + mm(Tp, Dp, Vp))
    transc = B * (num_enc * nhead * Sp * Sp + num_dec * nhead * (Tp * Tp + Tp * Sp))
    bytes_acc = 4 * (src_emb.size + tgt_emb.size + B * Tp * Vp
                     + sum(int(a.size) for a in weight_args))

    return pl.pallas_call(
        kernel,
        out_shape=jax.ShapeDtypeStruct((B, Tp, Vp), jnp.float32),
        grid=(B,),
        in_specs=[pl.BlockSpec((None, Sp, Dp), lambda b: (b, 0, 0)),
                  pl.BlockSpec((None, Tp, Dp), lambda b: (b, 0, 0))]
                 + [whole_spec(a) for a in weight_args],
        out_specs=pl.BlockSpec((None, Tp, Vp), lambda b: (b, 0, 0)),
        compiler_params=pltpu.CompilerParams(
            dimension_semantics=("parallel",)),
        cost_estimate=pl.CostEstimate(flops=int(flops),
                                      transcendentals=int(transc),
                                      bytes_accessed=int(bytes_acc)),
    )(src_emb, tgt_emb, *weight_args)


# ----------------------------------------------------------------------------
# Forward (mirrors NRTRDecoder.forward_train; dropout == identity)
# ----------------------------------------------------------------------------
def nrtr_forward_train(src, tgt_tokens, packed, cfg):
    d_model = cfg["d_model"]
    d_pad = cfg["d_pad"]
    n_out = cfg["out_channels"] - 2

    # Embeddings (scale_embedding=True, padding_idx=0 row zero) + pos. encoding
    tgt_tokens = tgt_tokens[:, :-1]
    B, T = tgt_tokens.shape
    Ts = src.shape[1]
    t_pad = _round_up(T, 8)
    s_pad = _round_up(Ts, 8)

    pe = packed["pe"]
    tgt = jnp.take(packed["embed_w"], tgt_tokens, axis=0) * math.sqrt(d_model)
    tgt = tgt + pe[:T][None]
    tgt = jnp.pad(tgt, ((0, 0), (0, t_pad - T), (0, d_pad - d_model)))

    mem = src + pe[:Ts][None]
    mem = jnp.pad(mem, ((0, 0), (0, s_pad - Ts), (0, d_pad - d_model)))

    # One fused pallas_call: encoder stack + decoder stack + projection
    logits = _run_fused(mem, tgt, packed, cfg, src_real=Ts)
    return logits[:, :T, :n_out]


# ----------------------------------------------------------------------------
# Parameters: raw (module-like layout) and packed (kernel layout)
# ----------------------------------------------------------------------------
def positional_table(max_len, dim):
    pos = jnp.arange(max_len, dtype=jnp.float32)[:, None]
    div = jnp.exp(jnp.arange(0, dim, 2, dtype=jnp.float32)
                  * (-math.log(10000.0) / dim))
    pe_sin = jnp.sin(pos * div)
    pe_cos = jnp.cos(pos * div)
    return jnp.stack([pe_sin, pe_cos], axis=-1).reshape(max_len, dim)


def _xavier(key, fan_in, fan_out):
    std = math.sqrt(2.0 / (fan_in + fan_out))
    return jax.random.normal(key, (fan_in, fan_out), jnp.float32) * std


def make_params(key, d_model, nhead, dim_ff, vocab, num_enc, num_dec, pe_len):
    keys = iter(jax.random.split(key, 512))

    def attn_params(self_attn):
        if self_attn:
            return {
                "qkv_w": _xavier(next(keys), d_model, 3 * d_model),
                "qkv_b": jnp.zeros((3 * d_model,), jnp.float32),
                "out_w": _xavier(next(keys), d_model, d_model),
                "out_b": jnp.zeros((d_model,), jnp.float32),
            }
        return {
            "q_w": _xavier(next(keys), d_model, d_model),
            "q_b": jnp.zeros((d_model,), jnp.float32),
            "kv_w": _xavier(next(keys), d_model, 2 * d_model),
            "kv_b": jnp.zeros((2 * d_model,), jnp.float32),
            "out_w": _xavier(next(keys), d_model, d_model),
            "out_b": jnp.zeros((d_model,), jnp.float32),
        }

    def block_params(with_cross):
        p = {
            "self": attn_params(True),
            "ln1_g": jnp.ones((d_model,), jnp.float32),
            "ln1_b": jnp.zeros((d_model,), jnp.float32),
            "mlp_w1": _xavier(next(keys), d_model, dim_ff),
            "mlp_b1": jnp.zeros((dim_ff,), jnp.float32),
            "mlp_w2": _xavier(next(keys), dim_ff, d_model),
            "mlp_b2": jnp.zeros((d_model,), jnp.float32),
            "ln3_g": jnp.ones((d_model,), jnp.float32),
            "ln3_b": jnp.zeros((d_model,), jnp.float32),
        }
        if with_cross:
            p["cross"] = attn_params(False)
            p["ln2_g"] = jnp.ones((d_model,), jnp.float32)
            p["ln2_b"] = jnp.zeros((d_model,), jnp.float32)
        return p

    embed_w = jax.random.normal(next(keys), (vocab, d_model),
                                jnp.float32) * (d_model ** -0.5)
    embed_w = embed_w.at[0].set(0.0)          # padding_idx=0

    return {
        "embed_w": embed_w,
        "pe": positional_table(pe_len, d_model),
        "encoder": [block_params(False) for _ in range(num_enc)],
        "decoder": [block_params(True) for _ in range(num_dec)],
        "prj_w": _xavier(next(keys), d_model, vocab - 2),
    }


def pack_params(params, cfg):
    """Pad to TPU-friendly shapes, fold the softmax scale into q weights, fuse
    QKV / KV into single lane-dense matmuls, pack all per-layer vector params
    into one (rows, Dp) 'misc' block, and stack layers along a leading axis."""
    D = cfg["d_model"]
    H = cfg["nhead"]
    Dh = D // H
    Dp, Fp, Vp = cfg["d_pad"], cfg["ff_pad"], cfg["v_pad"]
    scale = Dh ** (-0.5)

    def pad2(w, r, c):
        return jnp.pad(w, ((0, r - w.shape[0]), (0, c - w.shape[1])))

    def row(v, n):
        return jnp.pad(v, (0, n - v.shape[0])).reshape(1, n)

    def rows(vs, total):
        m = jnp.concatenate([row(v, Dp) for v in vs], axis=0)
        return jnp.pad(m, ((0, total - m.shape[0]), (0, 0)))

    def pack_layer(p, with_cross):
        s = p["self"]
        wq, wk, wv = jnp.split(s["qkv_w"], 3, axis=1)
        bq, bk, bv = jnp.split(s["qkv_b"], 3)
        out = {
            "qkv_w": jnp.concatenate([pad2(wq * scale, Dp, Dp),
                                      pad2(wk, Dp, Dp),
                                      pad2(wv, Dp, Dp)], axis=1),
            "qkv_b": jnp.concatenate([row(bq * scale, Dp),
                                      row(bk, Dp), row(bv, Dp)], axis=1),
            "out_w": pad2(s["out_w"], Dp, Dp),
            "mlp_w1": pad2(p["mlp_w1"], Dp, Fp),
            "mlp_b1": row(p["mlp_b1"], Fp),
            "mlp_w2": pad2(p["mlp_w2"], Fp, Dp),
        }
        if not with_cross:
            out["misc"] = rows([s["out_b"], p["ln1_g"], p["ln1_b"],
                                p["mlp_b2"], p["ln3_g"], p["ln3_b"]], 8)
        else:
            c = p["cross"]
            cwk, cwv = jnp.split(c["kv_w"], 2, axis=1)
            cbk, cbv = jnp.split(c["kv_b"], 2)
            out.update({
                "cq_w": pad2(c["q_w"] * scale, Dp, Dp),
                "ckv_w": jnp.concatenate([pad2(cwk, Dp, Dp),
                                          pad2(cwv, Dp, Dp)], axis=1),
                "ckv_b": jnp.concatenate([row(cbk, Dp), row(cbv, Dp)], axis=1),
                "cout_w": pad2(c["out_w"], Dp, Dp),
                "misc": rows([s["out_b"], p["ln1_g"], p["ln1_b"],
                              c["q_b"] * scale, c["out_b"],
                              p["ln2_g"], p["ln2_b"],
                              p["mlp_b2"], p["ln3_g"], p["ln3_b"]], 16),
            })
        return out

    enc_layers = [pack_layer(p, False) for p in params["encoder"]]
    dec_layers = [pack_layer(p, True) for p in params["decoder"]]
    enc = {n: jnp.stack([l[n] for l in enc_layers]) for n in ENC_NAMES}
    dec = {n: jnp.stack([l[n] for l in dec_layers]) for n in DEC_NAMES}
    return {
        "embed_w": params["embed_w"],
        "pe": params["pe"],
        "enc": enc,
        "dec": dec,
        "prj_w": pad2(params["prj_w"], Dp, Vp),
    }


# ----------------------------------------------------------------------------
if __name__ == "__main__":
    key = jax.random.PRNGKey(0)
    k_src, k_tok, k_par = jax.random.split(key, 3)

    # Small config: in_channels = d_model = 64 -> nhead = d_model // 32 = 2
    B, sN, d_model = 2, 16, 64
    nhead = d_model // 32
    dim_ff = d_model * 4
    out_channels = 38                 # vocab; ignore_index=37, bos=36, eos=0
    num_enc, num_dec = 2, 2

    cfg = {
        "d_model": d_model,
        "nhead": nhead,
        "dim_ff": dim_ff,
        "out_channels": out_channels,
        "d_pad": _round_up(d_model, 128),
        "ff_pad": _round_up(dim_ff, 128),
        "v_pad": _round_up(out_channels - 2, 128),
    }

    raw_params = make_params(k_par, d_model, nhead, dim_ff, out_channels,
                             num_enc, num_dec, pe_len=64)
    packed = pack_params(raw_params, cfg)

    # src: (B, sN, C); tgt tokens built the way NRTRDecoder.forward does
    src = jax.random.normal(k_src, (B, sN, d_model), jnp.float32)
    tokens = jax.random.randint(k_tok, (B, 10), 1, out_channels - 2)   # data[0]
    lengths = jnp.array([6, 5], jnp.int32)                             # data[1]
    max_len = int(lengths.max())
    tgt_tokens = tokens[:, : 2 + max_len]                              # (B, 8)

    fwd = jax.jit(lambda s, t, p: nrtr_forward_train(s, t, p, cfg))
    logits = jax.block_until_ready(fwd(src, tgt_tokens, packed))

    assert logits.shape == (B, tgt_tokens.shape[1] - 1, out_channels - 2)
    assert bool(jnp.all(jnp.isfinite(logits)))
    print("KERNEL_OK")
</pallas_src>

<mosaic_0001>
module attributes {stable_mosaic.version = 11 : i64} {
  func.func @_nrtr_fused_kernel(%arg0: i32, %arg1: memref<1x16x128xf32, #tpu.memory_space<vmem>>, %arg2: memref<1x8x128xf32, #tpu.memory_space<vmem>>, %arg3: memref<2x128x384xf32, #tpu.memory_space<vmem>>, %arg4: memref<2x1x384xf32, #tpu.memory_space<vmem>>, %arg5: memref<2x128x128xf32, #tpu.memory_space<vmem>>, %arg6: memref<2x128x256xf32, #tpu.memory_space<vmem>>, %arg7: memref<2x1x256xf32, #tpu.memory_space<vmem>>, %arg8: memref<2x256x128xf32, #tpu.memory_space<vmem>>, %arg9: memref<2x8x128xf32, #tpu.memory_space<vmem>>, %arg10: memref<2x128x384xf32, #tpu.memory_space<vmem>>, %arg11: memref<2x1x384xf32, #tpu.memory_space<vmem>>, %arg12: memref<2x128x128xf32, #tpu.memory_space<vmem>>, %arg13: memref<2x128x128xf32, #tpu.memory_space<vmem>>, %arg14: memref<2x128x256xf32, #tpu.memory_space<vmem>>, %arg15: memref<2x1x256xf32, #tpu.memory_space<vmem>>, %arg16: memref<2x128x128xf32, #tpu.memory_space<vmem>>, %arg17: memref<2x128x256xf32, #tpu.memory_space<vmem>>, %arg18: memref<2x1x256xf32, #tpu.memory_space<vmem>>, %arg19: memref<2x256x128xf32, #tpu.memory_space<vmem>>, %arg20: memref<2x16x128xf32, #tpu.memory_space<vmem>>, %arg21: memref<128x128xf32, #tpu.memory_space<vmem>>, %arg22: memref<1x8x128xf32, #tpu.memory_space<vmem>>) attributes {dimension_semantics = [#tpu.dimension_semantics<parallel>], iteration_bounds = array<i64: 2>, scalar_prefetch = 0 : i64, scratch_operands = 0 : i64, tpu.core_type = #tpu.core_type<tc>, window_params = [{transform_indices = @transform_0, window_bounds = array<i64: 1, 16, 128>}, {transform_indices = @transform_1, window_bounds = array<i64: 1, 8, 128>}, {pipeline_mode = #tpu.pipeline_mode<synchronous>, transform_indices = @transform_2, window_bounds = array<i64: 2, 128, 384>}, {pipeline_mode = #tpu.pipeline_mode<synchronous>, transform_indices = @transform_3, window_bounds = array<i64: 2, 1, 384>}, {pipeline_mode = #tpu.pipeline_mode<synchronous>, transform_indices = @transform_4, window_bounds = array<i64: 2, 128, 128>}, {pipeline_mode = #tpu.pipeline_mode<synchronous>, transform_indices = @transform_5, window_bounds = array<i64: 2, 128, 256>}, {pipeline_mode = #tpu.pipeline_mode<synchronous>, transform_indices = @transform_6, window_bounds = array<i64: 2, 1, 256>}, {pipeline_mode = #tpu.pipeline_mode<synchronous>, transform_indices = @transform_7, window_bounds = array<i64: 2, 256, 128>}, {pipeline_mode = #tpu.pipeline_mode<synchronous>, transform_indices = @transform_8, window_bounds = array<i64: 2, 8, 128>}, {pipeline_mode = #tpu.pipeline_mode<synchronous>, transform_indices = @transform_9, window_bounds = array<i64: 2, 128, 384>}, {pipeline_mode = #tpu.pipeline_mode<synchronous>, transform_indices = @transform_10, window_bounds = array<i64: 2, 1, 384>}, {pipeline_mode = #tpu.pipeline_mode<synchronous>, transform_indices = @transform_11, window_bounds = array<i64: 2, 128, 128>}, {pipeline_mode = #tpu.pipeline_mode<synchronous>, transform_indices = @transform_12, window_bounds = array<i64: 2, 128, 128>}, {pipeline_mode = #tpu.pipeline_mode<synchronous>, transform_indices = @transform_13, window_bounds = array<i64: 2, 128, 256>}, {pipeline_mode = #tpu.pipeline_mode<synchronous>, transform_indices = @transform_14, window_bounds = array<i64: 2, 1, 256>}, {pipeline_mode = #tpu.pipeline_mode<synchronous>, transform_indices = @transform_15, window_bounds = array<i64: 2, 128, 128>}, {pipeline_mode = #tpu.pipeline_mode<synchronous>, transform_indices = @transform_16, window_bounds = array<i64: 2, 128, 256>}, {pipeline_mode = #tpu.pipeline_mode<synchronous>, transform_indices = @transform_17, window_bounds = array<i64: 2, 1, 256>}, {pipeline_mode = #tpu.pipeline_mode<synchronous>, transform_indices = @transform_18, window_bounds = array<i64: 2, 256, 128>}, {pipeline_mode = #tpu.pipeline_mode<synchronous>, transform_indices = @transform_19, window_bounds = array<i64: 2, 16, 128>}, {pipeline_mode = #tpu.pipeline_mode<synchronous>, transform_indices = @transform_20, window_bounds = array<i64: 128, 128>}, {transform_indices = @transform_21, window_bounds = array<i64: 1, 8, 128>}]} {
    %0 = tpu.iota {dimensions = array<i32: 1>} : vector<1x128xi32>
    %c0_i32 = arith.constant 0 : i32
    %1 = vector.broadcast %c0_i32 : i32 to vector<1x128xi32>
    %2 = arith.cmpi sge, %0, %1 : vector<1x128xi32>
    %c32_i32 = arith.constant 32 : i32
    %3 = vector.broadcast %c32_i32 : i32 to vector<1x128xi32>
    %4 = arith.cmpi slt, %0, %3 : vector<1x128xi32>
    %5 = arith.andi %2, %4 : vector<1x128xi1>
    %6 = arith.extui %5 : vector<1x128xi1> to vector<1x128xi32>
    %7 = arith.sitofp %6 : vector<1x128xi32> to vector<1x128xf32>
    %c32_i32_0 = arith.constant 32 : i32
    %8 = vector.broadcast %c32_i32_0 : i32 to vector<1x128xi32>
    %9 = arith.cmpi sge, %0, %8 : vector<1x128xi32>
    %c64_i32 = arith.constant 64 : i32
    %10 = vector.broadcast %c64_i32 : i32 to vector<1x128xi32>
    %11 = arith.cmpi slt, %0, %10 : vector<1x128xi32>
    %12 = arith.andi %9, %11 : vector<1x128xi1>
    %13 = arith.extui %12 : vector<1x128xi1> to vector<1x128xi32>
    %14 = arith.sitofp %13 : vector<1x128xi32> to vector<1x128xf32>
    %15 = tpu.iota {dimensions = array<i32: 0>} : vector<8x8xi32>
    %16 = tpu.iota {dimensions = array<i32: 1>} : vector<8x8xi32>
    %17 = arith.cmpi sgt, %16, %15 : vector<8x8xi32>
    %cst = arith.constant -1.000000e+30 : f32
    %cst_1 = arith.constant 0.000000e+00 : f32
    %18 = vector.broadcast %cst : f32 to vector<8x8xf32>
    %19 = vector.broadcast %cst_1 : f32 to vector<8x8xf32>
    %20 = arith.select %17, %18, %19 : vector<8x8xi1>, vector<8x8xf32>
    %c0 = arith.constant 0 : index
    %c0_2 = arith.constant 0 : index
    %c0_3 = arith.constant 0 : index
    %21 = vector.load %arg1[%c0, %c0_2, %c0_3] : memref<1x16x128xf32, #tpu.memory_space<vmem>>, vector<1x16x128xf32>
    %22 = vector.shape_cast %21 : vector<1x16x128xf32> to vector<16x128xf32>
    %c0_4 = arith.constant 0 : index
    %c0_5 = arith.constant 0 : index
    %c0_6 = arith.constant 0 : index
    %23 = vector.load %arg9[%c0_4, %c0_5, %c0_6] : memref<2x8x128xf32, #tpu.memory_space<vmem>>, vector<1x8x128xf32>
    %24 = vector.shape_cast %23 : vector<1x8x128xf32> to vector<8x128xf32>
    %c0_7 = arith.constant 0 : index
    %c0_8 = arith.constant 0 : index
    %c0_9 = arith.constant 0 : index
    %25 = vector.load %arg3[%c0_7, %c0_8, %c0_9] : memref<2x128x384xf32, #tpu.memory_space<vmem>>, vector<1x128x384xf32>
    %26 = vector.shape_cast %25 : vector<1x128x384xf32> to vector<128x384xf32>
    %cst_10 = arith.constant dense<0.000000e+00> : vector<16x384xf32>
    %27 = tpu.matmul %22, %26, %cst_10 {dimension_numbers = #tpu.dot_dimension_numbers<[1], [0], [0], [1], [0, 0, 1, 1], [], []>} : vector<16x128xf32>, vector<128x384xf32>, vector<16x384xf32> -> vector<16x384xf32>
    %c0_11 = arith.constant 0 : index
    %c0_12 = arith.constant 0 : index
    %c0_13 = arith.constant 0 : index
    %28 = vector.load %arg4[%c0_11, %c0_12, %c0_13] : memref<2x1x384xf32, #tpu.memory_space<vmem>>, vector<1x1x384xf32>
    %29 = vector.shape_cast %28 : vector<1x1x384xf32> to vector<1x384xf32>
    %30 = vector.broadcast %29 : vector<1x384xf32> to vector<16x384xf32>
    %31 = arith.addf %27, %30 : vector<16x384xf32>
    %32 = vector.extract_strided_slice %31 {offsets = [0, 0], sizes = [16, 128], strides = [1, 1]} : vector<16x384xf32> to vector<16x128xf32>
    %33 = vector.extract_strided_slice %31 {offsets = [0, 128], sizes = [16, 128], strides = [1, 1]} : vector<16x384xf32> to vector<16x128xf32>
    %34 = vector.extract_strided_slice %31 {offsets = [0, 256], sizes = [16, 128], strides = [1, 1]} : vector<16x384xf32> to vector<16x128xf32>
    %c0_14 = arith.constant 0 : index
    %c0_15 = arith.constant 0 : index
    %c0_16 = arith.constant 0 : index
    %35 = vector.load %arg5[%c0_14, %c0_15, %c0_16] : memref<2x128x128xf32, #tpu.memory_space<vmem>>, vector<1x128x128xf32>
    %36 = vector.shape_cast %35 : vector<1x128x128xf32> to vector<128x128xf32>
    %37 = vector.extract_strided_slice %24 {offsets = [0, 0], sizes = [1, 128], strides = [1, 1]} : vector<8x128xf32> to vector<1x128xf32>
    %38 = vector.broadcast %7 : vector<1x128xf32> to vector<16x128xf32>
    %39 = arith.mulf %32, %38 : vector<16x128xf32>
    %cst_17 = arith.constant dense<0.000000e+00> : vector<16x16xf32>
    %40 = tpu.matmul %39, %33, %cst_17 {dimension_numbers = #tpu.dot_dimension_numbers<[1], [1], [0], [0], [0, 0, 1, 0], [], []>} : vector<16x128xf32>, vector<16x128xf32>, vector<16x16xf32> -> vector<16x16xf32>
    %cst_18 = arith.constant dense<0xFF800000> : vector<16xf32>
    %41 = vector.multi_reduction <maximumf>, %40, %cst_18 [1] : vector<16x16xf32> to vector<16xf32>
    %42 = vector.shape_cast %41 : vector<16xf32> to vector<16x1xf32>
    %43 = vector.broadcast %42 : vector<16x1xf32> to vector<16x16xf32>
    %44 = arith.subf %40, %43 : vector<16x16xf32>
    %45 = math.exp %44 : vector<16x16xf32>
    %cst_19 = arith.constant dense<0.000000e+00> : vector<16xf32>
    %46 = vector.multi_reduction <add>, %45, %cst_19 [1] : vector<16x16xf32> to vector<16xf32>
    %47 = vector.shape_cast %46 : vector<16xf32> to vector<16x1xf32>
    %48 = tpu.reciprocal %47 {approx = true} : vector<16x1xf32> -> vector<16x1xf32>
    %49 = vector.broadcast %48 : vector<16x1xf32> to vector<16x16xf32>
    %50 = arith.mulf %45, %49 : vector<16x16xf32>
    %51 = vector.broadcast %7 : vector<1x128xf32> to vector<16x128xf32>
    %52 = arith.mulf %34, %51 : vector<16x128xf32>
    %cst_20 = arith.constant dense<0.000000e+00> : vector<16x128xf32>
    %53 = tpu.matmul %50, %52, %cst_20 {dimension_numbers = #tpu.dot_dimension_numbers<[1], [0], [0], [1], [0, 0, 1, 1], [], []>} : vector<16x16xf32>, vector<16x128xf32>, vector<16x128xf32> -> vector<16x128xf32>
    %54 = vector.broadcast %14 : vector<1x128xf32> to vector<16x128xf32>
    %55 = arith.mulf %32, %54 : vector<16x128xf32>
    %cst_21 = arith.constant dense<0.000000e+00> : vector<16x16xf32>
    %56 = tpu.matmul %55, %33, %cst_21 {dimension_numbers = #tpu.dot_dimension_numbers<[1], [1], [0], [0], [0, 0, 1, 0], [], []>} : vector<16x128xf32>, vector<16x128xf32>, vector<16x16xf32> -> vector<16x16xf32>
    %cst_22 = arith.constant dense<0xFF800000> : vector<16xf32>
    %57 = vector.multi_reduction <maximumf>, %56, %cst_22 [1] : vector<16x16xf32> to vector<16xf32>
    %58 = vector.shape_cast %57 : vector<16xf32> to vector<16x1xf32>
    %59 = vector.broadcast %58 : vector<16x1xf32> to vector<16x16xf32>
    %60 = arith.subf %56, %59 : vector<16x16xf32>
    %61 = math.exp %60 : vector<16x16xf32>
    %cst_23 = arith.constant dense<0.000000e+00> : vector<16xf32>
    %62 = vector.multi_reduction <add>, %61, %cst_23 [1] : vector<16x16xf32> to vector<16xf32>
    %63 = vector.shape_cast %62 : vector<16xf32> to vector<16x1xf32>
    %64 = tpu.reciprocal %63 {approx = true} : vector<16x1xf32> -> vector<16x1xf32>
    %65 = vector.broadcast %64 : vector<16x1xf32> to vector<16x16xf32>
    %66 = arith.mulf %61, %65 : vector<16x16xf32>
    %67 = vector.broadcast %14 : vector<1x128xf32> to vector<16x128xf32>
    %68 = arith.mulf %34, %67 : vector<16x128xf32>
    %cst_24 = arith.constant dense<0.000000e+00> : vector<16x128xf32>
    %69 = tpu.matmul %66, %68, %cst_24 {dimension_numbers = #tpu.dot_dimension_numbers<[1], [0], [0], [1], [0, 0, 1, 1], [], []>} : vector<16x16xf32>, vector<16x128xf32>, vector<16x128xf32> -> vector<16x128xf32>
    %70 = arith.addf %53, %69 : vector<16x128xf32>
    %cst_25 = arith.constant dense<0.000000e+00> : vector<16x128xf32>
    %71 = tpu.matmul %70, %36, %cst_25 {dimension_numbers = #tpu.dot_dimension_numbers<[1], [0], [0], [1], [0, 0, 1, 1], [], []>} : vector<16x128xf32>, vector<128x128xf32>, vector<16x128xf32> -> vector<16x128xf32>
    %72 = vector.broadcast %37 : vector<1x128xf32> to vector<16x128xf32>
    %73 = arith.addf %71, %72 : vector<16x128xf32>
    %74 = vector.extract_strided_slice %24 {offsets = [1, 0], sizes = [1, 128], strides = [1, 1]} : vector<8x128xf32> to vector<1x128xf32>
    %75 = vector.extract_strided_slice %24 {offsets = [2, 0], sizes = [1, 128], strides = [1, 1]} : vector<8x128xf32> to vector<1x128xf32>
    %76 = arith.addf %22, %73 : vector<16x128xf32>
    %cst_26 = arith.constant dense<0.000000e+00> : vector<16xf32>
    %77 = vector.multi_reduction <add>, %76, %cst_26 [1] : vector<16x128xf32> to vector<16xf32>
    %78 = vector.shape_cast %77 : vector<16xf32> to vector<16x1xf32>
    %cst_27 = arith.constant 1.562500e-02 : f32
    %79 = vector.broadcast %cst_27 : f32 to vector<16x1xf32>
    %80 = arith.mulf %78, %79 : vector<16x1xf32>
    %81 = arith.mulf %76, %76 : vector<16x128xf32>
    %cst_28 = arith.constant dense<0.000000e+00> : vector<16xf32>
    %82 = vector.multi_reduction <add>, %81, %cst_28 [1] : vector<16x128xf32> to vector<16xf32>
    %83 = vector.shape_cast %82 : vector<16xf32> to vector<16x1xf32>
    %cst_29 = arith.constant 1.562500e-02 : f32
    %84 = vector.broadcast %cst_29 : f32 to vector<16x1xf32>
    %85 = arith.mulf %83, %84 : vector<16x1xf32>
    %86 = arith.mulf %80, %80 : vector<16x1xf32>
    %87 = arith.subf %85, %86 : vector<16x1xf32>
    %cst_30 = arith.constant 0.000000e+00 : f32
    %88 = vector.broadcast %cst_30 : f32 to vector<16x1xf32>
    %89 = arith.maximumf %87, %88 : vector<16x1xf32>
    %90 = vector.broadcast %80 : vector<16x1xf32> to vector<16x128xf32>
    %91 = arith.subf %76, %90 : vector<16x128xf32>
    %cst_31 = arith.constant 9.99999974E-6 : f32
    %92 = vector.broadcast %cst_31 : f32 to vector<16x1xf32>
    %93 = arith.addf %89, %92 : vector<16x1xf32>
    %94 = math.rsqrt %93 : vector<16x1xf32>
    %95 = vector.broadcast %94 : vector<16x1xf32> to vector<16x128xf32>
    %96 = arith.mulf %91, %95 : vector<16x128xf32>
    %97 = vector.broadcast %74 : vector<1x128xf32> to vector<16x128xf32>
    %98 = arith.mulf %96, %97 : vector<16x128xf32>
    %99 = vector.broadcast %75 : vector<1x128xf32> to vector<16x128xf32>
    %100 = arith.addf %98, %99 : vector<16x128xf32>
    %c0_32 = arith.constant 0 : index
    %c0_33 = arith.constant 0 : index
    %c0_34 = arith.constant 0 : index
    %101 = vector.load %arg6[%c0_32, %c0_33, %c0_34] : memref<2x128x256xf32, #tpu.memory_space<vmem>>, vector<1x128x256xf32>
    %102 = vector.shape_cast %101 : vector<1x128x256xf32> to vector<128x256xf32>
    %cst_35 = arith.constant dense<0.000000e+00> : vector<16x256xf32>
    %103 = tpu.matmul %100, %102, %cst_35 {dimension_numbers = #tpu.dot_dimension_numbers<[1], [0], [0], [1], [0, 0, 1, 1], [], []>} : vector<16x128xf32>, vector<128x256xf32>, vector<16x256xf32> -> vector<16x256xf32>
    %c0_36 = arith.constant 0 : index
    %c0_37 = arith.constant 0 : index
    %c0_38 = arith.constant 0 : index
    %104 = vector.load %arg7[%c0_36, %c0_37, %c0_38] : memref<2x1x256xf32, #tpu.memory_space<vmem>>, vector<1x1x256xf32>
    %105 = vector.shape_cast %104 : vector<1x1x256xf32> to vector<1x256xf32>
    %106 = vector.broadcast %105 : vector<1x256xf32> to vector<16x256xf32>
    %107 = arith.addf %103, %106 : vector<16x256xf32>
    %cst_39 = arith.constant 0.000000e+00 : f32
    %108 = vector.broadcast %cst_39 : f32 to vector<16x256xf32>
    %109 = arith.maximumf %107, %108 : vector<16x256xf32>
    %c0_40 = arith.constant 0 : index
    %c0_41 = arith.constant 0 : index
    %c0_42 = arith.constant 0 : index
    %110 = vector.load %arg8[%c0_40, %c0_41, %c0_42] : memref<2x256x128xf32, #tpu.memory_space<vmem>>, vector<1x256x128xf32>
    %111 = vector.shape_cast %110 : vector<1x256x128xf32> to vector<256x128xf32>
    %cst_43 = arith.constant dense<0.000000e+00> : vector<16x128xf32>
    %112 = tpu.matmul %109, %111, %cst_43 {dimension_numbers = #tpu.dot_dimension_numbers<[1], [0], [0], [1], [0, 0, 1, 1], [], []>} : vector<16x256xf32>, vector<256x128xf32>, vector<16x128xf32> -> vector<16x128xf32>
    %113 = vector.extract_strided_slice %24 {offsets = [3, 0], sizes = [1, 128], strides = [1, 1]} : vector<8x128xf32> to vector<1x128xf32>
    %114 = vector.broadcast %113 : vector<1x128xf32> to vector<16x128xf32>
    %115 = arith.addf %112, %114 : vector<16x128xf32>
    %116 = vector.extract_strided_slice %24 {offsets = [4, 0], sizes = [1, 128], strides = [1, 1]} : vector<8x128xf32> to vector<1x128xf32>
    %117 = vector.extract_strided_slice %24 {offsets = [5, 0], sizes = [1, 128], strides = [1, 1]} : vector<8x128xf32> to vector<1x128xf32>
    %118 = arith.addf %100, %115 : vector<16x128xf32>
    %cst_44 = arith.constant dense<0.000000e+00> : vector<16xf32>
    %119 = vector.multi_reduction <add>, %118, %cst_44 [1] : vector<16x128xf32> to vector<16xf32>
    %120 = vector.shape_cast %119 : vector<16xf32> to vector<16x1xf32>
    %cst_45 = arith.constant 1.562500e-02 : f32
    %121 = vector.broadcast %cst_45 : f32 to vector<16x1xf32>
    %122 = arith.mulf %120, %121 : vector<16x1xf32>
    %123 = arith.mulf %118, %118 : vector<16x128xf32>
    %cst_46 = arith.constant dense<0.000000e+00> : vector<16xf32>
    %124 = vector.multi_reduction <add>, %123, %cst_46 [1] : vector<16x128xf32> to vector<16xf32>
    %125 = vector.shape_cast %124 : vector<16xf32> to vector<16x1xf32>
    %cst_47 = arith.constant 1.562500e-02 : f32
    %126 = vector.broadcast %cst_47 : f32 to vector<16x1xf32>
    %127 = arith.mulf %125, %126 : vector<16x1xf32>
    %128 = arith.mulf %122, %122 : vector<16x1xf32>
    %129 = arith.subf %127, %128 : vector<16x1xf32>
    %cst_48 = arith.constant 0.000000e+00 : f32
    %130 = vector.broadcast %cst_48 : f32 to vector<16x1xf32>
    %131 = arith.maximumf %129, %130 : vector<16x1xf32>
    %132 = vector.broadcast %122 : vector<16x1xf32> to vector<16x128xf32>
    %133 = arith.subf %118, %132 : vector<16x128xf32>
    %cst_49 = arith.constant 9.99999974E-6 : f32
    %134 = vector.broadcast %cst_49 : f32 to vector<16x1xf32>
    %135 = arith.addf %131, %134 : vector<16x1xf32>
    %136 = math.rsqrt %135 : vector<16x1xf32>
    %137 = vector.broadcast %136 : vector<16x1xf32> to vector<16x128xf32>
    %138 = arith.mulf %133, %137 : vector<16x128xf32>
    %139 = vector.broadcast %116 : vector<1x128xf32> to vector<16x128xf32>
    %140 = arith.mulf %138, %139 : vector<16x128xf32>
    %141 = vector.broadcast %117 : vector<1x128xf32> to vector<16x128xf32>
    %142 = arith.addf %140, %141 : vector<16x128xf32>
    %c1 = arith.constant 1 : index
    %c0_50 = arith.constant 0 : index
    %c0_51 = arith.constant 0 : index
    %143 = vector.load %arg9[%c1, %c0_50, %c0_51] : memref<2x8x128xf32, #tpu.memory_space<vmem>>, vector<1x8x128xf32>
    %144 = vector.shape_cast %143 : vector<1x8x128xf32> to vector<8x128xf32>
    %c1_52 = arith.constant 1 : index
    %c0_53 = arith.constant 0 : index
    %c0_54 = arith.constant 0 : index
    %145 = vector.load %arg3[%c1_52, %c0_53, %c0_54] : memref<2x128x384xf32, #tpu.memory_space<vmem>>, vector<1x128x384xf32>
    %146 = vector.shape_cast %145 : vector<1x128x384xf32> to vector<128x384xf32>
    %cst_55 = arith.constant dense<0.000000e+00> : vector<16x384xf32>
    %147 = tpu.matmul %142, %146, %cst_55 {dimension_numbers = #tpu.dot_dimension_numbers<[1], [0], [0], [1], [0, 0, 1, 1], [], []>} : vector<16x128xf32>, vector<128x384xf32>, vector<16x384xf32> -> vector<16x384xf32>
    %c1_56 = arith.constant 1 : index
    %c0_57 = arith.constant 0 : index
    %c0_58 = arith.constant 0 : index
    %148 = vector.load %arg4[%c1_56, %c0_57, %c0_58] : memref<2x1x384xf32, #tpu.memory_space<vmem>>, vector<1x1x384xf32>
    %149 = vector.shape_cast %148 : vector<1x1x384xf32> to vector<1x384xf32>
    %150 = vector.broadcast %149 : vector<1x384xf32> to vector<16x384xf32>
    %151 = arith.addf %147, %150 : vector<16x384xf32>
    %152 = vector.extract_strided_slice %151 {offsets = [0, 0], sizes = [16, 128], strides = [1, 1]} : vector<16x384xf32> to vector<16x128xf32>
    %153 = vector.extract_strided_slice %151 {offsets = [0, 128], sizes = [16, 128], strides = [1, 1]} : vector<16x384xf32> to vector<16x128xf32>
    %154 = vector.extract_strided_slice %151 {offsets = [0, 256], sizes = [16, 128], strides = [1, 1]} : vector<16x384xf32> to vector<16x128xf32>
    %c1_59 = arith.constant 1 : index
    %c0_60 = arith.constant 0 : index
    %c0_61 = arith.constant 0 : index
    %155 = vector.load %arg5[%c1_59, %c0_60, %c0_61] : memref<2x128x128xf32, #tpu.memory_space<vmem>>, vector<1x128x128xf32>
    %156 = vector.shape_cast %155 : vector<1x128x128xf32> to vector<128x128xf32>
    %157 = vector.extract_strided_slice %144 {offsets = [0, 0], sizes = [1, 128], strides = [1, 1]} : vector<8x128xf32> to vector<1x128xf32>
    %158 = vector.broadcast %7 : vector<1x128xf32> to vector<16x128xf32>
    %159 = arith.mulf %152, %158 : vector<16x128xf32>
    %cst_62 = arith.constant dense<0.000000e+00> : vector<16x16xf32>
    %160 = tpu.matmul %159, %153, %cst_62 {dimension_numbers = #tpu.dot_dimension_numbers<[1], [1], [0], [0], [0, 0, 1, 0], [], []>} : vector<16x128xf32>, vector<16x128xf32>, vector<16x16xf32> -> vector<16x16xf32>
    %cst_63 = arith.constant dense<0xFF800000> : vector<16xf32>
    %161 = vector.multi_reduction <maximumf>, %160, %cst_63 [1] : vector<16x16xf32> to vector<16xf32>
    %162 = vector.shape_cast %161 : vector<16xf32> to vector<16x1xf32>
    %163 = vector.broadcast %162 : vector<16x1xf32> to vector<16x16xf32>
    %164 = arith.subf %160, %163 : vector<16x16xf32>
    %165 = math.exp %164 : vector<16x16xf32>
    %cst_64 = arith.constant dense<0.000000e+00> : vector<16xf32>
    %166 = vector.multi_reduction <add>, %165, %cst_64 [1] : vector<16x16xf32> to vector<16xf32>
    %167 = vector.shape_cast %166 : vector<16xf32> to vector<16x1xf32>
    %168 = tpu.reciprocal %167 {approx = true} : vector<16x1xf32> -> vector<16x1xf32>
    %169 = vector.broadcast %168 : vector<16x1xf32> to vector<16x16xf32>
    %170 = arith.mulf %165, %169 : vector<16x16xf32>
    %171 = vector.broadcast %7 : vector<1x128xf32> to vector<16x128xf32>
    %172 = arith.mulf %154, %171 : vector<16x128xf32>
    %cst_65 = arith.constant dense<0.000000e+00> : vector<16x128xf32>
    %173 = tpu.matmul %170, %172, %cst_65 {dimension_numbers = #tpu.dot_dimension_numbers<[1], [0], [0], [1], [0, 0, 1, 1], [], []>} : vector<16x16xf32>, vector<16x128xf32>, vector<16x128xf32> -> vector<16x128xf32>
    %174 = vector.broadcast %14 : vector<1x128xf32> to vector<16x128xf32>
    %175 = arith.mulf %152, %174 : vector<16x128xf32>
    %cst_66 = arith.constant dense<0.000000e+00> : vector<16x16xf32>
    %176 = tpu.matmul %175, %153, %cst_66 {dimension_numbers = #tpu.dot_dimension_numbers<[1], [1], [0], [0], [0, 0, 1, 0], [], []>} : vector<16x128xf32>, vector<16x128xf32>, vector<16x16xf32> -> vector<16x16xf32>
    %cst_67 = arith.constant dense<0xFF800000> : vector<16xf32>
    %177 = vector.multi_reduction <maximumf>, %176, %cst_67 [1] : vector<16x16xf32> to vector<16xf32>
    %178 = vector.shape_cast %177 : vector<16xf32> to vector<16x1xf32>
    %179 = vector.broadcast %178 : vector<16x1xf32> to vector<16x16xf32>
    %180 = arith.subf %176, %179 : vector<16x16xf32>
    %181 = math.exp %180 : vector<16x16xf32>
    %cst_68 = arith.constant dense<0.000000e+00> : vector<16xf32>
    %182 = vector.multi_reduction <add>, %181, %cst_68 [1] : vector<16x16xf32> to vector<16xf32>
    %183 = vector.shape_cast %182 : vector<16xf32> to vector<16x1xf32>
    %184 = tpu.reciprocal %183 {approx = true} : vector<16x1xf32> -> vector<16x1xf32>
    %185 = vector.broadcast %184 : vector<16x1xf32> to vector<16x16xf32>
    %186 = arith.mulf %181, %185 : vector<16x16xf32>
    %187 = vector.broadcast %14 : vector<1x128xf32> to vector<16x128xf32>
    %188 = arith.mulf %154, %187 : vector<16x128xf32>
    %cst_69 = arith.constant dense<0.000000e+00> : vector<16x128xf32>
    %189 = tpu.matmul %186, %188, %cst_69 {dimension_numbers = #tpu.dot_dimension_numbers<[1], [0], [0], [1], [0, 0, 1, 1], [], []>} : vector<16x16xf32>, vector<16x128xf32>, vector<16x128xf32> -> vector<16x128xf32>
    %190 = arith.addf %173, %189 : vector<16x128xf32>
    %cst_70 = arith.constant dense<0.000000e+00> : vector<16x128xf32>
    %191 = tpu.matmul %190, %156, %cst_70 {dimension_numbers = #tpu.dot_dimension_numbers<[1], [0], [0], [1], [0, 0, 1, 1], [], []>} : vector<16x128xf32>, vector<128x128xf32>, vector<16x128xf32> -> vector<16x128xf32>
    %192 = vector.broadcast %157 : vector<1x128xf32> to vector<16x128xf32>
    %193 = arith.addf %191, %192 : vector<16x128xf32>
    %194 = vector.extract_strided_slice %144 {offsets = [1, 0], sizes = [1, 128], strides = [1, 1]} : vector<8x128xf32> to vector<1x128xf32>
    %195 = vector.extract_strided_slice %144 {offsets = [2, 0], sizes = [1, 128], strides = [1, 1]} : vector<8x128xf32> to vector<1x128xf32>
    %196 = arith.addf %142, %193 : vector<16x128xf32>
    %cst_71 = arith.constant dense<0.000000e+00> : vector<16xf32>
    %197 = vector.multi_reduction <add>, %196, %cst_71 [1] : vector<16x128xf32> to vector<16xf32>
    %198 = vector.shape_cast %197 : vector<16xf32> to vector<16x1xf32>
    %cst_72 = arith.constant 1.562500e-02 : f32
    %199 = vector.broadcast %cst_72 : f32 to vector<16x1xf32>
    %200 = arith.mulf %198, %199 : vector<16x1xf32>
    %201 = arith.mulf %196, %196 : vector<16x128xf32>
    %cst_73 = arith.constant dense<0.000000e+00> : vector<16xf32>
    %202 = vector.multi_reduction <add>, %201, %cst_73 [1] : vector<16x128xf32> to vector<16xf32>
    %203 = vector.shape_cast %202 : vector<16xf32> to vector<16x1xf32>
    %cst_74 = arith.constant 1.562500e-02 : f32
    %204 = vector.broadcast %cst_74 : f32 to vector<16x1xf32>
    %205 = arith.mulf %203, %204 : vector<16x1xf32>
    %206 = arith.mulf %200, %200 : vector<16x1xf32>
    %207 = arith.subf %205, %206 : vector<16x1xf32>
    %cst_75 = arith.constant 0.000000e+00 : f32
    %208 = vector.broadcast %cst_75 : f32 to vector<16x1xf32>
    %209 = arith.maximumf %207, %208 : vector<16x1xf32>
    %210 = vector.broadcast %200 : vector<16x1xf32> to vector<16x128xf32>
    %211 = arith.subf %196, %210 : vector<16x128xf32>
    %cst_76 = arith.constant 9.99999974E-6 : f32
    %212 = vector.broadcast %cst_76 : f32 to vector<16x1xf32>
    %213 = arith.addf %209, %212 : vector<16x1xf32>
    %214 = math.rsqrt %213 : vector<16x1xf32>
    %215 = vector.broadcast %214 : vector<16x1xf32> to vector<16x128xf32>
    %216 = arith.mulf %211, %215 : vector<16x128xf32>
    %217 = vector.broadcast %194 : vector<1x128xf32> to vector<16x128xf32>
    %218 = arith.mulf %216, %217 : vector<16x128xf32>
    %219 = vector.broadcast %195 : vector<1x128xf32> to vector<16x128xf32>
    %220 = arith.addf %218, %219 : vector<16x128xf32>
    %c1_77 = arith.constant 1 : index
    %c0_78 = arith.constant 0 : index
    %c0_79 = arith.constant 0 : index
    %221 = vector.load %arg6[%c1_77, %c0_78, %c0_79] : memref<2x128x256xf32, #tpu.memory_space<vmem>>, vector<1x128x256xf32>
    %222 = vector.shape_cast %221 : vector<1x128x256xf32> to vector<128x256xf32>
    %cst_80 = arith.constant dense<0.000000e+00> : vector<16x256xf32>
    %223 = tpu.matmul %220, %222, %cst_80 {dimension_numbers = #tpu.dot_dimension_numbers<[1], [0], [0], [1], [0, 0, 1, 1], [], []>} : vector<16x128xf32>, vector<128x256xf32>, vector<16x256xf32> -> vector<16x256xf32>
    %c1_81 = arith.constant 1 : index
    %c0_82 = arith.constant 0 : index
    %c0_83 = arith.constant 0 : index
    %224 = vector.load %arg7[%c1_81, %c0_82, %c0_83] : memref<2x1x256xf32, #tpu.memory_space<vmem>>, vector<1x1x256xf32>
    %225 = vector.shape_cast %224 : vector<1x1x256xf32> to vector<1x256xf32>
    %226 = vector.broadcast %225 : vector<1x256xf32> to vector<16x256xf32>
    %227 = arith.addf %223, %226 : vector<16x256xf32>
    %cst_84 = arith.constant 0.000000e+00 : f32
    %228 = vector.broadcast %cst_84 : f32 to vector<16x256xf32>
    %229 = arith.maximumf %227, %228 : vector<16x256xf32>
    %c1_85 = arith.constant 1 : index
    %c0_86 = arith.constant 0 : index
    %c0_87 = arith.constant 0 : index
    %230 = vector.load %arg8[%c1_85, %c0_86, %c0_87] : memref<2x256x128xf32, #tpu.memory_space<vmem>>, vector<1x256x128xf32>
    %231 = vector.shape_cast %230 : vector<1x256x128xf32> to vector<256x128xf32>
    %cst_88 = arith.constant dense<0.000000e+00> : vector<16x128xf32>
    %232 = tpu.matmul %229, %231, %cst_88 {dimension_numbers = #tpu.dot_dimension_numbers<[1], [0], [0], [1], [0, 0, 1, 1], [], []>} : vector<16x256xf32>, vector<256x128xf32>, vector<16x128xf32> -> vector<16x128xf32>
    %233 = vector.extract_strided_slice %144 {offsets = [3, 0], sizes = [1, 128], strides = [1, 1]} : vector<8x128xf32> to vector<1x128xf32>
    %234 = vector.broadcast %233 : vector<1x128xf32> to vector<16x128xf32>
    %235 = arith.addf %232, %234 : vector<16x128xf32>
    %236 = vector.extract_strided_slice %144 {offsets = [4, 0], sizes = [1, 128], strides = [1, 1]} : vector<8x128xf32> to vector<1x128xf32>
    %237 = vector.extract_strided_slice %144 {offsets = [5, 0], sizes = [1, 128], strides = [1, 1]} : vector<8x128xf32> to vector<1x128xf32>
    %238 = arith.addf %220, %235 : vector<16x128xf32>
    %cst_89 = arith.constant dense<0.000000e+00> : vector<16xf32>
    %239 = vector.multi_reduction <add>, %238, %cst_89 [1] : vector<16x128xf32> to vector<16xf32>
    %240 = vector.shape_cast %239 : vector<16xf32> to vector<16x1xf32>
    %cst_90 = arith.constant 1.562500e-02 : f32
    %241 = vector.broadcast %cst_90 : f32 to vector<16x1xf32>
    %242 = arith.mulf %240, %241 : vector<16x1xf32>
    %243 = arith.mulf %238, %238 : vector<16x128xf32>
    %cst_91 = arith.constant dense<0.000000e+00> : vector<16xf32>
    %244 = vector.multi_reduction <add>, %243, %cst_91 [1] : vector<16x128xf32> to vector<16xf32>
    %245 = vector.shape_cast %244 : vector<16xf32> to vector<16x1xf32>
    %cst_92 = arith.constant 1.562500e-02 : f32
    %246 = vector.broadcast %cst_92 : f32 to vector<16x1xf32>
    %247 = arith.mulf %245, %246 : vector<16x1xf32>
    %248 = arith.mulf %242, %242 : vector<16x1xf32>
    %249 = arith.subf %247, %248 : vector<16x1xf32>
    %cst_93 = arith.constant 0.000000e+00 : f32
    %250 = vector.broadcast %cst_93 : f32 to vector<16x1xf32>
    %251 = arith.maximumf %249, %250 : vector<16x1xf32>
    %252 = vector.broadcast %242 : vector<16x1xf32> to vector<16x128xf32>
    %253 = arith.subf %238, %252 : vector<16x128xf32>
    %cst_94 = arith.constant 9.99999974E-6 : f32
    %254 = vector.broadcast %cst_94 : f32 to vector<16x1xf32>
    %255 = arith.addf %251, %254 : vector<16x1xf32>
    %256 = math.rsqrt %255 : vector<16x1xf32>
    %257 = vector.broadcast %256 : vector<16x1xf32> to vector<16x128xf32>
    %258 = arith.mulf %253, %257 : vector<16x128xf32>
    %259 = vector.broadcast %236 : vector<1x128xf32> to vector<16x128xf32>
    %260 = arith.mulf %258, %259 : vector<16x128xf32>
    %261 = vector.broadcast %237 : vector<1x128xf32> to vector<16x128xf32>
    %262 = arith.addf %260, %261 : vector<16x128xf32>
    %c0_95 = arith.constant 0 : index
    %c0_96 = arith.constant 0 : index
    %c0_97 = arith.constant 0 : index
    %263 = vector.load %arg2[%c0_95, %c0_96, %c0_97] : memref<1x8x128xf32, #tpu.memory_space<vmem>>, vector<1x8x128xf32>
    %264 = vector.shape_cast %263 : vector<1x8x128xf32> to vector<8x128xf32>
    %c0_98 = arith.constant 0 : index
    %c0_99 = arith.constant 0 : index
    %c0_100 = arith.constant 0 : index
    %265 = vector.load %arg20[%c0_98, %c0_99, %c0_100] : memref<2x16x128xf32, #tpu.memory_space<vmem>>, vector<1x16x128xf32>
    %266 = vector.shape_cast %265 : vector<1x16x128xf32> to vector<16x128xf32>
    %c0_101 = arith.constant 0 : index
    %c0_102 = arith.constant 0 : index
    %c0_103 = arith.constant 0 : index
    %267 = vector.load %arg10[%c0_101, %c0_102, %c0_103] : memref<2x128x384xf32, #tpu.memory_space<vmem>>, vector<1x128x384xf32>
    %268 = vector.shape_cast %267 : vector<1x128x384xf32> to vector<128x384xf32>
    %cst_104 = arith.constant dense<0.000000e+00> : vector<8x384xf32>
    %269 = tpu.matmul %264, %268, %cst_104 {dimension_numbers = #tpu.dot_dimension_numbers<[1], [0], [0], [1], [0, 0, 1, 1], [], []>} : vector<8x128xf32>, vector<128x384xf32>, vector<8x384xf32> -> vector<8x384xf32>
    %c0_105 = arith.constant 0 : index
    %c0_106 = arith.constant 0 : index
    %c0_107 = arith.constant 0 : index
    %270 = vector.load %arg11[%c0_105, %c0_106, %c0_107] : memref<2x1x384xf32, #tpu.memory_space<vmem>>, vector<1x1x384xf32>
    %271 = vector.shape_cast %270 : vector<1x1x384xf32> to vector<1x384xf32>
    %272 = vector.broadcast %271 : vector<1x384xf32> to vector<8x384xf32>
    %273 = arith.addf %269, %272 : vector<8x384xf32>
    %274 = vector.extract_strided_slice %273 {offsets = [0, 0], sizes = [8, 128], strides = [1, 1]} : vector<8x384xf32> to vector<8x128xf32>
    %275 = vector.extract_strided_slice %273 {offsets = [0, 128], sizes = [8, 128], strides = [1, 1]} : vector<8x384xf32> to vector<8x128xf32>
    %276 = vector.extract_strided_slice %273 {offsets = [0, 256], sizes = [8, 128], strides = [1, 1]} : vector<8x384xf32> to vector<8x128xf32>
    %c0_108 = arith.constant 0 : index
    %c0_109 = arith.constant 0 : index
    %c0_110 = arith.constant 0 : index
    %277 = vector.load %arg12[%c0_108, %c0_109, %c0_110] : memref<2x128x128xf32, #tpu.memory_space<vmem>>, vector<1x128x128xf32>
    %278 = vector.shape_cast %277 : vector<1x128x128xf32> to vector<128x128xf32>
    %279 = vector.extract_strided_slice %266 {offsets = [0, 0], sizes = [1, 128], strides = [1, 1]} : vector<16x128xf32> to vector<1x128xf32>
    %280 = vector.broadcast %7 : vector<1x128xf32> to vector<8x128xf32>
    %281 = arith.mulf %274, %280 : vector<8x128xf32>
    %cst_111 = arith.constant dense<0.000000e+00> : vector<8x8xf32>
    %282 = tpu.matmul %281, %275, %cst_111 {dimension_numbers = #tpu.dot_dimension_numbers<[1], [1], [0], [0], [0, 0, 1, 0], [], []>} : vector<8x128xf32>, vector<8x128xf32>, vector<8x8xf32> -> vector<8x8xf32>
    %283 = arith.addf %282, %20 : vector<8x8xf32>
    %cst_112 = arith.constant dense<0xFF800000> : vector<8xf32>
    %284 = vector.multi_reduction <maximumf>, %283, %cst_112 [1] : vector<8x8xf32> to vector<8xf32>
    %285 = vector.shape_cast %284 : vector<8xf32> to vector<8x1xf32>
    %286 = vector.broadcast %285 : vector<8x1xf32> to vector<8x8xf32>
    %287 = arith.subf %283, %286 : vector<8x8xf32>
    %288 = math.exp %287 : vector<8x8xf32>
    %cst_113 = arith.constant dense<0.000000e+00> : vector<8xf32>
    %289 = vector.multi_reduction <add>, %288, %cst_113 [1] : vector<8x8xf32> to vector<8xf32>
    %290 = vector.shape_cast %289 : vector<8xf32> to vector<8x1xf32>
    %291 = tpu.reciprocal %290 {approx = true} : vector<8x1xf32> -> vector<8x1xf32>
    %292 = vector.broadcast %291 : vector<8x1xf32> to vector<8x8xf32>
    %293 = arith.mulf %288, %292 : vector<8x8xf32>
    %294 = vector.broadcast %7 : vector<1x128xf32> to vector<8x128xf32>
    %295 = arith.mulf %276, %294 : vector<8x128xf32>
    %cst_114 = arith.constant dense<0.000000e+00> : vector<8x128xf32>
    %296 = tpu.matmul %293, %295, %cst_114 {dimension_numbers = #tpu.dot_dimension_numbers<[1], [0], [0], [1], [0, 0, 1, 1], [], []>} : vector<8x8xf32>, vector<8x128xf32>, vector<8x128xf32> -> vector<8x128xf32>
    %297 = vector.broadcast %14 : vector<1x128xf32> to vector<8x128xf32>
    %298 = arith.mulf %274, %297 : vector<8x128xf32>
    %cst_115 = arith.constant dense<0.000000e+00> : vector<8x8xf32>
    %299 = tpu.matmul %298, %275, %cst_115 {dimension_numbers = #tpu.dot_dimension_numbers<[1], [1], [0], [0], [0, 0, 1, 0], [], []>} : vector<8x128xf32>, vector<8x128xf32>, vector<8x8xf32> -> vector<8x8xf32>
    %300 = arith.addf %299, %20 : vector<8x8xf32>
    %cst_116 = arith.constant dense<0xFF800000> : vector<8xf32>
    %301 = vector.multi_reduction <maximumf>, %300, %cst_116 [1] : vector<8x8xf32> to vector<8xf32>
    %302 = vector.shape_cast %301 : vector<8xf32> to vector<8x1xf32>
    %303 = vector.broadcast %302 : vector<8x1xf32> to vector<8x8xf32>
    %304 = arith.subf %300, %303 : vector<8x8xf32>
    %305 = math.exp %304 : vector<8x8xf32>
    %cst_117 = arith.constant dense<0.000000e+00> : vector<8xf32>
    %306 = vector.multi_reduction <add>, %305, %cst_117 [1] : vector<8x8xf32> to vector<8xf32>
    %307 = vector.shape_cast %306 : vector<8xf32> to vector<8x1xf32>
    %308 = tpu.reciprocal %307 {approx = true} : vector<8x1xf32> -> vector<8x1xf32>
    %309 = vector.broadcast %308 : vector<8x1xf32> to vector<8x8xf32>
    %310 = arith.mulf %305, %309 : vector<8x8xf32>
    %311 = vector.broadcast %14 : vector<1x128xf32> to vector<8x128xf32>
    %312 = arith.mulf %276, %311 : vector<8x128xf32>
    %cst_118 = arith.constant dense<0.000000e+00> : vector<8x128xf32>
    %313 = tpu.matmul %310, %312, %cst_118 {dimension_numbers = #tpu.dot_dimension_numbers<[1], [0], [0], [1], [0, 0, 1, 1], [], []>} : vector<8x8xf32>, vector<8x128xf32>, vector<8x128xf32> -> vector<8x128xf32>
    %314 = arith.addf %296, %313 : vector<8x128xf32>
    %cst_119 = arith.constant dense<0.000000e+00> : vector<8x128xf32>
    %315 = tpu.matmul %314, %278, %cst_119 {dimension_numbers = #tpu.dot_dimension_numbers<[1], [0], [0], [1], [0, 0, 1, 1], [], []>} : vector<8x128xf32>, vector<128x128xf32>, vector<8x128xf32> -> vector<8x128xf32>
    %316 = vector.broadcast %279 : vector<1x128xf32> to vector<8x128xf32>
    %317 = arith.addf %315, %316 : vector<8x128xf32>
    %318 = vector.extract_strided_slice %266 {offsets = [1, 0], sizes = [1, 128], strides = [1, 1]} : vector<16x128xf32> to vector<1x128xf32>
    %319 = vector.extract_strided_slice %266 {offsets = [2, 0], sizes = [1, 128], strides = [1, 1]} : vector<16x128xf32> to vector<1x128xf32>
    %320 = arith.addf %264, %317 : vector<8x128xf32>
    %cst_120 = arith.constant dense<0.000000e+00> : vector<8xf32>
    %321 = vector.multi_reduction <add>, %320, %cst_120 [1] : vector<8x128xf32> to vector<8xf32>
    %322 = vector.shape_cast %321 : vector<8xf32> to vector<8x1xf32>
    %cst_121 = arith.constant 1.562500e-02 : f32
    %323 = vector.broadcast %cst_121 : f32 to vector<8x1xf32>
    %324 = arith.mulf %322, %323 : vector<8x1xf32>
    %325 = arith.mulf %320, %320 : vector<8x128xf32>
    %cst_122 = arith.constant dense<0.000000e+00> : vector<8xf32>
    %326 = vector.multi_reduction <add>, %325, %cst_122 [1] : vector<8x128xf32> to vector<8xf32>
    %327 = vector.shape_cast %326 : vector<8xf32> to vector<8x1xf32>
    %cst_123 = arith.constant 1.562500e-02 : f32
    %328 = vector.broadcast %cst_123 : f32 to vector<8x1xf32>
    %329 = arith.mulf %327, %328 : vector<8x1xf32>
    %330 = arith.mulf %324, %324 : vector<8x1xf32>
    %331 = arith.subf %329, %330 : vector<8x1xf32>
    %cst_124 = arith.constant 0.000000e+00 : f32
    %332 = vector.broadcast %cst_124 : f32 to vector<8x1xf32>
    %333 = arith.maximumf %331, %332 : vector<8x1xf32>
    %334 = vector.broadcast %324 : vector<8x1xf32> to vector<8x128xf32>
    %335 = arith.subf %320, %334 : vector<8x128xf32>
    %cst_125 = arith.constant 9.99999974E-6 : f32
    %336 = vector.broadcast %cst_125 : f32 to vector<8x1xf32>
    %337 = arith.addf %333, %336 : vector<8x1xf32>
    %338 = math.rsqrt %337 : vector<8x1xf32>
    %339 = vector.broadcast %338 : vector<8x1xf32> to vector<8x128xf32>
    %340 = arith.mulf %335, %339 : vector<8x128xf32>
    %341 = vector.broadcast %318 : vector<1x128xf32> to vector<8x128xf32>
    %342 = arith.mulf %340, %341 : vector<8x128xf32>
    %343 = vector.broadcast %319 : vector<1x128xf32> to vector<8x128xf32>
    %344 = arith.addf %342, %343 : vector<8x128xf32>
    %c0_126 = arith.constant 0 : index
    %c0_127 = arith.constant 0 : index
    %c0_128 = arith.constant 0 : index
    %345 = vector.load %arg13[%c0_126, %c0_127, %c0_128] : memref<2x128x128xf32, #tpu.memory_space<vmem>>, vector<1x128x128xf32>
    %346 = vector.shape_cast %345 : vector<1x128x128xf32> to vector<128x128xf32>
    %cst_129 = arith.constant dense<0.000000e+00> : vector<8x128xf32>
    %347 = tpu.matmul %344, %346, %cst_129 {dimension_numbers = #tpu.dot_dimension_numbers<[1], [0], [0], [1], [0, 0, 1, 1], [], []>} : vector<8x128xf32>, vector<128x128xf32>, vector<8x128xf32> -> vector<8x128xf32>
    %348 = vector.extract_strided_slice %266 {offsets = [3, 0], sizes = [1, 128], strides = [1, 1]} : vector<16x128xf32> to vector<1x128xf32>
    %349 = vector.broadcast %348 : vector<1x128xf32> to vector<8x128xf32>
    %350 = arith.addf %347, %349 : vector<8x128xf32>
    %c0_130 = arith.constant 0 : index
    %c0_131 = arith.constant 0 : index
    %c0_132 = arith.constant 0 : index
    %351 = vector.load %arg14[%c0_130, %c0_131, %c0_132] : memref<2x128x256xf32, #tpu.memory_space<vmem>>, vector<1x128x256xf32>
    %352 = vector.shape_cast %351 : vector<1x128x256xf32> to vector<128x256xf32>
    %cst_133 = arith.constant dense<0.000000e+00> : vector<16x256xf32>
    %353 = tpu.matmul %262, %352, %cst_133 {dimension_numbers = #tpu.dot_dimension_numbers<[1], [0], [0], [1], [0, 0, 1, 1], [], []>} : vector<16x128xf32>, vector<128x256xf32>, vector<16x256xf32> -> vector<16x256xf32>
    %c0_134 = arith.constant 0 : index
    %c0_135 = arith.constant 0 : index
    %c0_136 = arith.constant 0 : index
    %354 = vector.load %arg15[%c0_134, %c0_135, %c0_136] : memref<2x1x256xf32, #tpu.memory_space<vmem>>, vector<1x1x256xf32>
    %355 = vector.shape_cast %354 : vector<1x1x256xf32> to vector<1x256xf32>
    %356 = vector.broadcast %355 : vector<1x256xf32> to vector<16x256xf32>
    %357 = arith.addf %353, %356 : vector<16x256xf32>
    %358 = vector.extract_strided_slice %357 {offsets = [0, 0], sizes = [16, 128], strides = [1, 1]} : vector<16x256xf32> to vector<16x128xf32>
    %359 = vector.extract_strided_slice %357 {offsets = [0, 128], sizes = [16, 128], strides = [1, 1]} : vector<16x256xf32> to vector<16x128xf32>
    %c0_137 = arith.constant 0 : index
    %c0_138 = arith.constant 0 : index
    %c0_139 = arith.constant 0 : index
    %360 = vector.load %arg16[%c0_137, %c0_138, %c0_139] : memref<2x128x128xf32, #tpu.memory_space<vmem>>, vector<1x128x128xf32>
    %361 = vector.shape_cast %360 : vector<1x128x128xf32> to vector<128x128xf32>
    %362 = vector.extract_strided_slice %266 {offsets = [4, 0], sizes = [1, 128], strides = [1, 1]} : vector<16x128xf32> to vector<1x128xf32>
    %363 = vector.broadcast %7 : vector<1x128xf32> to vector<8x128xf32>
    %364 = arith.mulf %350, %363 : vector<8x128xf32>
    %cst_140 = arith.constant dense<0.000000e+00> : vector<8x16xf32>
    %365 = tpu.matmul %364, %358, %cst_140 {dimension_numbers = #tpu.dot_dimension_numbers<[1], [1], [0], [0], [0, 0, 1, 0], [], []>} : vector<8x128xf32>, vector<16x128xf32>, vector<8x16xf32> -> vector<8x16xf32>
    %cst_141 = arith.constant dense<0xFF800000> : vector<8xf32>
    %366 = vector.multi_reduction <maximumf>, %365, %cst_141 [1] : vector<8x16xf32> to vector<8xf32>
    %367 = vector.shape_cast %366 : vector<8xf32> to vector<8x1xf32>
    %368 = vector.broadcast %367 : vector<8x1xf32> to vector<8x16xf32>
    %369 = arith.subf %365, %368 : vector<8x16xf32>
    %370 = math.exp %369 : vector<8x16xf32>
    %cst_142 = arith.constant dense<0.000000e+00> : vector<8xf32>
    %371 = vector.multi_reduction <add>, %370, %cst_142 [1] : vector<8x16xf32> to vector<8xf32>
    %372 = vector.shape_cast %371 : vector<8xf32> to vector<8x1xf32>
    %373 = tpu.reciprocal %372 {approx = true} : vector<8x1xf32> -> vector<8x1xf32>
    %374 = vector.broadcast %373 : vector<8x1xf32> to vector<8x16xf32>
    %375 = arith.mulf %370, %374 : vector<8x16xf32>
    %376 = vector.broadcast %7 : vector<1x128xf32> to vector<16x128xf32>
    %377 = arith.mulf %359, %376 : vector<16x128xf32>
    %cst_143 = arith.constant dense<0.000000e+00> : vector<8x128xf32>
    %378 = tpu.matmul %375, %377, %cst_143 {dimension_numbers = #tpu.dot_dimension_numbers<[1], [0], [0], [1], [0, 0, 1, 1], [], []>} : vector<8x16xf32>, vector<16x128xf32>, vector<8x128xf32> -> vector<8x128xf32>
    %379 = vector.broadcast %14 : vector<1x128xf32> to vector<8x128xf32>
    %380 = arith.mulf %350, %379 : vector<8x128xf32>
    %cst_144 = arith.constant dense<0.000000e+00> : vector<8x16xf32>
    %381 = tpu.matmul %380, %358, %cst_144 {dimension_numbers = #tpu.dot_dimension_numbers<[1], [1], [0], [0], [0, 0, 1, 0], [], []>} : vector<8x128xf32>, vector<16x128xf32>, vector<8x16xf32> -> vector<8x16xf32>
    %cst_145 = arith.constant dense<0xFF800000> : vector<8xf32>
    %382 = vector.multi_reduction <maximumf>, %381, %cst_145 [1] : vector<8x16xf32> to vector<8xf32>
    %383 = vector.shape_cast %382 : vector<8xf32> to vector<8x1xf32>
    %384 = vector.broadcast %383 : vector<8x1xf32> to vector<8x16xf32>
    %385 = arith.subf %381, %384 : vector<8x16xf32>
    %386 = math.exp %385 : vector<8x16xf32>
    %cst_146 = arith.constant dense<0.000000e+00> : vector<8xf32>
    %387 = vector.multi_reduction <add>, %386, %cst_146 [1] : vector<8x16xf32> to vector<8xf32>
    %388 = vector.shape_cast %387 : vector<8xf32> to vector<8x1xf32>
    %389 = tpu.reciprocal %388 {approx = true} : vector<8x1xf32> -> vector<8x1xf32>
    %390 = vector.broadcast %389 : vector<8x1xf32> to vector<8x16xf32>
    %391 = arith.mulf %386, %390 : vector<8x16xf32>
    %392 = vector.broadcast %14 : vector<1x128xf32> to vector<16x128xf32>
    %393 = arith.mulf %359, %392 : vector<16x128xf32>
    %cst_147 = arith.constant dense<0.000000e+00> : vector<8x128xf32>
    %394 = tpu.matmul %391, %393, %cst_147 {dimension_numbers = #tpu.dot_dimension_numbers<[1], [0], [0], [1], [0, 0, 1, 1], [], []>} : vector<8x16xf32>, vector<16x128xf32>, vector<8x128xf32> -> vector<8x128xf32>
    %395 = arith.addf %378, %394 : vector<8x128xf32>
    %cst_148 = arith.constant dense<0.000000e+00> : vector<8x128xf32>
    %396 = tpu.matmul %395, %361, %cst_148 {dimension_numbers = #tpu.dot_dimension_numbers<[1], [0], [0], [1], [0, 0, 1, 1], [], []>} : vector<8x128xf32>, vector<128x128xf32>, vector<8x128xf32> -> vector<8x128xf32>
    %397 = vector.broadcast %362 : vector<1x128xf32> to vector<8x128xf32>
    %398 = arith.addf %396, %397 : vector<8x128xf32>
    %399 = vector.extract_strided_slice %266 {offsets = [5, 0], sizes = [1, 128], strides = [1, 1]} : vector<16x128xf32> to vector<1x128xf32>
    %400 = vector.extract_strided_slice %266 {offsets = [6, 0], sizes = [1, 128], strides = [1, 1]} : vector<16x128xf32> to vector<1x128xf32>
    %401 = arith.addf %344, %398 : vector<8x128xf32>
    %cst_149 = arith.constant dense<0.000000e+00> : vector<8xf32>
    %402 = vector.multi_reduction <add>, %401, %cst_149 [1] : vector<8x128xf32> to vector<8xf32>
    %403 = vector.shape_cast %402 : vector<8xf32> to vector<8x1xf32>
    %cst_150 = arith.constant 1.562500e-02 : f32
    %404 = vector.broadcast %cst_150 : f32 to vector<8x1xf32>
    %405 = arith.mulf %403, %404 : vector<8x1xf32>
    %406 = arith.mulf %401, %401 : vector<8x128xf32>
    %cst_151 = arith.constant dense<0.000000e+00> : vector<8xf32>
    %407 = vector.multi_reduction <add>, %406, %cst_151 [1] : vector<8x128xf32> to vector<8xf32>
    %408 = vector.shape_cast %407 : vector<8xf32> to vector<8x1xf32>
    %cst_152 = arith.constant 1.562500e-02 : f32
    %409 = vector.broadcast %cst_152 : f32 to vector<8x1xf32>
    %410 = arith.mulf %408, %409 : vector<8x1xf32>
    %411 = arith.mulf %405, %405 : vector<8x1xf32>
    %412 = arith.subf %410, %411 : vector<8x1xf32>
    %cst_153 = arith.constant 0.000000e+00 : f32
    %413 = vector.broadcast %cst_153 : f32 to vector<8x1xf32>
    %414 = arith.maximumf %412, %413 : vector<8x1xf32>
    %415 = vector.broadcast %405 : vector<8x1xf32> to vector<8x128xf32>
    %416 = arith.subf %401, %415 : vector<8x128xf32>
    %cst_154 = arith.constant 9.99999974E-6 : f32
    %417 = vector.broadcast %cst_154 : f32 to vector<8x1xf32>
    %418 = arith.addf %414, %417 : vector<8x1xf32>
    %419 = math.rsqrt %418 : vector<8x1xf32>
    %420 = vector.broadcast %419 : vector<8x1xf32> to vector<8x128xf32>
    %421 = arith.mulf %416, %420 : vector<8x128xf32>
    %422 = vector.broadcast %399 : vector<1x128xf32> to vector<8x128xf32>
    %423 = arith.mulf %421, %422 : vector<8x128xf32>
    %424 = vector.broadcast %400 : vector<1x128xf32> to vector<8x128xf32>
    %425 = arith.addf %423, %424 : vector<8x128xf32>
    %c0_155 = arith.constant 0 : index
    %c0_156 = arith.constant 0 : index
    %c0_157 = arith.constant 0 : index
    %426 = vector.load %arg17[%c0_155, %c0_156, %c0_157] : memref<2x128x256xf32, #tpu.memory_space<vmem>>, vector<1x128x256xf32>
    %427 = vector.shape_cast %426 : vector<1x128x256xf32> to vector<128x256xf32>
    %cst_158 = arith.constant dense<0.000000e+00> : vector<8x256xf32>
    %428 = tpu.matmul %425, %427, %cst_158 {dimension_numbers = #tpu.dot_dimension_numbers<[1], [0], [0], [1], [0, 0, 1, 1], [], []>} : vector<8x128xf32>, vector<128x256xf32>, vector<8x256xf32> -> vector<8x256xf32>
    %c0_159 = arith.constant 0 : index
    %c0_160 = arith.constant 0 : index
    %c0_161 = arith.constant 0 : index
    %429 = vector.load %arg18[%c0_159, %c0_160, %c0_161] : memref<2x1x256xf32, #tpu.memory_space<vmem>>, vector<1x1x256xf32>
    %430 = vector.shape_cast %429 : vector<1x1x256xf32> to vector<1x256xf32>
    %431 = vector.broadcast %430 : vector<1x256xf32> to vector<8x256xf32>
    %432 = arith.addf %428, %431 : vector<8x256xf32>
    %cst_162 = arith.constant 0.000000e+00 : f32
    %433 = vector.broadcast %cst_162 : f32 to vector<8x256xf32>
    %434 = arith.maximumf %432, %433 : vector<8x256xf32>
    %c0_163 = arith.constant 0 : index
    %c0_164 = arith.constant 0 : index
    %c0_165 = arith.constant 0 : index
    %435 = vector.load %arg19[%c0_163, %c0_164, %c0_165] : memref<2x256x128xf32, #tpu.memory_space<vmem>>, vector<1x256x128xf32>
    %436 = vector.shape_cast %435 : vector<1x256x128xf32> to vector<256x128xf32>
    %cst_166 = arith.constant dense<0.000000e+00> : vector<8x128xf32>
    %437 = tpu.matmul %434, %436, %cst_166 {dimension_numbers = #tpu.dot_dimension_numbers<[1], [0], [0], [1], [0, 0, 1, 1], [], []>} : vector<8x256xf32>, vector<256x128xf32>, vector<8x128xf32> -> vector<8x128xf32>
    %438 = vector.extract_strided_slice %266 {offsets = [7, 0], sizes = [1, 128], strides = [1, 1]} : vector<16x128xf32> to vector<1x128xf32>
    %439 = vector.broadcast %438 : vector<1x128xf32> to vector<8x128xf32>
    %440 = arith.addf %437, %439 : vector<8x128xf32>
    %441 = vector.extract_strided_slice %266 {offsets = [8, 0], sizes = [1, 128], strides = [1, 1]} : vector<16x128xf32> to vector<1x128xf32>
    %442 = vector.extract_strided_slice %266 {offsets = [9, 0], sizes = [1, 128], strides = [1, 1]} : vector<16x128xf32> to vector<1x128xf32>
    %443 = arith.addf %425, %440 : vector<8x128xf32>
    %cst_167 = arith.constant dense<0.000000e+00> : vector<8xf32>
    %444 = vector.multi_reduction <add>, %443, %cst_167 [1] : vector<8x128xf32> to vector<8xf32>
    %445 = vector.shape_cast %444 : vector<8xf32> to vector<8x1xf32>
    %cst_168 = arith.constant 1.562500e-02 : f32
    %446 = vector.broadcast %cst_168 : f32 to vector<8x1xf32>
    %447 = arith.mulf %445, %446 : vector<8x1xf32>
    %448 = arith.mulf %443, %443 : vector<8x128xf32>
    %cst_169 = arith.constant dense<0.000000e+00> : vector<8xf32>
    %449 = vector.multi_reduction <add>, %448, %cst_169 [1] : vector<8x128xf32> to vector<8xf32>
    %450 = vector.shape_cast %449 : vector<8xf32> to vector<8x1xf32>
    %cst_170 = arith.constant 1.562500e-02 : f32
    %451 = vector.broadcast %cst_170 : f32 to vector<8x1xf32>
    %452 = arith.mulf %450, %451 : vector<8x1xf32>
    %453 = arith.mulf %447, %447 : vector<8x1xf32>
    %454 = arith.subf %452, %453 : vector<8x1xf32>
    %cst_171 = arith.constant 0.000000e+00 : f32
    %455 = vector.broadcast %cst_171 : f32 to vector<8x1xf32>
    %456 = arith.maximumf %454, %455 : vector<8x1xf32>
    %457 = vector.broadcast %447 : vector<8x1xf32> to vector<8x128xf32>
    %458 = arith.subf %443, %457 : vector<8x128xf32>
    %cst_172 = arith.constant 9.99999974E-6 : f32
    %459 = vector.broadcast %cst_172 : f32 to vector<8x1xf32>
    %460 = arith.addf %456, %459 : vector<8x1xf32>
    %461 = math.rsqrt %460 : vector<8x1xf32>
    %462 = vector.broadcast %461 : vector<8x1xf32> to vector<8x128xf32>
    %463 = arith.mulf %458, %462 : vector<8x128xf32>
    %464 = vector.broadcast %441 : vector<1x128xf32> to vector<8x128xf32>
    %465 = arith.mulf %463, %464 : vector<8x128xf32>
    %466 = vector.broadcast %442 : vector<1x128xf32> to vector<8x128xf32>
    %467 = arith.addf %465, %466 : vector<8x128xf32>
    %c1_173 = arith.constant 1 : index
    %c0_174 = arith.constant 0 : index
    %c0_175 = arith.constant 0 : index
    %468 = vector.load %arg20[%c1_173, %c0_174, %c0_175] : memref<2x16x128xf32, #tpu.memory_space<vmem>>, vector<1x16x128xf32>
    %469 = vector.shape_cast %468 : vector<1x16x128xf32> to vector<16x128xf32>
    %c1_176 = arith.constant 1 : index
    %c0_177 = arith.constant 0 : index
    %c0_178 = arith.constant 0 : index
    %470 = vector.load %arg10[%c1_176, %c0_177, %c0_178] : memref<2x128x384xf32, #tpu.memory_space<vmem>>, vector<1x128x384xf32>
    %471 = vector.shape_cast %470 : vector<1x128x384xf32> to vector<128x384xf32>
    %cst_179 = arith.constant dense<0.000000e+00> : vector<8x384xf32>
    %472 = tpu.matmul %467, %471, %cst_179 {dimension_numbers = #tpu.dot_dimension_numbers<[1], [0], [0], [1], [0, 0, 1, 1], [], []>} : vector<8x128xf32>, vector<128x384xf32>, vector<8x384xf32> -> vector<8x384xf32>
    %c1_180 = arith.constant 1 : index
    %c0_181 = arith.constant 0 : index
    %c0_182 = arith.constant 0 : index
    %473 = vector.load %arg11[%c1_180, %c0_181, %c0_182] : memref<2x1x384xf32, #tpu.memory_space<vmem>>, vector<1x1x384xf32>
    %474 = vector.shape_cast %473 : vector<1x1x384xf32> to vector<1x384xf32>
    %475 = vector.broadcast %474 : vector<1x384xf32> to vector<8x384xf32>
    %476 = arith.addf %472, %475 : vector<8x384xf32>
    %477 = vector.extract_strided_slice %476 {offsets = [0, 0], sizes = [8, 128], strides = [1, 1]} : vector<8x384xf32> to vector<8x128xf32>
    %478 = vector.extract_strided_slice %476 {offsets = [0, 128], sizes = [8, 128], strides = [1, 1]} : vector<8x384xf32> to vector<8x128xf32>
    %479 = vector.extract_strided_slice %476 {offsets = [0, 256], sizes = [8, 128], strides = [1, 1]} : vector<8x384xf32> to vector<8x128xf32>
    %c1_183 = arith.constant 1 : index
    %c0_184 = arith.constant 0 : index
    %c0_185 = arith.constant 0 : index
    %480 = vector.load %arg12[%c1_183, %c0_184, %c0_185] : memref<2x128x128xf32, #tpu.memory_space<vmem>>, vector<1x128x128xf32>
    %481 = vector.shape_cast %480 : vector<1x128x128xf32> to vector<128x128xf32>
    %482 = vector.extract_strided_slice %469 {offsets = [0, 0], sizes = [1, 128], strides = [1, 1]} : vector<16x128xf32> to vector<1x128xf32>
    %483 = vector.broadcast %7 : vector<1x128xf32> to vector<8x128xf32>
    %484 = arith.mulf %477, %483 : vector<8x128xf32>
    %cst_186 = arith.constant dense<0.000000e+00> : vector<8x8xf32>
    %485 = tpu.matmul %484, %478, %cst_186 {dimension_numbers = #tpu.dot_dimension_numbers<[1], [1], [0], [0], [0, 0, 1, 0], [], []>} : vector<8x128xf32>, vector<8x128xf32>, vector<8x8xf32> -> vector<8x8xf32>
    %486 = arith.addf %485, %20 : vector<8x8xf32>
    %cst_187 = arith.constant dense<0xFF800000> : vector<8xf32>
    %487 = vector.multi_reduction <maximumf>, %486, %cst_187 [1] : vector<8x8xf32> to vector<8xf32>
    %488 = vector.shape_cast %487 : vector<8xf32> to vector<8x1xf32>
    %489 = vector.broadcast %488 : vector<8x1xf32> to vector<8x8xf32>
    %490 = arith.subf %486, %489 : vector<8x8xf32>
    %491 = math.exp %490 : vector<8x8xf32>
    %cst_188 = arith.constant dense<0.000000e+00> : vector<8xf32>
    %492 = vector.multi_reduction <add>, %491, %cst_188 [1] : vector<8x8xf32> to vector<8xf32>
    %493 = vector.shape_cast %492 : vector<8xf32> to vector<8x1xf32>
    %494 = tpu.reciprocal %493 {approx = true} : vector<8x1xf32> -> vector<8x1xf32>
    %495 = vector.broadcast %494 : vector<8x1xf32> to vector<8x8xf32>
    %496 = arith.mulf %491, %495 : vector<8x8xf32>
    %497 = vector.broadcast %7 : vector<1x128xf32> to vector<8x128xf32>
    %498 = arith.mulf %479, %497 : vector<8x128xf32>
    %cst_189 = arith.constant dense<0.000000e+00> : vector<8x128xf32>
    %499 = tpu.matmul %496, %498, %cst_189 {dimension_numbers = #tpu.dot_dimension_numbers<[1], [0], [0], [1], [0, 0, 1, 1], [], []>} : vector<8x8xf32>, vector<8x128xf32>, vector<8x128xf32> -> vector<8x128xf32>
    %500 = vector.broadcast %14 : vector<1x128xf32> to vector<8x128xf32>
    %501 = arith.mulf %477, %500 : vector<8x128xf32>
    %cst_190 = arith.constant dense<0.000000e+00> : vector<8x8xf32>
    %502 = tpu.matmul %501, %478, %cst_190 {dimension_numbers = #tpu.dot_dimension_numbers<[1], [1], [0], [0], [0, 0, 1, 0], [], []>} : vector<8x128xf32>, vector<8x128xf32>, vector<8x8xf32> -> vector<8x8xf32>
    %503 = arith.addf %502, %20 : vector<8x8xf32>
    %cst_191 = arith.constant dense<0xFF800000> : vector<8xf32>
    %504 = vector.multi_reduction <maximumf>, %503, %cst_191 [1] : vector<8x8xf32> to vector<8xf32>
    %505 = vector.shape_cast %504 : vector<8xf32> to vector<8x1xf32>
    %506 = vector.broadcast %505 : vector<8x1xf32> to vector<8x8xf32>
    %507 = arith.subf %503, %506 : vector<8x8xf32>
    %508 = math.exp %507 : vector<8x8xf32>
    %cst_192 = arith.constant dense<0.000000e+00> : vector<8xf32>
    %509 = vector.multi_reduction <add>, %508, %cst_192 [1] : vector<8x8xf32> to vector<8xf32>
    %510 = vector.shape_cast %509 : vector<8xf32> to vector<8x1xf32>
    %511 = tpu.reciprocal %510 {approx = true} : vector<8x1xf32> -> vector<8x1xf32>
    %512 = vector.broadcast %511 : vector<8x1xf32> to vector<8x8xf32>
    %513 = arith.mulf %508, %512 : vector<8x8xf32>
    %514 = vector.broadcast %14 : vector<1x128xf32> to vector<8x128xf32>
    %515 = arith.mulf %479, %514 : vector<8x128xf32>
    %cst_193 = arith.constant dense<0.000000e+00> : vector<8x128xf32>
    %516 = tpu.matmul %513, %515, %cst_193 {dimension_numbers = #tpu.dot_dimension_numbers<[1], [0], [0], [1], [0, 0, 1, 1], [], []>} : vector<8x8xf32>, vector<8x128xf32>, vector<8x128xf32> -> vector<8x128xf32>
    %517 = arith.addf %499, %516 : vector<8x128xf32>
    %cst_194 = arith.constant dense<0.000000e+00> : vector<8x128xf32>
    %518 = tpu.matmul %517, %481, %cst_194 {dimension_numbers = #tpu.dot_dimension_numbers<[1], [0], [0], [1], [0, 0, 1, 1], [], []>} : vector<8x128xf32>, vector<128x128xf32>, vector<8x128xf32> -> vector<8x128xf32>
    %519 = vector.broadcast %482 : vector<1x128xf32> to vector<8x128xf32>
    %520 = arith.addf %518, %519 : vector<8x128xf32>
    %521 = vector.extract_strided_slice %469 {offsets = [1, 0], sizes = [1, 128], strides = [1, 1]} : vector<16x128xf32> to vector<1x128xf32>
    %522 = vector.extract_strided_slice %469 {offsets = [2, 0], sizes = [1, 128], strides = [1, 1]} : vector<16x128xf32> to vector<1x128xf32>
    %523 = arith.addf %467, %520 : vector<8x128xf32>
    %cst_195 = arith.constant dense<0.000000e+00> : vector<8xf32>
    %524 = vector.multi_reduction <add>, %523, %cst_195 [1] : vector<8x128xf32> to vector<8xf32>
    %525 = vector.shape_cast %524 : vector<8xf32> to vector<8x1xf32>
    %cst_196 = arith.constant 1.562500e-02 : f32
    %526 = vector.broadcast %cst_196 : f32 to vector<8x1xf32>
    %527 = arith.mulf %525, %526 : vector<8x1xf32>
    %528 = arith.mulf %523, %523 : vector<8x128xf32>
    %cst_197 = arith.constant dense<0.000000e+00> : vector<8xf32>
    %529 = vector.multi_reduction <add>, %528, %cst_197 [1] : vector<8x128xf32> to vector<8xf32>
    %530 = vector.shape_cast %529 : vector<8xf32> to vector<8x1xf32>
    %cst_198 = arith.constant 1.562500e-02 : f32
    %531 = vector.broadcast %cst_198 : f32 to vector<8x1xf32>
    %532 = arith.mulf %530, %531 : vector<8x1xf32>
    %533 = arith.mulf %527, %527 : vector<8x1xf32>
    %534 = arith.subf %532, %533 : vector<8x1xf32>
    %cst_199 = arith.constant 0.000000e+00 : f32
    %535 = vector.broadcast %cst_199 : f32 to vector<8x1xf32>
    %536 = arith.maximumf %534, %535 : vector<8x1xf32>
    %537 = vector.broadcast %527 : vector<8x1xf32> to vector<8x128xf32>
    %538 = arith.subf %523, %537 : vector<8x128xf32>
    %cst_200 = arith.constant 9.99999974E-6 : f32
    %539 = vector.broadcast %cst_200 : f32 to vector<8x1xf32>
    %540 = arith.addf %536, %539 : vector<8x1xf32>
    %541 = math.rsqrt %540 : vector<8x1xf32>
    %542 = vector.broadcast %541 : vector<8x1xf32> to vector<8x128xf32>
    %543 = arith.mulf %538, %542 : vector<8x128xf32>
    %544 = vector.broadcast %521 : vector<1x128xf32> to vector<8x128xf32>
    %545 = arith.mulf %543, %544 : vector<8x128xf32>
    %546 = vector.broadcast %522 : vector<1x128xf32> to vector<8x128xf32>
    %547 = arith.addf %545, %546 : vector<8x128xf32>
    %c1_201 = arith.constant 1 : index
    %c0_202 = arith.constant 0 : index
    %c0_203 = arith.constant 0 : index
    %548 = vector.load %arg13[%c1_201, %c0_202, %c0_203] : memref<2x128x128xf32, #tpu.memory_space<vmem>>, vector<1x128x128xf32>
    %549 = vector.shape_cast %548 : vector<1x128x128xf32> to vector<128x128xf32>
    %cst_204 = arith.constant dense<0.000000e+00> : vector<8x128xf32>
    %550 = tpu.matmul %547, %549, %cst_204 {dimension_numbers = #tpu.dot_dimension_numbers<[1], [0], [0], [1], [0, 0, 1, 1], [], []>} : vector<8x128xf32>, vector<128x128xf32>, vector<8x128xf32> -> vector<8x128xf32>
    %551 = vector.extract_strided_slice %469 {offsets = [3, 0], sizes = [1, 128], strides = [1, 1]} : vector<16x128xf32> to vector<1x128xf32>
    %552 = vector.broadcast %551 : vector<1x128xf32> to vector<8x128xf32>
    %553 = arith.addf %550, %552 : vector<8x128xf32>
    %c1_205 = arith.constant 1 : index
    %c0_206 = arith.constant 0 : index
    %c0_207 = arith.constant 0 : index
    %554 = vector.load %arg14[%c1_205, %c0_206, %c0_207] : memref<2x128x256xf32, #tpu.memory_space<vmem>>, vector<1x128x256xf32>
    %555 = vector.shape_cast %554 : vector<1x128x256xf32> to vector<128x256xf32>
    %cst_208 = arith.constant dense<0.000000e+00> : vector<16x256xf32>
    %556 = tpu.matmul %262, %555, %cst_208 {dimension_numbers = #tpu.dot_dimension_numbers<[1], [0], [0], [1], [0, 0, 1, 1], [], []>} : vector<16x128xf32>, vector<128x256xf32>, vector<16x256xf32> -> vector<16x256xf32>
    %c1_209 = arith.constant 1 : index
    %c0_210 = arith.constant 0 : index
    %c0_211 = arith.constant 0 : index
    %557 = vector.load %arg15[%c1_209, %c0_210, %c0_211] : memref<2x1x256xf32, #tpu.memory_space<vmem>>, vector<1x1x256xf32>
    %558 = vector.shape_cast %557 : vector<1x1x256xf32> to vector<1x256xf32>
    %559 = vector.broadcast %558 : vector<1x256xf32> to vector<16x256xf32>
    %560 = arith.addf %556, %559 : vector<16x256xf32>
    %561 = vector.extract_strided_slice %560 {offsets = [0, 0], sizes = [16, 128], strides = [1, 1]} : vector<16x256xf32> to vector<16x128xf32>
    %562 = vector.extract_strided_slice %560 {offsets = [0, 128], sizes = [16, 128], strides = [1, 1]} : vector<16x256xf32> to vector<16x128xf32>
    %c1_212 = arith.constant 1 : index
    %c0_213 = arith.constant 0 : index
    %c0_214 = arith.constant 0 : index
    %563 = vector.load %arg16[%c1_212, %c0_213, %c0_214] : memref<2x128x128xf32, #tpu.memory_space<vmem>>, vector<1x128x128xf32>
    %564 = vector.shape_cast %563 : vector<1x128x128xf32> to vector<128x128xf32>
    %565 = vector.extract_strided_slice %469 {offsets = [4, 0], sizes = [1, 128], strides = [1, 1]} : vector<16x128xf32> to vector<1x128xf32>
    %566 = vector.broadcast %7 : vector<1x128xf32> to vector<8x128xf32>
    %567 = arith.mulf %553, %566 : vector<8x128xf32>
    %cst_215 = arith.constant dense<0.000000e+00> : vector<8x16xf32>
    %568 = tpu.matmul %567, %561, %cst_215 {dimension_numbers = #tpu.dot_dimension_numbers<[1], [1], [0], [0], [0, 0, 1, 0], [], []>} : vector<8x128xf32>, vector<16x128xf32>, vector<8x16xf32> -> vector<8x16xf32>
    %cst_216 = arith.constant dense<0xFF800000> : vector<8xf32>
    %569 = vector.multi_reduction <maximumf>, %568, %cst_216 [1] : vector<8x16xf32> to vector<8xf32>
    %570 = vector.shape_cast %569 : vector<8xf32> to vector<8x1xf32>
    %571 = vector.broadcast %570 : vector<8x1xf32> to vector<8x16xf32>
    %572 = arith.subf %568, %571 : vector<8x16xf32>
    %573 = math.exp %572 : vector<8x16xf32>
    %cst_217 = arith.constant dense<0.000000e+00> : vector<8xf32>
    %574 = vector.multi_reduction <add>, %573, %cst_217 [1] : vector<8x16xf32> to vector<8xf32>
    %575 = vector.shape_cast %574 : vector<8xf32> to vector<8x1xf32>
    %576 = tpu.reciprocal %575 {approx = true} : vector<8x1xf32> -> vector<8x1xf32>
    %577 = vector.broadcast %576 : vector<8x1xf32> to vector<8x16xf32>
    %578 = arith.mulf %573, %577 : vector<8x16xf32>
    %579 = vector.broadcast %7 : vector<1x128xf32> to vector<16x128xf32>
    %580 = arith.mulf %562, %579 : vector<16x128xf32>
    %cst_218 = arith.constant dense<0.000000e+00> : vector<8x128xf32>
    %581 = tpu.matmul %578, %580, %cst_218 {dimension_numbers = #tpu.dot_dimension_numbers<[1], [0], [0], [1], [0, 0, 1, 1], [], []>} : vector<8x16xf32>, vector<16x128xf32>, vector<8x128xf32> -> vector<8x128xf32>
    %582 = vector.broadcast %14 : vector<1x128xf32> to vector<8x128xf32>
    %583 = arith.mulf %553, %582 : vector<8x128xf32>
    %cst_219 = arith.constant dense<0.000000e+00> : vector<8x16xf32>
    %584 = tpu.matmul %583, %561, %cst_219 {dimension_numbers = #tpu.dot_dimension_numbers<[1], [1], [0], [0], [0, 0, 1, 0], [], []>} : vector<8x128xf32>, vector<16x128xf32>, vector<8x16xf32> -> vector<8x16xf32>
    %cst_220 = arith.constant dense<0xFF800000> : vector<8xf32>
    %585 = vector.multi_reduction <maximumf>, %584, %cst_220 [1] : vector<8x16xf32> to vector<8xf32>
    %586 = vector.shape_cast %585 : vector<8xf32> to vector<8x1xf32>
    %587 = vector.broadcast %586 : vector<8x1xf32> to vector<8x16xf32>
    %588 = arith.subf %584, %587 : vector<8x16xf32>
    %589 = math.exp %588 : vector<8x16xf32>
    %cst_221 = arith.constant dense<0.000000e+00> : vector<8xf32>
    %590 = vector.multi_reduction <add>, %589, %cst_221 [1] : vector<8x16xf32> to vector<8xf32>
    %591 = vector.shape_cast %590 : vector<8xf32> to vector<8x1xf32>
    %592 = tpu.reciprocal %591 {approx = true} : vector<8x1xf32> -> vector<8x1xf32>
    %593 = vector.broadcast %592 : vector<8x1xf32> to vector<8x16xf32>
    %594 = arith.mulf %589, %593 : vector<8x16xf32>
    %595 = vector.broadcast %14 : vector<1x128xf32> to vector<16x128xf32>
    %596 = arith.mulf %562, %595 : vector<16x128xf32>
    %cst_222 = arith.constant dense<0.000000e+00> : vector<8x128xf32>
    %597 = tpu.matmul %594, %596, %cst_222 {dimension_numbers = #tpu.dot_dimension_numbers<[1], [0], [0], [1], [0, 0, 1, 1], [], []>} : vector<8x16xf32>, vector<16x128xf32>, vector<8x128xf32> -> vector<8x128xf32>
    %598 = arith.addf %581, %597 : vector<8x128xf32>
    %cst_223 = arith.constant dense<0.000000e+00> : vector<8x128xf32>
    %599 = tpu.matmul %598, %564, %cst_223 {dimension_numbers = #tpu.dot_dimension_numbers<[1], [0], [0], [1], [0, 0, 1, 1], [], []>} : vector<8x128xf32>, vector<128x128xf32>, vector<8x128xf32> -> vector<8x128xf32>
    %600 = vector.broadcast %565 : vector<1x128xf32> to vector<8x128xf32>
    %601 = arith.addf %599, %600 : vector<8x128xf32>
    %602 = vector.extract_strided_slice %469 {offsets = [5, 0], sizes = [1, 128], strides = [1, 1]} : vector<16x128xf32> to vector<1x128xf32>
    %603 = vector.extract_strided_slice %469 {offsets = [6, 0], sizes = [1, 128], strides = [1, 1]} : vector<16x128xf32> to vector<1x128xf32>
    %604 = arith.addf %547, %601 : vector<8x128xf32>
    %cst_224 = arith.constant dense<0.000000e+00> : vector<8xf32>
    %605 = vector.multi_reduction <add>, %604, %cst_224 [1] : vector<8x128xf32> to vector<8xf32>
    %606 = vector.shape_cast %605 : vector<8xf32> to vector<8x1xf32>
    %cst_225 = arith.constant 1.562500e-02 : f32
    %607 = vector.broadcast %cst_225 : f32 to vector<8x1xf32>
    %608 = arith.mulf %606, %607 : vector<8x1xf32>
    %609 = arith.mulf %604, %604 : vector<8x128xf32>
    %cst_226 = arith.constant dense<0.000000e+00> : vector<8xf32>
    %610 = vector.multi_reduction <add>, %609, %cst_226 [1] : vector<8x128xf32> to vector<8xf32>
    %611 = vector.shape_cast %610 : vector<8xf32> to vector<8x1xf32>
    %cst_227 = arith.constant 1.562500e-02 : f32
    %612 = vector.broadcast %cst_227 : f32 to vector<8x1xf32>
    %613 = arith.mulf %611, %612 : vector<8x1xf32>
    %614 = arith.mulf %608, %608 : vector<8x1xf32>
    %615 = arith.subf %613, %614 : vector<8x1xf32>
    %cst_228 = arith.constant 0.000000e+00 : f32
    %616 = vector.broadcast %cst_228 : f32 to vector<8x1xf32>
    %617 = arith.maximumf %615, %616 : vector<8x1xf32>
    %618 = vector.broadcast %608 : vector<8x1xf32> to vector<8x128xf32>
    %619 = arith.subf %604, %618 : vector<8x128xf32>
    %cst_229 = arith.constant 9.99999974E-6 : f32
    %620 = vector.broadcast %cst_229 : f32 to vector<8x1xf32>
    %621 = arith.addf %617, %620 : vector<8x1xf32>
    %622 = math.rsqrt %621 : vector<8x1xf32>
    %623 = vector.broadcast %622 : vector<8x1xf32> to vector<8x128xf32>
    %624 = arith.mulf %619, %623 : vector<8x128xf32>
    %625 = vector.broadcast %602 : vector<1x128xf32> to vector<8x128xf32>
    %626 = arith.mulf %624, %625 : vector<8x128xf32>
    %627 = vector.broadcast %603 : vector<1x128xf32> to vector<8x128xf32>
    %628 = arith.addf %626, %627 : vector<8x128xf32>
    %c1_230 = arith.constant 1 : index
    %c0_231 = arith.constant 0 : index
    %c0_232 = arith.constant 0 : index
    %629 = vector.load %arg17[%c1_230, %c0_231, %c0_232] : memref<2x128x256xf32, #tpu.memory_space<vmem>>, vector<1x128x256xf32>
    %630 = vector.shape_cast %629 : vector<1x128x256xf32> to vector<128x256xf32>
    %cst_233 = arith.constant dense<0.000000e+00> : vector<8x256xf32>
    %631 = tpu.matmul %628, %630, %cst_233 {dimension_numbers = #tpu.dot_dimension_numbers<[1], [0], [0], [1], [0, 0, 1, 1], [], []>} : vector<8x128xf32>, vector<128x256xf32>, vector<8x256xf32> -> vector<8x256xf32>
    %c1_234 = arith.constant 1 : index
    %c0_235 = arith.constant 0 : index
    %c0_236 = arith.constant 0 : index
    %632 = vector.load %arg18[%c1_234, %c0_235, %c0_236] : memref<2x1x256xf32, #tpu.memory_space<vmem>>, vector<1x1x256xf32>
    %633 = vector.shape_cast %632 : vector<1x1x256xf32> to vector<1x256xf32>
    %634 = vector.broadcast %633 : vector<1x256xf32> to vector<8x256xf32>
    %635 = arith.addf %631, %634 : vector<8x256xf32>
    %cst_237 = arith.constant 0.000000e+00 : f32
    %636 = vector.broadcast %cst_237 : f32 to vector<8x256xf32>
    %637 = arith.maximumf %635, %636 : vector<8x256xf32>
    %c1_238 = arith.constant 1 : index
    %c0_239 = arith.constant 0 : index
    %c0_240 = arith.constant 0 : index
    %638 = vector.load %arg19[%c1_238, %c0_239, %c0_240] : memref<2x256x128xf32, #tpu.memory_space<vmem>>, vector<1x256x128xf32>
    %639 = vector.shape_cast %638 : vector<1x256x128xf32> to vector<256x128xf32>
    %cst_241 = arith.constant dense<0.000000e+00> : vector<8x128xf32>
    %640 = tpu.matmul %637, %639, %cst_241 {dimension_numbers = #tpu.dot_dimension_numbers<[1], [0], [0], [1], [0, 0, 1, 1], [], []>} : vector<8x256xf32>, vector<256x128xf32>, vector<8x128xf32> -> vector<8x128xf32>
    %641 = vector.extract_strided_slice %469 {offsets = [7, 0], sizes = [1, 128], strides = [1, 1]} : vector<16x128xf32> to vector<1x128xf32>
    %642 = vector.broadcast %641 : vector<1x128xf32> to vector<8x128xf32>
    %643 = arith.addf %640, %642 : vector<8x128xf32>
    %644 = vector.extract_strided_slice %469 {offsets = [8, 0], sizes = [1, 128], strides = [1, 1]} : vector<16x128xf32> to vector<1x128xf32>
    %645 = vector.extract_strided_slice %469 {offsets = [9, 0], sizes = [1, 128], strides = [1, 1]} : vector<16x128xf32> to vector<1x128xf32>
    %646 = arith.addf %628, %643 : vector<8x128xf32>
    %cst_242 = arith.constant dense<0.000000e+00> : vector<8xf32>
    %647 = vector.multi_reduction <add>, %646, %cst_242 [1] : vector<8x128xf32> to vector<8xf32>
    %648 = vector.shape_cast %647 : vector<8xf32> to vector<8x1xf32>
    %cst_243 = arith.constant 1.562500e-02 : f32
    %649 = vector.broadcast %cst_243 : f32 to vector<8x1xf32>
    %650 = arith.mulf %648, %649 : vector<8x1xf32>
    %651 = arith.mulf %646, %646 : vector<8x128xf32>
    %cst_244 = arith.constant dense<0.000000e+00> : vector<8xf32>
    %652 = vector.multi_reduction <add>, %651, %cst_244 [1] : vector<8x128xf32> to vector<8xf32>
    %653 = vector.shape_cast %652 : vector<8xf32> to vector<8x1xf32>
    %cst_245 = arith.constant 1.562500e-02 : f32
    %654 = vector.broadcast %cst_245 : f32 to vector<8x1xf32>
    %655 = arith.mulf %653, %654 : vector<8x1xf32>
    %656 = arith.mulf %650, %650 : vector<8x1xf32>
    %657 = arith.subf %655, %656 : vector<8x1xf32>
    %cst_246 = arith.constant 0.000000e+00 : f32
    %658 = vector.broadcast %cst_246 : f32 to vector<8x1xf32>
    %659 = arith.maximumf %657, %658 : vector<8x1xf32>
    %660 = vector.broadcast %650 : vector<8x1xf32> to vector<8x128xf32>
    %661 = arith.subf %646, %660 : vector<8x128xf32>
    %cst_247 = arith.constant 9.99999974E-6 : f32
    %662 = vector.broadcast %cst_247 : f32 to vector<8x1xf32>
    %663 = arith.addf %659, %662 : vector<8x1xf32>
    %664 = math.rsqrt %663 : vector<8x1xf32>
    %665 = vector.broadcast %664 : vector<8x1xf32> to vector<8x128xf32>
    %666 = arith.mulf %661, %665 : vector<8x128xf32>
    %667 = vector.broadcast %644 : vector<1x128xf32> to vector<8x128xf32>
    %668 = arith.mulf %666, %667 : vector<8x128xf32>
    %669 = vector.broadcast %645 : vector<1x128xf32> to vector<8x128xf32>
    %670 = arith.addf %668, %669 : vector<8x128xf32>
    %c0_248 = arith.constant 0 : index
    %c0_249 = arith.constant 0 : index
    %671 = vector.load %arg21[%c0_248, %c0_249] : memref<128x128xf32, #tpu.memory_space<vmem>>, vector<128x128xf32>
    %cst_250 = arith.constant dense<0.000000e+00> : vector<8x128xf32>
    %672 = tpu.matmul %670, %671, %cst_250 {dimension_numbers = #tpu.dot_dimension_numbers<[1], [0], [0], [1], [0, 0, 1, 1], [], []>} : vector<8x128xf32>, vector<128x128xf32>, vector<8x128xf32> -> vector<8x128xf32>
    %c0_251 = arith.constant 0 : index
    %c0_252 = arith.constant 0 : index
    %c0_253 = arith.constant 0 : index
    %673 = vector.load %arg22[%c0_251, %c0_252, %c0_253] : memref<1x8x128xf32, #tpu.memory_space<vmem>>, vector<1x8x128xf32>
    %674 = vector.shape_cast %673 : vector<1x8x128xf32> to vector<8x128xf32>
    %675 = vector.shape_cast %672 : vector<8x128xf32> to vector<1x8x128xf32>
    tpu.vector_store %arg22[%c0_251, %c0_252, %c0_253], %675 {strides = array<i32>} : memref<1x8x128xf32, #tpu.memory_space<vmem>>, vector<1x8x128xf32>,
    return
  }
  func.func @transform_0(%arg0: i32) -> (i32, i32, i32) {
    %c0_i32 = arith.constant 0 : i32
    %c0_i32_0 = arith.constant 0 : i32
    %c0_i32_1 = arith.constant 0 : i32
    return %arg0, %c0_i32, %c0_i32_0 : i32, i32, i32
  }
  func.func @transform_1(%arg0: i32) -> (i32, i32, i32) {
    %c0_i32 = arith.constant 0 : i32
    %c0_i32_0 = arith.constant 0 : i32
    %c0_i32_1 = arith.constant 0 : i32
    return %arg0, %c0_i32, %c0_i32_0 : i32, i32, i32
  }
  func.func @transform_2(%arg0: i32) -> (i32, i32, i32) {
    %c0_i32 = arith.constant 0 : i32
    %c0_i32_0 = arith.constant 0 : i32
    %c0_i32_1 = arith.constant 0 : i32
    %c0_i32_2 = arith.constant 0 : i32
    return %c0_i32, %c0_i32_0, %c0_i32_1 : i32, i32, i32
  }
  func.func @transform_3(%arg0: i32) -> (i32, i32, i32) {
    %c0_i32 = arith.constant 0 : i32
    %c0_i32_0 = arith.constant 0 : i32
    %c0_i32_1 = arith.constant 0 : i32
    %c0_i32_2 = arith.constant 0 : i32
    return %c0_i32, %c0_i32_0, %c0_i32_1 : i32, i32, i32
  }
  func.func @transform_4(%arg0: i32) -> (i32, i32, i32) {
    %c0_i32 = arith.constant 0 : i32
    %c0_i32_0 = arith.constant 0 : i32
    %c0_i32_1 = arith.constant 0 : i32
    %c0_i32_2 = arith.constant 0 : i32
    return %c0_i32, %c0_i32_0, %c0_i32_1 : i32, i32, i32
  }
  func.func @transform_5(%arg0: i32) -> (i32, i32, i32) {
    %c0_i32 = arith.constant 0 : i32
    %c0_i32_0 = arith.constant 0 : i32
    %c0_i32_1 = arith.constant 0 : i32
    %c0_i32_2 = arith.constant 0 : i32
    return %c0_i32, %c0_i32_0, %c0_i32_1 : i32, i32, i32
  }
  func.func @transform_6(%arg0: i32) -> (i32, i32, i32) {
    %c0_i32 = arith.constant 0 : i32
    %c0_i32_0 = arith.constant 0 : i32
    %c0_i32_1 = arith.constant 0 : i32
    %c0_i32_2 = arith.constant 0 : i32
    return %c0_i32, %c0_i32_0, %c0_i32_1 : i32, i32, i32
  }
  func.func @transform_7(%arg0: i32) -> (i32, i32, i32) {
    %c0_i32 = arith.constant 0 : i32
    %c0_i32_0 = arith.constant 0 : i32
    %c0_i32_1 = arith.constant 0 : i32
    %c0_i32_2 = arith.constant 0 : i32
    return %c0_i32, %c0_i32_0, %c0_i32_1 : i32, i32, i32
  }
  func.func @transform_8(%arg0: i32) -> (i32, i32, i32) {
    %c0_i32 = arith.constant 0 : i32
    %c0_i32_0 = arith.constant 0 : i32
    %c0_i32_1 = arith.constant 0 : i32
    %c0_i32_2 = arith.constant 0 : i32
    return %c0_i32, %c0_i32_0, %c0_i32_1 : i32, i32, i32
  }
  func.func @transform_9(%arg0: i32) -> (i32, i32, i32) {
    %c0_i32 = arith.constant 0 : i32
    %c0_i32_0 = arith.constant 0 : i32
    %c0_i32_1 = arith.constant 0 : i32
    %c0_i32_2 = arith.constant 0 : i32
    return %c0_i32, %c0_i32_0, %c0_i32_1 : i32, i32, i32
  }
  func.func @transform_10(%arg0: i32) -> (i32, i32, i32) {
    %c0_i32 = arith.constant 0 : i32
    %c0_i32_0 = arith.constant 0 : i32
    %c0_i32_1 = arith.constant 0 : i32
    %c0_i32_2 = arith.constant 0 : i32
    return %c0_i32, %c0_i32_0, %c0_i32_1 : i32, i32, i32
  }
  func.func @transform_11(%arg0: i32) -> (i32, i32, i32) {
    %c0_i32 = arith.constant 0 : i32
    %c0_i32_0 = arith.constant 0 : i32
    %c0_i32_1 = arith.constant 0 : i32
    %c0_i32_2 = arith.constant 0 : i32
    return %c0_i32, %c0_i32_0, %c0_i32_1 : i32, i32, i32
  }
  func.func @transform_12(%arg0: i32) -> (i32, i32, i32) {
    %c0_i32 = arith.constant 0 : i32
    %c0_i32_0 = arith.constant 0 : i32
    %c0_i32_1 = arith.constant 0 : i32
    %c0_i32_2 = arith.constant 0 : i32
    return %c0_i32, %c0_i32_0, %c0_i32_1 : i32, i32, i32
  }
  func.func @transform_13(%arg0: i32) -> (i32, i32, i32) {
    %c0_i32 = arith.constant 0 : i32
    %c0_i32_0 = arith.constant 0 : i32
    %c0_i32_1 = arith.constant 0 : i32
    %c0_i32_2 = arith.constant 0 : i32
    return %c0_i32, %c0_i32_0, %c0_i32_1 : i32, i32, i32
  }
  func.func @transform_14(%arg0: i32) -> (i32, i32, i32) {
    %c0_i32 = arith.constant 0 : i32
    %c0_i32_0 = arith.constant 0 : i32
    %c0_i32_1 = arith.constant 0 : i32
    %c0_i32_2 = arith.constant 0 : i32
    return %c0_i32, %c0_i32_0, %c0_i32_1 : i32, i32, i32
  }
  func.func @transform_15(%arg0: i32) -> (i32, i32, i32) {
    %c0_i32 = arith.constant 0 : i32
    %c0_i32_0 = arith.constant 0 : i32
    %c0_i32_1 = arith.constant 0 : i32
    %c0_i32_2 = arith.constant 0 : i32
    return %c0_i32, %c0_i32_0, %c0_i32_1 : i32, i32, i32
  }
  func.func @transform_16(%arg0: i32) -> (i32, i32, i32) {
    %c0_i32 = arith.constant 0 : i32
    %c0_i32_0 = arith.constant 0 : i32
    %c0_i32_1 = arith.constant 0 : i32
    %c0_i32_2 = arith.constant 0 : i32
    return %c0_i32, %c0_i32_0, %c0_i32_1 : i32, i32, i32
  }
  func.func @transform_17(%arg0: i32) -> (i32, i32, i32) {
    %c0_i32 = arith.constant 0 : i32
    %c0_i32_0 = arith.constant 0 : i32
    %c0_i32_1 = arith.constant 0 : i32
    %c0_i32_2 = arith.constant 0 : i32
    return %c0_i32, %c0_i32_0, %c0_i32_1 : i32, i32, i32
  }
  func.func @transform_18(%arg0: i32) -> (i32, i32, i32) {
    %c0_i32 = arith.constant 0 : i32
    %c0_i32_0 = arith.constant 0 : i32
    %c0_i32_1 = arith.constant 0 : i32
    %c0_i32_2 = arith.constant 0 : i32
    return %c0_i32, %c0_i32_0, %c0_i32_1 : i32, i32, i32
  }
  func.func @transform_19(%arg0: i32) -> (i32, i32, i32) {
    %c0_i32 = arith.constant 0 : i32
    %c0_i32_0 = arith.constant 0 : i32
    %c0_i32_1 = arith.constant 0 : i32
    %c0_i32_2 = arith.constant 0 : i32
    return %c0_i32, %c0_i32_0, %c0_i32_1 : i32, i32, i32
  }
  func.func @transform_20(%arg0: i32) -> (i32, i32) {
    %c0_i32 = arith.constant 0 : i32
    %c0_i32_0 = arith.constant 0 : i32
    %c0_i32_1 = arith.constant 0 : i32
    return %c0_i32, %c0_i32_0 : i32, i32
  }
  func.func @transform_21(%arg0: i32) -> (i32, i32, i32) {
    %c0_i32 = arith.constant 0 : i32
    %c0_i32_0 = arith.constant 0 : i32
    %c0_i32_1 = arith.constant 0 : i32
    return %arg0, %c0_i32, %c0_i32_0 : i32, i32, i32
  }
}

</mosaic_0001>

<bundles_post_ra>
// kernel: _lambda_.1
= control target key start
LH: loop header
LB: loop body
LE: loop exit
PB: predicated region body
PF: predicated region fallthrough
CT: control target
= control target key end

     0   :  { %s10596_s0 = inlined_call_operand.vmem [shape: f32[2,16,128], index: 0, kind: input, shape index: {}]   ;;  %s10597_s1 = inlined_call_operand.vmem [shape: f32[2,8,128], index: 1, kind: input, shape index: {}]   ;;  %s10598_s2 = inlined_call_operand.hbm [shape: f32[2,128,384], index: 2, kind: input, shape index: {}]   ;;  %s10599_s3 = inlined_call_operand.hbm [shape: f32[2,1,384], index: 3, kind: input, shape index: {}]   ;;  %s10600_s4 = inlined_call_operand.hbm [shape: f32[2,128,128], index: 4, kind: input, shape index: {}]   ;;  %s10601_s5 = inlined_call_operand.vmem [shape: f32[2,128,256], index: 5, kind: input, shape index: {}]   ;;  %s10602_s6 = inlined_call_operand.hbm [shape: f32[2,1,256], index: 6, kind: input, shape index: {}]   ;;  %s10603_s7 = inlined_call_operand.hbm [shape: f32[2,256,128], index: 7, kind: input, shape index: {}]   ;;  %s10604_s8 = inlined_call_operand.hbm [shape: f32[2,8,128], index: 8, kind: input, shape index: {}]   ;;  %s10605_s9 = inlined_call_operand.hbm [shape: f32[2,128,384], index: 9, kind: input, shape index: {}]   ;;  %s10606_s10 = inlined_call_operand.hbm [shape: f32[2,1,384], index: 10, kind: input, shape index: {}]   ;;  %s10607_s11 = inlined_call_operand.hbm [shape: f32[2,128,128], index: 11, kind: input, shape index: {}]   ;;  %s10608_s12 = inlined_call_operand.hbm [shape: f32[2,128,128], index: 12, kind: input, shape index: {}]   ;;  %s10609_s13 = inlined_call_operand.hbm [shape: f32[2,128,256], index: 13, kind: input, shape index: {}]   ;;  %s10610_s14 = inlined_call_operand.hbm [shape: f32[2,1,256], index: 14, kind: input, shape index: {}]   ;;  %s10611_s15 = inlined_call_operand.hbm [shape: f32[2,128,128], index: 15, kind: input, shape index: {}]   ;;  %s10612_s16 = inlined_call_operand.hbm [shape: f32[2,128,256], index: 16, kind: input, shape index: {}]   ;;  %s10613_s17 = inlined_call_operand.hbm [shape: f32[2,1,256], index: 17, kind: input, shape index: {}]   ;;  %s10614_s18 = inlined_call_operand.hbm [shape: f32[2,256,128], index: 18, kind: input, shape index: {}]   ;;  %s10615_s19 = inlined_call_operand.hbm [shape: f32[2,16,128], index: 19, kind: input, shape index: {}]   ;;  %s10616_s20 = inlined_call_operand.hbm [shape: f32[128,128], index: 20, kind: input, shape index: {}]   ;;  %s10617_s21 = inlined_call_operand.vmem [shape: f32[2,8,128], index: 21, kind: output, shape index: {}]  }
   0x1   :  { %10643 = sst [smem:[#allocation43_spill]] %s10596_s0 }
   0x2   :  { %10644 = sst [smem:[#allocation44_spill]] %s10597_s1 }
   0x3   :  { %10645 = sst [smem:[#allocation45_spill]] %s10598_s2 }
   0x4   :  { %10646 = sst [smem:[#allocation46_spill]] %s10599_s3 }
   0x5   :  { %10647 = sst [smem:[#allocation47_spill]] %s10600_s4 }
   0x6   :  { %10648 = sst [smem:[#allocation48_spill]] %s10601_s5 }
   0x7   :  { %10649 = sst [smem:[#allocation49_spill]] %s10602_s6 }
   0x8   :  { %10650 = sst [smem:[#allocation50_spill]] %s10604_s8 }
   0x9   :  { %10651 = sst [smem:[#allocation51_spill]] %s10606_s10 }
   0xa   :  { %10652 = sst [smem:[#allocation52_spill]] %s10608_s12 }
   0xb   :  { %10653 = sst [smem:[#allocation53_spill]] %s10615_s19 }
   0xc   :  { %10654 = sst [smem:[#allocation54_spill]] %s10616_s20 }
   0xd   :  { %10655 = sst [smem:[#allocation55_spill]] %s10617_s21 }
   0xe   :  { %26 = vsyncpa [#allocation3], 0 }
   0xf   :  { %27 = vsyncpa [#allocation5], 0 }
  0x10   :  { %28 = vsyncpa [#allocation8], 0 }
  0x11   :  { %29 = vsyncpa [#allocation11], 0 }
  0x12   :  { %30 = vsyncpa [#allocation14], 0 }
  0x13   :  { %31 = vsyncpa [#allocation17], 0 }
  0x14   :  { %32 = vsyncpa [#allocation20], 0 }
  0x15   :  { %33 = vsyncpa [#allocation23], 0 }
  0x16   :  { %34 = vsyncpa [#allocation26], 0 }
  0x17   :  { %35 = vsyncpa [#allocation29], 0  ;;  %s9334_s2 = smov 0  }
  0x18 LB: > { %10656 = sst [smem:[#allocation40_spill]] %s9191_s2  ;;  %s9193_s25 = smov [#allocation4]   ;;  %s9191_s2 = sphi %s9334_s2, %s41_s2  }
  0x19   : > { %s548_s26 = sshll.u32 %s9193_s25, 4  ;;  %s9340_s27 = sadd.s32 4294967295, %s9191_s2   ;;  %s9345_s26 = int_to_ptr.vmem [resolvable:$true] %s548_s26 }
  0x1a   : > { %10657 = sst [smem:[#allocation41_spill]] %s9340_s27  ;;  %p6341_p0 = scmp.ge.s32.totalorder %s9191_s2, 1 }
  0x1b   : > { %p523_p1 = scmp.lt.s32.totalorder %s9191_s2, 3  ;;  %p10631_p2 = scmp.eq.s32.totalorder %s9340_s27, 0 }
  0x1c   : > { %s9194_s28 = smov [#allocation7]   ;;  %s10661_s5 = sld [smem:[#allocation46_spill]] }
  0x1d   : > { %p9347_p3 = pnand %p6341_p0, %p523_p1  ;;  %s577_s29 = sshll.u32 %s9194_s28, 4  ;;  %s9353_s29 = int_to_ptr.vmem [resolvable:$true] %s577_s29 }
  0x1f   : > { %s10658_s3 = scalar_select %p9347_p3, 1, 0 }
  0x20   : > { %p8419_p4 = pneg %p9347_p3 }
  0x21   : > { %10659 = sst [smem:[#allocation42_spill]] %s10658_s3 }
  0x22   : > { %p9357_p5 = pnand %p10631_p2, %p8419_p4  ;;  %s8641_s22 = scalar_lea.hbm %s10661_s5, 96 }
  0x23   : > { %p8642_p6 = scmp.ne.s32.totalorder %s10661_s5, %s8641_s22  ;;  %p8648_p10 = scmp.lt.u32.totalorder %s8641_s22, %s10661_s5 }
  0x24   : > { %p9369_p7 = pneg %p9357_p5 }
  0x26   : > { %p8644_p8 = pnand %p9369_p7, %p8642_p6 }
  0x28   : > { %p8645_p9 = pneg %p8644_p8 }
  0x2a   : > { %p8650_p11 = pnand %p8648_p10, %p8645_p9 }
  0x2c   : > { %8653 = shalt.err (!%p8650_p11)
}
  0x2d   : > { %s8654_s4 = scalar_lea.vmem %s9345_s26, 96  ;;  %p8662_p1 = scmp.lt.s32.totalorder %s9345_s26, %s9345_s26 }
  0x2e   : > { %p8655_p12 = scmp.ne.s32.totalorder %s9345_s26, %s8654_s4  ;;  %p8663_p4 = scmp.lt.s32.totalorder %s8654_s4, %s8654_s4 }
  0x30   : > { %p8657_p13 = pnand %p8655_p12, %p9369_p7  ;;  %p8664_p6 = por %p8663_p4, %p8662_p1 }
  0x32   : > { %p8658_p0 = pneg %p8657_p13 }
  0x34   : > { %p8665_p8 = pnand %p8664_p6, %p8658_p0 }
  0x36   : > { %8668 = shalt.err (!%p8665_p8)
}
  0x37   : > { %s10626_s30 = smov 48   ;;  %s10627_s22 = smov 3  }
  0x38   : > { %8425 = dma.hbm_to_vmem [thread:$0]  (!%p9357_p5), %s10661_s5, 96, %s9345_s26, [#allocation5], %s10626_s30, %s10626_s30, %s10627_s22  }
  0x39   : > { %s10663_s6 = sld [smem:[#allocation49_spill]] }
  0x3f   : > { %s8669_s4 = scalar_lea.hbm %s10663_s6, 64 }
  0x40   : > { %p8670_p9 = scmp.ne.s32.totalorder %s10663_s6, %s8669_s4  ;;  %p8676_p12 = scmp.lt.u32.totalorder %s8669_s4, %s10663_s6 }
  0x42   : > { %p8672_p10 = pnand %p8670_p9, %p9369_p7 }
  0x44   : > { %p8673_p11 = pneg %p8672_p10 }
  0x46   : > { %p8678_p13 = pnand %p8676_p12, %p8673_p11 }
  0x48   : > { %8681 = shalt.err (!%p8678_p13)
}
  0x49   : > { %s8682_s26 = scalar_lea.vmem %s9353_s29, 64  ;;  %p8690_p6 = scmp.lt.s32.totalorder %s9353_s29, %s9353_s29 }
  0x4a   : > { %p8683_p0 = scmp.ne.s32.totalorder %s9353_s29, %s8682_s26  ;;  %p8691_p8 = scmp.lt.s32.totalorder %s8682_s26, %s8682_s26 }
  0x4c   : > { %p8685_p1 = pnand %p8683_p0, %p9369_p7  ;;  %p8692_p9 = por %p8691_p8, %p8690_p6 }
  0x4e   : > { %p8686_p4 = pneg %p8685_p1 }
  0x50   : > { %p8693_p10 = pnand %p8692_p9, %p8686_p4 }
  0x52   : > { %8696 = shalt.err (!%p8693_p10)
}
  0x53   : > { %s10633_s21 = smov 32   ;;  %s10635_s2 = smov 2  }
  0x54   : > { %8431 = dma.hbm_to_vmem [thread:$0]  (!%p9357_p5), %s10663_s6, 64, %s9353_s29, [#allocation8], %s10633_s21, %s10633_s21, %s10635_s2  }
  0x55   : > { %s9199_s23 = smov [#allocation10]   ;;  %s9200_s25 = smov [#allocation13]  }
  0x56   : > { %s603_s1 = sshll.u32 %s9199_s23, 4  ;;  %s629_s28 = sshll.u32 %s9200_s25, 4  ;;  %s604_s1 = int_to_ptr.vmem [resolvable:$true] %s603_s1  ;;  %s630_s28 = int_to_ptr.vmem [resolvable:$true] %s629_s28 }
  0x57   : > { %s10664_s8 = sld [smem:[#allocation50_spill]] }
  0x5d   : > { %s8697_s30 = scalar_lea.hbm %s10664_s8, 256 }
  0x5e   : > { %p8698_p11 = scmp.ne.s32.totalorder %s10664_s8, %s8697_s30  ;;  %p8704_p0 = scmp.lt.u32.totalorder %s8697_s30, %s10664_s8 }
  0x60   : > { %p8700_p12 = pnand %p8698_p11, %p9369_p7 }
  0x62   : > { %p8701_p13 = pneg %p8700_p12 }
  0x64   : > { %p8706_p1 = pnand %p8704_p0, %p8701_p13 }
  0x66   : > { %8709 = shalt.err (!%p8706_p1)
}
  0x67   : > { %s8710_s29 = scalar_lea.vmem %s604_s1, 256  ;;  %p8718_p9 = scmp.lt.s32.totalorder %s604_s1, %s604_s1 }
  0x68   : > { %p8711_p4 = scmp.ne.s32.totalorder %s604_s1, %s8710_s29  ;;  %p8719_p10 = scmp.lt.s32.totalorder %s8710_s29, %s8710_s29 }
  0x6a   : > { %p8713_p6 = pnand %p8711_p4, %p9369_p7  ;;  %p8720_p2 = por %p8719_p10, %p8718_p9 }
  0x6c   : > { %p8714_p8 = pneg %p8713_p6 }
  0x6e   : > { %p8721_p3 = pnand %p8720_p2, %p8714_p8 }
  0x70   : > { %8724 = shalt.err (!%p8721_p3)
}
  0x71   : > { %s10637_s5 = smov 128   ;;  %s10639_s22 = smov 8  }
  0x72   : > { %8437 = dma.hbm_to_vmem [thread:$0]  (!%p9357_p5), %s10664_s8, 256, %s604_s1, [#allocation11], %s10637_s5, %s10637_s5, %s10639_s22  }
  0x73   : > { %s10665_s10 = sld [smem:[#allocation51_spill]] }
  0x79   : > { %s8725_s3 = scalar_lea.hbm %s10665_s10, 96 }
  0x7a   : > { %p8726_p2 = scmp.ne.s32.totalorder %s10665_s10, %s8725_s3  ;;  %p8732_p12 = scmp.lt.u32.totalorder %s8725_s3, %s10665_s10 }
  0x7c   : > { %p8728_p3 = pnand %p8726_p2, %p9369_p7 }
  0x7e   : > { %p8729_p11 = pneg %p8728_p3 }
  0x80   : > { %p8734_p13 = pnand %p8732_p12, %p8729_p11 }
  0x82   : > { %8737 = shalt.err (!%p8734_p13)
}
  0x83   : > { %s8738_s29 = scalar_lea.vmem %s630_s28, 96  ;;  %p8746_p6 = scmp.lt.s32.totalorder %s630_s28, %s630_s28 }
  0x84   : > { %p8739_p0 = scmp.ne.s32.totalorder %s630_s28, %s8738_s29  ;;  %p8747_p8 = scmp.lt.s32.totalorder %s8738_s29, %s8738_s29 }
  0x86   : > { %p8741_p1 = pnand %p8739_p0, %p9369_p7  ;;  %p8748_p9 = por %p8747_p8, %p8746_p6 }
  0x88   : > { %p8742_p4 = pneg %p8741_p1 }
  0x8a   : > { %p8749_p10 = pnand %p8748_p9, %p8742_p4 }
  0x8c   : > { %8752 = shalt.err (!%p8749_p10)
}
  0x8d   : > { %s10666_s1 = smov 3   ;;  %s10667_s19 = smov 48  }
  0x8e   : > { %8443 = dma.hbm_to_vmem [thread:$0]  (!%p9357_p5), %s10665_s10, 96, %s630_s28, [#allocation14], %s10667_s19, %s10667_s19, %s10666_s1  }
  0x8f   : > { %s9203_s27 = smov [#allocation16]   ;;  %s9204_s23 = smov [#allocation19]  }
  0x90   : > { %s655_s3 = sshll.u32 %s9203_s27, 4  ;;  %s681_s25 = sshll.u32 %s9204_s23, 4  ;;  %s656_s3 = int_to_ptr.vmem [resolvable:$true] %s655_s3  ;;  %s682_s25 = int_to_ptr.vmem [resolvable:$true] %s681_s25 }
  0x91   : > { %s10668_s12 = sld [smem:[#allocation52_spill]] }
  0x97   : > { %s8753_s29 = scalar_lea.hbm %s10668_s12, 4096 }
  0x98   : > { %p8754_p2 = scmp.ne.s32.totalorder %s10668_s12, %s8753_s29  ;;  %p8760_p12 = scmp.lt.u32.totalorder %s8753_s29, %s10668_s12 }
  0x9a   : > { %p8756_p3 = pnand %p8754_p2, %p9369_p7 }
  0x9c   : > { %p8757_p11 = pneg %p8756_p3 }
  0x9e   : > { %p8762_p13 = pnand %p8760_p12, %p8757_p11 }
  0xa0   : > { %8765 = shalt.err (!%p8762_p13)
}
  0xa1   : > { %s8766_s28 = scalar_lea.vmem %s656_s3, 4096  ;;  %p8774_p6 = scmp.lt.s32.totalorder %s656_s3, %s656_s3 }
  0xa2   : > { %p8767_p0 = scmp.ne.s32.totalorder %s656_s3, %s8766_s28  ;;  %p8775_p8 = scmp.lt.s32.totalorder %s8766_s28, %s8766_s28 }
  0xa4   : > { %p8769_p1 = pnand %p8767_p0, %p9369_p7  ;;  %p8776_p9 = por %p8775_p8, %p8774_p6 }
  0xa6   : > { %p8770_p4 = pneg %p8769_p1 }
  0xa8   : > { %p8777_p10 = pnand %p8776_p9, %p8770_p4 }
  0xaa   : > { %8780 = shalt.err (!%p8777_p10)
}
  0xab   : > { %s10669_s21 = smov 128   ;;  %s8781_s30 = scalar_lea.hbm %s10610_s14, 64 }
  0xac   : > { %8449 = dma.hbm_to_vmem [thread:$0]  (!%p9357_p5), %s10668_s12, 4096, %s656_s3, [#allocation17], %s10669_s21, %s10669_s21, %s10639_s22  }
  0xad   : > { %p8782_p2 = scmp.ne.s32.totalorder %s10610_s14, %s8781_s30  ;;  %p8788_p12 = scmp.lt.u32.totalorder %s8781_s30, %s10610_s14 }
  0xaf   : > { %p8784_p3 = pnand %p8782_p2, %p9369_p7 }
  0xb1   : > { %p8785_p11 = pneg %p8784_p3 }
  0xb3   : > { %p8790_p13 = pnand %p8788_p12, %p8785_p11 }
  0xb5   : > { %8793 = shalt.err (!%p8790_p13)
}
  0xb6   : > { %s8794_s29 = scalar_lea.vmem %s682_s25, 64  ;;  %p8802_p6 = scmp.lt.s32.totalorder %s682_s25, %s682_s25 }
  0xb7   : > { %p8795_p0 = scmp.ne.s32.totalorder %s682_s25, %s8794_s29  ;;  %p8803_p8 = scmp.lt.s32.totalorder %s8794_s29, %s8794_s29 }
  0xb9   : > { %p8797_p1 = pnand %p8795_p0, %p9369_p7  ;;  %p8804_p9 = por %p8803_p8, %p8802_p6 }
  0xbb   : > { %p8798_p4 = pneg %p8797_p1 }
  0xbd   : > { %p8805_p10 = pnand %p8804_p9, %p8798_p4 }
  0xbf   : > { %8808 = shalt.err (!%p8805_p10)
}
  0xc0   : > { %s10670_s3 = smov 2   ;;  %s10671_s20 = smov 32  }
  0xc1   : > { %8455 = dma.hbm_to_vmem [thread:$0]  (!%p9357_p5), %s10610_s14, 64, %s682_s25, [#allocation20], %s10671_s20, %s10671_s20, %s10670_s3  }
  0xc2   : > { %s9205_s5 = smov [#allocation22]   ;;  %s9206_s19 = smov [#allocation25]  }
  0xc3   : > { %s707_s1 = sshll.u32 %s9205_s5, 4  ;;  %s733_s30 = sshll.u32 %s9206_s19, 4  ;;  %s708_s1 = int_to_ptr.vmem [resolvable:$true] %s707_s1  ;;  %s734_s30 = int_to_ptr.vmem [resolvable:$true] %s733_s30 }
  0xc4   : > { %s8809_s4 = scalar_lea.hbm %s10612_s16, 8192 }
  0xc5   : > { %p8810_p2 = scmp.ne.s32.totalorder %s10612_s16, %s8809_s4  ;;  %p8816_p12 = scmp.lt.u32.totalorder %s8809_s4, %s10612_s16 }
  0xc7   : > { %p8812_p3 = pnand %p8810_p2, %p9369_p7 }
  0xc9   : > { %p8813_p11 = pneg %p8812_p3 }
  0xcb   : > { %p8818_p13 = pnand %p8816_p12, %p8813_p11 }
  0xcd   : > { %8821 = shalt.err (!%p8818_p13)
}
  0xce   : > { %s8822_s25 = scalar_lea.vmem %s708_s1, 8192  ;;  %p8830_p6 = scmp.lt.s32.totalorder %s708_s1, %s708_s1 }
  0xcf   : > { %p8823_p0 = scmp.ne.s32.totalorder %s708_s1, %s8822_s25  ;;  %p8831_p8 = scmp.lt.s32.totalorder %s8822_s25, %s8822_s25 }
  0xd1   : > { %p8825_p1 = pnand %p8823_p0, %p9369_p7  ;;  %p8832_p9 = por %p8831_p8, %p8830_p6 }
  0xd3   : > { %p8826_p4 = pneg %p8825_p1 }
  0xd5   : > { %p8833_p10 = pnand %p8832_p9, %p8826_p4 }
  0xd7   : > { %8836 = shalt.err (!%p8833_p10)
}
  0xd8   : > { %s10641_s2 = smov 256   ;;  %s10642_s5 = smov 16  }
  0xd9   : > { %8461 = dma.hbm_to_vmem [thread:$0]  (!%p9357_p5), %s10612_s16, 8192, %s708_s1, [#allocation23], %s10641_s2, %s10641_s2, %s10642_s5  }
  0xda   : > { %s8837_s4 = scalar_lea.hbm %s10614_s18, 8192 }
  0xdb   : > { %p8838_p2 = scmp.ne.s32.totalorder %s10614_s18, %s8837_s4  ;;  %p8844_p12 = scmp.lt.u32.totalorder %s8837_s4, %s10614_s18 }
  0xdd   : > { %p8840_p3 = pnand %p8838_p2, %p9369_p7 }
  0xdf   : > { %p8841_p11 = pneg %p8840_p3 }
  0xe1   : > { %p8846_p13 = pnand %p8844_p12, %p8841_p11 }
  0xe3   : > { %8849 = shalt.err (!%p8846_p13)
}
  0xe4   : > { %s8850_s22 = scalar_lea.vmem %s734_s30, 8192  ;;  %p8858_p6 = scmp.lt.s32.totalorder %s734_s30, %s734_s30 }
  0xe5   : > { %p8851_p0 = scmp.ne.s32.totalorder %s734_s30, %s8850_s22  ;;  %p8859_p8 = scmp.lt.s32.totalorder %s8850_s22, %s8850_s22 }
  0xe7   : > { %p8853_p1 = pnand %p8851_p0, %p9369_p7  ;;  %p8860_p9 = por %p8859_p8, %p8858_p6 }
  0xe9   : > { %p8854_p4 = pneg %p8853_p1 }
  0xeb   : > { %p8861_p10 = pnand %p8860_p9, %p8854_p4 }
  0xed   : > { %8864 = shalt.err (!%p8861_p10)
}
  0xee   : > { %s10672_s1 = smov 8   ;;  %s9209_s23 = smov [#allocation2]  }
  0xef   : > { %8467 = dma.hbm_to_vmem [thread:$0]  (!%p9357_p5), %s10614_s18, 8192, %s734_s30, [#allocation26], %s10669_s21, %s10669_s21, %s10672_s1  }
  0xf0   : > { %s535_s4 = sshll.u32 %s9209_s23, 4  ;;  %s10673_s28 = sld [smem:[#allocation45_spill]]  ;;  %s536_s4 = int_to_ptr.vmem [resolvable:$true] %s535_s4 }
  0xf6   : > { %s8865_s25 = scalar_lea.hbm %s10673_s28, 12288 }
  0xf7   : > { %p8866_p2 = scmp.ne.s32.totalorder %s10673_s28, %s8865_s25  ;;  %p8872_p12 = scmp.lt.u32.totalorder %s8865_s25, %s10673_s28 }
  0xf9   : > { %p8868_p3 = pnand %p8866_p2, %p9369_p7 }
  0xfb   : > { %p8869_p11 = pneg %p8868_p3 }
  0xfd   : > { %p8874_p13 = pnand %p8872_p12, %p8869_p11 }
  0xff   : > { %8877 = shalt.err (!%p8874_p13)
}
 0x100   : > { %s8878_s30 = scalar_lea.vmem %s536_s4, 12288  ;;  %p8886_p6 = scmp.lt.s32.totalorder %s536_s4, %s536_s4 }
 0x101   : > { %p8879_p0 = scmp.ne.s32.totalorder %s536_s4, %s8878_s30  ;;  %p8887_p8 = scmp.lt.s32.totalorder %s8878_s30, %s8878_s30 }
 0x103   : > { %p8881_p1 = pnand %p8879_p0, %p9369_p7  ;;  %p8888_p9 = por %p8887_p8, %p8886_p6 }
 0x105   : > { %p8882_p4 = pneg %p8881_p1 }
 0x107   : > { %p8889_p10 = pnand %p8888_p9, %p8882_p4 }
 0x109   : > { %8892 = shalt.err (!%p8889_p10)
}
 0x10a   : > { %s9210_s2 = smov 384   ;;  %s9211_s19 = smov 24  }
 0x10b   : > { %8422 = dma.hbm_to_vmem [thread:$0]  (!%p9357_p5), %s10673_s28, 12288, %s536_s4, [#allocation3], %s9210_s2, %s9210_s2, %s9211_s19  }
 0x10c   : > { %s9212_s27 = smov [#allocation6]   ;;  %s9213_s26 = smov [#allocation9]  }
 0x10d   : > { %s561_s23 = sshll.u32 %s9212_s27, 4  ;;  %s590_s29 = sshll.u32 %s9213_s26, 4  ;;  %s562_s23 = int_to_ptr.vmem [resolvable:$true] %s561_s23  ;;  %s9566_s29 = int_to_ptr.vmem [resolvable:$true] %s590_s29 }
 0x10e   : > { %s10674_s30 = sld [smem:[#allocation47_spill]] }
 0x114   : > { %s8893_s8 = scalar_lea.hbm %s10674_s30, 4096 }
 0x115   : > { %p8894_p2 = scmp.ne.s32.totalorder %s10674_s30, %s8893_s8  ;;  %p8900_p12 = scmp.lt.u32.totalorder %s8893_s8, %s10674_s30 }
 0x117   : > { %p8896_p3 = pnand %p8894_p2, %p9369_p7 }
 0x119   : > { %p8897_p11 = pneg %p8896_p3 }
 0x11b   : > { %p8902_p13 = pnand %p8900_p12, %p8897_p11 }
 0x11d   : > { %8905 = shalt.err (!%p8902_p13)
}
 0x11e   : > { %s8906_s5 = scalar_lea.vmem %s562_s23, 4096  ;;  %p8914_p6 = scmp.lt.s32.totalorder %s562_s23, %s562_s23 }
 0x11f   : > { %p8907_p0 = scmp.ne.s32.totalorder %s562_s23, %s8906_s5  ;;  %p8915_p8 = scmp.lt.s32.totalorder %s8906_s5, %s8906_s5 }
 0x121   : > { %p8909_p1 = pnand %p8907_p0, %p9369_p7  ;;  %p8916_p9 = por %p8915_p8, %p8914_p6 }
 0x123   : > { %p8910_p4 = pneg %p8909_p1 }
 0x125   : > { %p8917_p10 = pnand %p8916_p9, %p8910_p4 }
 0x127   : > { %8920 = shalt.err (!%p8917_p10)
}
 0x128   : > { %8428 = dma.hbm_to_vmem [thread:$0]  (!%p9357_p5), %s10674_s30, 4096, %s562_s23, [#allocation5], %s10669_s21, %s10669_s21, %s10672_s1  }
 0x129   : > { %s8921_s26 = scalar_lea.hbm %s10603_s7, 8192 }
 0x12a   : > { %p8922_p2 = scmp.ne.s32.totalorder %s10603_s7, %s8921_s26  ;;  %p8928_p12 = scmp.lt.u32.totalorder %s8921_s26, %s10603_s7 }
 0x12c   : > { %p8924_p3 = pnand %p8922_p2, %p9369_p7 }
 0x12e   : > { %p8925_p11 = pneg %p8924_p3 }
 0x130   : > { %p8930_p13 = pnand %p8928_p12, %p8925_p11 }
 0x132   : > { %8933 = shalt.err (!%p8930_p13)
}
 0x133   : > { %s8934_s23 = scalar_lea.vmem %s9566_s29, 8192  ;;  %p8942_p6 = scmp.lt.s32.totalorder %s9566_s29, %s9566_s29 }
 0x134   : > { %p8935_p0 = scmp.ne.s32.totalorder %s9566_s29, %s8934_s23  ;;  %p8943_p8 = scmp.lt.s32.totalorder %s8934_s23, %s8934_s23 }
 0x136   : > { %p8937_p1 = pnand %p8935_p0, %p9369_p7  ;;  %p8944_p9 = por %p8943_p8, %p8942_p6 }
 0x138   : > { %p8938_p4 = pneg %p8937_p1 }
 0x13a   : > { %p8945_p10 = pnand %p8944_p9, %p8938_p4 }
 0x13c   : > { %8948 = shalt.err (!%p8945_p10)
}
 0x13d   : > { %8434 = dma.hbm_to_vmem [thread:$0]  (!%p9357_p5), %s10603_s7, 8192, %s9566_s29, [#allocation8], %s10669_s21, %s10669_s21, %s10672_s1  }
 0x13e   : > { %s9214_s8 = smov [#allocation12]   ;;  %s9215_s27 = smov [#allocation15]  }
 0x13f   : > { %s616_s12 = sshll.u32 %s9214_s8, 4  ;;  %s642_s26 = sshll.u32 %s9215_s27, 4  ;;  %s617_s12 = int_to_ptr.vmem [resolvable:$true] %s616_s12  ;;  %s9615_s26 = int_to_ptr.vmem [resolvable:$true] %s642_s26 }
 0x140   : > { %s8949_s6 = scalar_lea.hbm %s10605_s9, 12288 }
 0x141   : > { %p8950_p2 = scmp.ne.s32.totalorder %s10605_s9, %s8949_s6  ;;  %p8956_p12 = scmp.lt.u32.totalorder %s8949_s6, %s10605_s9 }
 0x143   : > { %p8952_p3 = pnand %p8950_p2, %p9369_p7 }
 0x145   : > { %p8953_p11 = pneg %p8952_p3 }
 0x147   : > { %p8958_p13 = pnand %p8956_p12, %p8953_p11 }
 0x149   : > { %8961 = shalt.err (!%p8958_p13)
}
 0x14a   : > { %s8962_s10 = scalar_lea.vmem %s617_s12, 12288  ;;  %p8970_p6 = scmp.lt.s32.totalorder %s617_s12, %s617_s12 }
 0x14b   : > { %p8963_p0 = scmp.ne.s32.totalorder %s617_s12, %s8962_s10  ;;  %p8971_p8 = scmp.lt.s32.totalorder %s8962_s10, %s8962_s10 }
 0x14d   : > { %p8965_p1 = pnand %p8963_p0, %p9369_p7  ;;  %p8972_p9 = por %p8971_p8, %p8970_p6 }
 0x14f   : > { %p8966_p4 = pneg %p8965_p1 }
 0x151   : > { %p8973_p10 = pnand %p8972_p9, %p8966_p4 }
 0x153   : > { %8976 = shalt.err (!%p8973_p10)
}
 0x154   : > { %8440 = dma.hbm_to_vmem [thread:$0]  (!%p9357_p5), %s10605_s9, 12288, %s617_s12, [#allocation11], %s9210_s2, %s9210_s2, %s9211_s19  }
 0x155   : > { %s8977_s6 = scalar_lea.hbm %s10607_s11, 4096 }
 0x156   : > { %p8978_p2 = scmp.ne.s32.totalorder %s10607_s11, %s8977_s6  ;;  %p8984_p12 = scmp.lt.u32.totalorder %s8977_s6, %s10607_s11 }
 0x158   : > { %p8980_p3 = pnand %p8978_p2, %p9369_p7 }
 0x15a   : > { %p8981_p11 = pneg %p8980_p3 }
 0x15c   : > { %p8986_p13 = pnand %p8984_p12, %p8981_p11 }
 0x15e   : > { %8989 = shalt.err (!%p8986_p13)
}
 0x15f   : > { %s8990_s2 = scalar_lea.vmem %s9615_s26, 4096  ;;  %p8998_p6 = scmp.lt.s32.totalorder %s9615_s26, %s9615_s26 }
 0x160   : > { %p8991_p0 = scmp.ne.s32.totalorder %s9615_s26, %s8990_s2  ;;  %p8999_p8 = scmp.lt.s32.totalorder %s8990_s2, %s8990_s2 }
 0x162   : > { %p8993_p1 = pnand %p8991_p0, %p9369_p7  ;;  %p9000_p9 = por %p8999_p8, %p8998_p6 }
 0x164   : > { %p8994_p4 = pneg %p8993_p1 }
 0x166   : > { %p9001_p10 = pnand %p9000_p9, %p8994_p4 }
 0x168   : > { %9004 = shalt.err (!%p9001_p10)
}
 0x169   : > { %8446 = dma.hbm_to_vmem [thread:$0]  (!%p9357_p5), %s10607_s11, 4096, %s9615_s26, [#allocation14], %s10669_s21, %s10669_s21, %s10672_s1  }
 0x16a   : > { %s9216_s10 = smov [#allocation18]   ;;  %s9217_s27 = smov [#allocation21]  }
 0x16b   : > { %s668_s8 = sshll.u32 %s9216_s10, 4  ;;  %s694_s25 = sshll.u32 %s9217_s27, 4  ;;  %s669_s8 = int_to_ptr.vmem [resolvable:$true] %s668_s8  ;;  %s9664_s25 = int_to_ptr.vmem [resolvable:$true] %s694_s25 }
 0x16c   : > { %s9005_s4 = scalar_lea.hbm %s10609_s13, 8192 }
 0x16d   : > { %p9006_p2 = scmp.ne.s32.totalorder %s10609_s13, %s9005_s4  ;;  %p9012_p12 = scmp.lt.u32.totalorder %s9005_s4, %s10609_s13 }
 0x16f   : > { %p9008_p3 = pnand %p9006_p2, %p9369_p7 }
 0x171   : > { %p9009_p11 = pneg %p9008_p3 }
 0x173   : > { %p9014_p13 = pnand %p9012_p12, %p9009_p11 }
 0x175   : > { %9017 = shalt.err (!%p9014_p13)
}
 0x176   : > { %s9018_s2 = scalar_lea.vmem %s669_s8, 8192  ;;  %p9026_p6 = scmp.lt.s32.totalorder %s669_s8, %s669_s8 }
 0x177   : > { %p9019_p0 = scmp.ne.s32.totalorder %s669_s8, %s9018_s2  ;;  %p9027_p8 = scmp.lt.s32.totalorder %s9018_s2, %s9018_s2 }
 0x179   : > { %p9021_p1 = pnand %p9019_p0, %p9369_p7  ;;  %p9028_p9 = por %p9027_p8, %p9026_p6 }
 0x17b   : > { %p9022_p4 = pneg %p9021_p1 }
 0x17d   : > { %p9029_p10 = pnand %p9028_p9, %p9022_p4 }
 0x17f   : > { %9032 = shalt.err (!%p9029_p10)
}
 0x180   : > { %s10675_s19 = smov 16   ;;  %s10676_s12 = smov 256  }
 0x181   : > { %8452 = dma.hbm_to_vmem [thread:$0]  (!%p9357_p5), %s10609_s13, 8192, %s669_s8, [#allocation17], %s10676_s12, %s10676_s12, %s10675_s19  }
 0x182   : > { %s9033_s4 = scalar_lea.hbm %s10611_s15, 4096 }
 0x183   : > { %p9034_p2 = scmp.ne.s32.totalorder %s10611_s15, %s9033_s4  ;;  %p9040_p12 = scmp.lt.u32.totalorder %s9033_s4, %s10611_s15 }
 0x185   : > { %p9036_p3 = pnand %p9034_p2, %p9369_p7 }
 0x187   : > { %p9037_p11 = pneg %p9036_p3 }
 0x189   : > { %p9042_p13 = pnand %p9040_p12, %p9037_p11 }
 0x18b   : > { %9045 = shalt.err (!%p9042_p13)
}
 0x18c   : > { %s9046_s8 = scalar_lea.vmem %s9664_s25, 4096  ;;  %p9054_p6 = scmp.lt.s32.totalorder %s9664_s25, %s9664_s25 }
 0x18d   : > { %p9047_p0 = scmp.ne.s32.totalorder %s9664_s25, %s9046_s8  ;;  %p9055_p8 = scmp.lt.s32.totalorder %s9046_s8, %s9046_s8 }
 0x18f   : > { %p9049_p1 = pnand %p9047_p0, %p9369_p7  ;;  %p9056_p9 = por %p9055_p8, %p9054_p6 }
 0x191   : > { %p9050_p4 = pneg %p9049_p1 }
 0x193   : > { %p9057_p10 = pnand %p9056_p9, %p9050_p4 }
 0x195   : > { %9060 = shalt.err (!%p9057_p10)
}
 0x196   : > { %8458 = dma.hbm_to_vmem [thread:$0]  (!%p9357_p5), %s10611_s15, 4096, %s9664_s25, [#allocation20], %s10669_s21, %s10669_s21, %s10672_s1  }
 0x197   : > { %s9218_s12 = smov [#allocation24]   ;;  %s9219_s27 = smov [#allocation27]  }
 0x198   : > { %s720_s10 = sshll.u32 %s9218_s12, 4  ;;  %s746_s22 = sshll.u32 %s9219_s27, 4  ;;  %s721_s10 = int_to_ptr.vmem [resolvable:$true] %s720_s10  ;;  %s9713_s22 = int_to_ptr.vmem [resolvable:$true] %s746_s22 }
 0x199   : > { %s9061_s23 = scalar_lea.hbm %s10613_s17, 64 }
 0x19a   : > { %p9062_p2 = scmp.ne.s32.totalorder %s10613_s17, %s9061_s23  ;;  %p9068_p12 = scmp.lt.u32.totalorder %s9061_s23, %s10613_s17 }
 0x19c   : > { %p9064_p3 = pnand %p9062_p2, %p9369_p7 }
 0x19e   : > { %p9065_p11 = pneg %p9064_p3 }
 0x1a0   : > { %p9070_p13 = pnand %p9068_p12, %p9065_p11 }
 0x1a2   : > { %9073 = shalt.err (!%p9070_p13)
}
 0x1a3   : > { %s9074_s8 = scalar_lea.vmem %s721_s10, 64  ;;  %p9082_p6 = scmp.lt.s32.totalorder %s721_s10, %s721_s10 }
 0x1a4   : > { %p9075_p0 = scmp.ne.s32.totalorder %s721_s10, %s9074_s8  ;;  %p9083_p8 = scmp.lt.s32.totalorder %s9074_s8, %s9074_s8 }
 0x1a6   : > { %p9077_p1 = pnand %p9075_p0, %p9369_p7  ;;  %p9084_p9 = por %p9083_p8, %p9082_p6 }
 0x1a8   : > { %p9078_p4 = pneg %p9077_p1 }
 0x1aa   : > { %p9085_p10 = pnand %p9084_p9, %p9078_p4 }
 0x1ac   : > { %9088 = shalt.err (!%p9085_p10)
}
 0x1ad   : > { %8464 = dma.hbm_to_vmem [thread:$0]  (!%p9357_p5), %s10613_s17, 64, %s721_s10, [#allocation23], %s10671_s20, %s10671_s20, %s10670_s3  }
 0x1ae   : > { %s10677_s6 = sld [smem:[#allocation53_spill]] }
 0x1b4   : > { %s9089_s4 = scalar_lea.hbm %s10677_s6, 512 }
 0x1b5   : > { %p9090_p2 = scmp.ne.s32.totalorder %s10677_s6, %s9089_s4  ;;  %p9096_p12 = scmp.lt.u32.totalorder %s9089_s4, %s10677_s6 }
 0x1b7   : > { %p9092_p3 = pnand %p9090_p2, %p9369_p7 }
 0x1b9   : > { %p9093_p11 = pneg %p9092_p3 }
 0x1bb   : > { %p9098_p13 = pnand %p9096_p12, %p9093_p11 }
 0x1bd   : > { %9101 = shalt.err (!%p9098_p13)
}
 0x1be   : > { %s9102_s3 = scalar_lea.vmem %s9713_s22, 512  ;;  %p9110_p6 = scmp.lt.s32.totalorder %s9713_s22, %s9713_s22 }
 0x1bf   : > { %p9103_p0 = scmp.ne.s32.totalorder %s9713_s22, %s9102_s3  ;;  %p9111_p8 = scmp.lt.s32.totalorder %s9102_s3, %s9102_s3 }
 0x1c1   : > { %p9105_p1 = pnand %p9103_p0, %p9369_p7  ;;  %p9112_p9 = por %p9111_p8, %p9110_p6 }
 0x1c3   : > { %p9106_p4 = pneg %p9105_p1 }
 0x1c5   : > { %p9113_p10 = pnand %p9112_p9, %p9106_p4 }
 0x1c7   : > { %9116 = shalt.err (!%p9113_p10)
}
 0x1c8   : > { %8470 = dma.hbm_to_vmem [thread:$0]  (!%p9357_p5), %s10677_s6, 512, %s9713_s22, [#allocation26], %s10669_s21, %s10669_s21, %s10672_s1  }
 0x1c9   : > { %s9220_s25 = smov [#allocation28]   ;;  %s10678_s12 = sld [smem:[#allocation54_spill]] }
 0x1ca   : > { %s759_s8 = sshll.u32 %s9220_s25, 4  ;;  %s760_s8 = int_to_ptr.vmem [resolvable:$true] %s759_s8 }
 0x1cf   : > { %s9117_s27 = scalar_lea.hbm %s10678_s12, 2048 }
 0x1d0   : > { %p9118_p2 = scmp.ne.s32.totalorder %s10678_s12, %s9117_s27  ;;  %p9124_p12 = scmp.lt.u32.totalorder %s9117_s27, %s10678_s12 }
 0x1d2   : > { %p9120_p3 = pnand %p9118_p2, %p9369_p7 }
 0x1d4   : > { %p9121_p11 = pneg %p9120_p3 }
 0x1d6   : > { %p9126_p13 = pnand %p9124_p12, %p9121_p11 }
 0x1d8   : > { %9129 = shalt.err (!%p9126_p13)
}
 0x1d9   : > { %s9130_s22 = scalar_lea.vmem %s760_s8, 2048  ;;  %p9138_p6 = scmp.lt.s32.totalorder %s760_s8, %s760_s8 }
 0x1da   : > { %p9131_p0 = scmp.ne.s32.totalorder %s760_s8, %s9130_s22  ;;  %p9139_p8 = scmp.lt.s32.totalorder %s9130_s22, %s9130_s22 }
 0x1dc   : > { %p9133_p1 = pnand %p9131_p0, %p9369_p7  ;;  %p9140_p9 = por %p9139_p8, %p9138_p6 }
 0x1de   : > { %p9134_p4 = pneg %p9133_p1 }
 0x1e0   : > { %p9141_p10 = pnand %p9140_p9, %p9134_p4 }
 0x1e2   : > { %9144 = shalt.err (!%p9141_p10)
}
 0x1e3   : > { %8473 = dma.hbm_to_vmem [thread:$0]  (!%p9357_p5), %s10678_s12, 2048, %s760_s8, [#allocation29], %s10669_s21, %s10669_s21, %s10672_s1  }
 0x1e4   : > { %s10679_s20 = sld [smem:[#allocation42_spill]] }
 0x1ea   : > { %p10680_p2 = scmp.ne.s32.totalorder %s10679_s20, 0 }
 0x1eb   : > { %s10681_s24 = sld [smem:[#allocation41_spill]] (!%p10680_p2) }
 0x1ec   : > { %790 = sbr.rel (%p10680_p2) target bundleno = 10788 (0x2a24), region = 104 }
 0x1f1   : > { %p10682_p7 = scmp.eq.s32.totalorder (!%p10680_p2), %s10681_s24, 0 }
 0x1f3   : > { %9150 = dma.done.wait (%p10682_p7), [#allocation3], 12288   ;;  %p10683_p3 = pmov %p10682_p7 }
 0x1f5   : > { %9152 = vsyncadd (%p10683_p3), [#allocation3], 4294955008  ;;  %p10684_p11 = pmov %p10683_p3 }
 0x1f6   : > { %p10685_p12 = pmov %p10683_p3 }
 0x1f7   : > { %9154 = dma.done.wait (%p10684_p11), [#allocation5], 4192  }
 0x1f8   : > { %9156 = vsyncadd (%p10685_p12), [#allocation5], 4294963104  ;;  %p10686_p13 = pmov %p10683_p3 }
 0x1f9   : > { %p10687_p5 = pmov %p10683_p3 }
 0x1fa   : > { %9158 = dma.done.wait (%p10686_p13), [#allocation8], 8256  }
 0x1fb   : > { %9160 = vsyncadd (%p10687_p5), [#allocation8], 4294959040  ;;  %p10688_p0 = pmov %p10683_p3 }
 0x1fd   : > { %9162 = dma.done.wait (%p10688_p0), [#allocation11], 12544   ;;  %p10689_p1 = pmov %p10688_p0 }
 0x1fe   : > { %p10690_p4 = pmov %p10688_p0 }
 0x1ff   : > { %9164 = vsyncadd (%p10689_p1), [#allocation11], 4294954752 }
 0x200   : > { %9166 = dma.done.wait (%p10690_p4), [#allocation14], 4192   ;;  %p10691_p6 = pmov %p10688_p0 }
 0x201   : > { %p10692_p8 = pmov %p10688_p0 }
 0x202   : > { %9168 = vsyncadd (%p10691_p6), [#allocation14], 4294963104 }
 0x203   : > { %9170 = dma.done.wait (%p10692_p8), [#allocation17], 12288   ;;  %p10693_p9 = pmov %p10688_p0 }
 0x204   : > { %p10694_p10 = pmov %p10688_p0 }
 0x205   : > { %9172 = vsyncadd (%p10693_p9), [#allocation17], 4294955008 }
 0x206   : > { %9174 = dma.done.wait (%p10694_p10), [#allocation20], 4160   ;;  %p10695_p2 = pmov %p10688_p0 }
 0x207   : > { %p10696_p7 = pmov %p10688_p0 }
 0x208   : > { %9176 = vsyncadd (%p10695_p2), [#allocation20], 4294963136 }
 0x209   : > { %9178 = dma.done.wait (%p10696_p7), [#allocation23], 8256   ;;  %p10697_p3 = pmov %p10688_p0 }
 0x20a   : > { %p10698_p11 = pmov %p10688_p0 }
 0x20b   : > { %9180 = vsyncadd (%p10697_p3), [#allocation23], 4294959040 }
 0x20c   : > { %9182 = dma.done.wait (%p10698_p11), [#allocation26], 8704   ;;  %p10699_p12 = pmov %p10688_p0 }
 0x20d   : > { %p10700_p13 = pmov %p10688_p0 }
 0x20e   : > { %9184 = vsyncadd (%p10699_p12), [#allocation26], 4294958592 }
 0x20f   : > { %9186 = dma.done.wait (%p10700_p13), [#allocation29], 2048   ;;  %p10701_p5 = pmov %p10688_p0 }
 0x210   : > { %v9221_v0 = vmov 0.0   ;;  %p921_p0 = scmp.lt.s32.totalorder %s10681_s24, 1  ;;  %v954_v1 = vld [vmem:[#allocation2 + $0x8] sm:$0xff]  ;;  %v957_v2 = vld [vmem:[#allocation2 + $0x20] sm:$0xff]  ;;  %v956_v5 = vld [vmem:[#allocation2 + $0x18] sm:$0xff]  ;;  %s10702_s10 = sld [smem:[#allocation43_spill]] }
 0x211   : > { %9188 = vsyncadd (%p10701_p5), [#allocation29], 4294965248  ;;  %1082 = vmatprep.mubr.f32.mxu0 %v9221_v0  ;;  %v953_v3 = vld [vmem:[#allocation2] sm:$0xff]  ;;  %v7487_v4 = vpack.c.bf16 %v957_v2, %v954_v1  ;;  %v960_v6 = vld [vmem:[#allocation2 + $0x38] sm:$0xff]  ;;  %vm1263_vm4 = vcmask 130048   ;;  %s10703_s19 = sld [smem:[#allocation48_spill]] }
 0x212   : > { %s10708_s24 = smov (!%p921_p0, %s10681_s24), 1  ;;  %v963_v7 = vld [vmem:[#allocation2 + $0x50] sm:$0xff]  ;;  %v7489_v8 = vpack.c.bf16 %v956_v5, %v953_v3  ;;  %v962_v11 = vld [vmem:[#allocation2 + $0x48] sm:$0xff]  ;;  %v969_v13 = vld [vmem:[#allocation2 + $0x80] sm:$0xff]  ;;  %s10704_s4 = sld [smem:[#allocation44_spill]]  ;;  %vm9222_vm5 = vmmov 0  }
 0x213   : > { %v7491_v9 = vpack.c.bf16 %v963_v7, %v960_v6  ;;  %v959_v10 = vld [vmem:[#allocation2 + $0x30] sm:$0xff]  ;;  %v966_v12 = vld [vmem:[#allocation2 + $0x68] sm:$0xff]  ;;  %7488 = vmatprep.subr.bf16.mxu0 %v7487_v4  ;;  %s6436_s0 = sshll.u32 %s10708_s24, 4  ;;  %v965_v16 = vld [vmem:[#allocation2 + $0x60] sm:$0xff]  ;;  %s6382_s8 = sshll.u32 %s10708_s24, 3  ;;  %vm3250_vm7 = vcmask 64512  }
 0x214   : > { %7490 = vmatpush1.bf16.msra.mxu0 %v7489_v8  ;;  %v7493_v14 = vpack.c.bf16 %v962_v11, %v959_v10  ;;  %v7495_v15 = vpack.c.bf16 %v969_v13, %v966_v12  ;;  %v968_v17 = vld [vmem:[#allocation2 + $0x78] sm:$0xff]  ;;  %v975_v19 = vld [vmem:[#allocation2 + $0xb0] sm:$0xff]  ;;  %v974_v23 = vld [vmem:[#allocation2 + $0xa8] sm:$0xff]  ;;  %v934_v12 = vlaneseq  ;;  %s10705_s22 = sld [smem:[#allocation55_spill]] }
 0x215   : > { %7492 = vmatprep.subr.bf16.mxu0 %v7491_v9  ;;  %v972_v18 = vld [vmem:[#allocation2 + $0x98] sm:$0xff]  ;;  %v7497_v20 = vpack.c.bf16 %v968_v17, %v965_v16  ;;  %v971_v22 = vld [vmem:[#allocation2 + $0x90] sm:$0xff]  ;;  %v978_v24 = vld [vmem:[#allocation2 + $0xc8] sm:$0xff] }
 0x216   : > { %s9834_s25 = scalar_lea.vmem %s10702_s10, %s6436_s0  ;;  %v7499_v21 = vpack.c.bf16 %v975_v19, %v972_v18  ;;  %v981_v25 = vld [vmem:[#allocation2 + $0xe0] sm:$0xff]  ;;  %v955_v27 = vld [vmem:[#allocation2 + $0x10] sm:$0xff]  ;;  %v958_v28 = vld [vmem:[#allocation2 + $0x28] sm:$0xff]  ;;  %v7501_v29 = vpack.c.bf16 %v974_v23, %v971_v22  ;;  %v9847_v13 = vshrl.u32 %v934_v12, 7 }
 0x217   : > { %v9837_v26 = vld [vmem:[%s9834_s25] sm:$0xff]  ;;  %v7519_v31 = vpack.c.bf16 %v958_v28, %v955_v27  ;;  %v964_v33 = vld [vmem:[#allocation2 + $0x58] sm:$0xff]  ;;  %v7503_v34 = vpack.c.bf16 %v981_v25, %v978_v24  ;;  %v967_v37 = vld [vmem:[#allocation2 + $0x70] sm:$0xff] }
 0x218   : > { %7494 = vmatpush1.bf16.msra.mxu0 %v7493_v14  ;;  %6912 = vmatprep.mubr.f32.mxu1 %v9837_v26  ;;  %v977_v30 = vld [vmem:[#allocation2 + $0xc0] sm:$0xff]  ;;  %v980_v35 = vld [vmem:[#allocation2 + $0xd8] sm:$0xff]  ;;  %v970_v38 = vld [vmem:[#allocation2 + $0x88] sm:$0xff]  ;;  %v9849_v14 = vand.u32 127, %v934_v12  ;;  %v9859_v18 = vsub.s32 1, %v9847_v13  ;;  %s929_s23 = scalar_lea.vmem %s10704_s4, %s6382_s8 }
 0x219   : > { %7496 = vmatprep.subr.bf16.mxu0 %v7495_v15  ;;  %v961_v32 = vld [vmem:[#allocation2 + $0x40] sm:$0xff]  ;;  %v984_v39 = vld [vmem:[#allocation2 + $0xf8] sm:$0xff]  ;;  %v987_v40 = vld [vmem:[#allocation2 + $0x110] sm:$0xff]  ;;  %7520 = vmatprep.subr.bf16.mxu1 %v7519_v31  ;;  %v7505_v41 = vpack.c.bf16 %v980_v35, %v977_v30  ;;  %v7527_v43 = vpack.c.bf16 %v970_v38, %v967_v37  ;;  %v9852_v15 = vsub.s32 0, %v9847_v13 }
 0x21a   : > { %v7523_v36 = vpack.c.bf16 %v964_v33, %v961_v32  ;;  %7522 = vmatpush3.bf16.msra.mxu1 %v7519_v31  ;;  %v983_v42 = vld [vmem:[#allocation2 + $0xf0] sm:$0xff]  ;;  %v7507_v44 = vpack.c.bf16 %v987_v40, %v984_v39  ;;  %v986_v45 = vld [vmem:[#allocation2 + $0x108] sm:$0xff]  ;;  %v973_v46 = vld [vmem:[#allocation2 + $0xa0] sm:$0xff]  ;;  %vm941_vm0 = vcmp.ge.s32.totalorder %v9849_v14, 32  ;;  %vm942_vm1 = vcmp.lt.s32.totalorder %v9849_v14, 64  ;;  %s933_s26 = scalar_lea.vmem %s10705_s22, %s6382_s8 }
 0x21b   : > { %v976_v47 = vld [vmem:[#allocation2 + $0xb8] sm:$0xff]  ;;  %v990_v48 = vld [vmem:[#allocation2 + $0x128] sm:$0xff]  ;;  %v993_v49 = vld [vmem:[#allocation2 + $0x140] sm:$0xff]  ;;  %v7509_v50 = vpack.c.bf16 %v986_v45, %v983_v42  ;;  %vm937_vm2 = vcmp.lt.s32.totalorder %v9849_v14, 32  ;;  %vm948_vm6 = vcmp.gt.s32.totalorder %v9849_v14, %v9847_v13 }
 0x21c   : > { %7498 = vmatpush1.bf16.msra.mxu0 %v7497_v20  ;;  %7524 = vmatprep.subr.bf16.mxu1 %v7523_v36  ;;  %v989_v51 = vld [vmem:[#allocation2 + $0x120] sm:$0xff]  ;;  %v7531_v52 = vpack.c.bf16 %v976_v47, %v973_v46  ;;  %v7511_v53 = vpack.c.bf16 %v993_v49, %v990_v48  ;;  %v992_v54 = vld [vmem:[#allocation2 + $0x138] sm:$0xff]  ;;  %v979_v55 = vld [vmem:[#allocation2 + $0xd0] sm:$0xff]  ;;  %v9862_v19 = vsel %vm937_vm2, 1.0, %v9221_v0 }
 0x21d   : > { %7500 = vmatprep.subr.bf16.mxu0 %v7499_v21  ;;  %v982_v56 = vld [vmem:[#allocation2 + $0xe8] sm:$0xff]  ;;  %v996_v57 = vld [vmem:[#allocation2 + $0x158] sm:$0xff]  ;;  %v999_v58 = vld [vmem:[#allocation2 + $0x170] sm:$0xff]  ;;  %v7513_v59 = vpack.c.bf16 %v992_v54, %v989_v51 }
 0x21e   : > { %7526 = vmatpush3.bf16.msra.mxu1 %v7523_v36  ;;  %v995_v60 = vld [vmem:[#allocation2 + $0x150] sm:$0xff]  ;;  %v7535_v61 = vpack.c.bf16 %v982_v56, %v979_v55  ;;  %v7515_v62 = vpack.c.bf16 %v999_v58, %v996_v57  ;;  %v998_v63 = vld [vmem:[#allocation2 + $0x168] sm:$0xff]  ;;  %v985_v1 = vld [vmem:[#allocation2 + $0x100] sm:$0xff]  ;;  %v9873_v36 = vsub.s32 2, %v9847_v13 }
 0x21f   : > { %7528 = vmatprep.subr.bf16.mxu1 %v7527_v43  ;;  %v988_v2 = vld [vmem:[#allocation2 + $0x118] sm:$0xff]  ;;  %v7517_v3 = vpack.c.bf16 %v998_v63, %v995_v60  ;;  %v991_v5 = vld [vmem:[#allocation2 + $0x130] sm:$0xff]  ;;  %v994_v6 = vld [vmem:[#allocation2 + $0x148] sm:$0xff] }
 0x220   : > { %7502 = vmatpush1.bf16.msra.mxu0 %v7501_v29  ;;  %v7539_v4 = vpack.c.bf16 %v988_v2, %v985_v1  ;;  %v7543_v7 = vpack.c.bf16 %v994_v6, %v991_v5  ;;  %v9843_v8 = vld [vmem:[%s9834_s25 + $0x8] sm:$0xff]  ;;  %v997_v9 = vld [vmem:[#allocation2 + $0x160] sm:$0xff]  ;;  %v1000_v10 = vld [vmem:[#allocation2 + $0x178] sm:$0xff] }
 0x221   : > { %7504 = vmatprep.subr.bf16.mxu0 %v7503_v34  ;;  %v7547_v11 = vpack.c.bf16 %v1000_v10, %v997_v9  ;;  %v1001_v16 = vld [vmem:[#allocation4] sm:$0x7]  ;;  %vm943_vm3 = vmand %vm941_vm0, %vm942_vm1 }
 0x222   : > { %7530 = vmatpush3.bf16.msra.mxu1 %v7527_v43  ;;  %v1006_v17 = vrot.slane %v1001_v16, %v9852_v15  ;;  %v9865_v20 = vsel %vm943_vm3, 1.0, %v9221_v0  ;;  %v1010_v24 = vrot.slane %v1001_v16, %v9859_v18  ;;  %v1014_v37 = vrot.slane %v1001_v16, %v9873_v36 }
 0x223   : > { %7532 = vmatprep.subr.bf16.mxu1 %v7531_v52 }
 0x224   : > { %7506 = vmatpush1.bf16.msra.mxu0 %v7505_v41 }
 0x225   : > { %7508 = vmatprep.subr.bf16.mxu0 %v7507_v44 }
 0x226   : > { %7534 = vmatpush3.bf16.msra.mxu1 %v7531_v52 }
 0x227   : > { %7536 = vmatprep.subr.bf16.mxu1 %v7535_v61 }
 0x228   : > { %7510 = vmatpush1.bf16.msra.mxu0 %v7509_v50 }
 0x229   : > { %7512 = vmatprep.subr.bf16.mxu0 %v7511_v53 }
 0x22a   : > { %7538 = vmatpush3.bf16.msra.mxu1 %v7535_v61 }
 0x22b   : > { %7540 = vmatprep.subr.bf16.mxu1 %v7539_v4 }
 0x22c   : > { %7514 = vmatpush1.bf16.msra.mxu0 %v7513_v59 }
 0x22d   : > { %7516 = vmatprep.subr.bf16.mxu0 %v7515_v62 }
 0x22e   : > { %7542 = vmatpush3.bf16.msra.mxu1 %v7539_v4 }
 0x22f   : > { %7544 = vmatprep.subr.bf16.mxu1 %v7543_v7 }
 0x230   : > { %7518 = vmatpush1.bf16.msra.mxu0 %v7517_v3 }
 0x232   : > { %7546 = vmatpush3.bf16.msra.mxu1 %v7543_v7 }
 0x233   : > { %1083 = vmatmul.mubr.f32.vlgmr.msra.gmra.mrb[0].mxu0 %v9837_v26  ;;  %7548 = vmatprep.subr.bf16.mxu1 %v7547_v11 }
 0x234   : > { %1088 = vmatprep.mubr.f32.mxu0 %v9221_v0 }
 0x236   : > { %7550 = vmatpush3.bf16.msra.mxu1 %v7547_v11 }
 0x237   : > { %1089 = vmatmul.mubr.f32.gmra.mrb[2].mxu0 %v9843_v8 }
 0x239   : > { %6913 = vmatmul.mubr.f32.vlgmr.msra.gmra.mrb[0].mxu1 %v9843_v8 }
 0x306   : > { %v1084_v21 = vpop.f32.mrb[0].mxu0 }
 0x307   : > { %v1085_v22 = vadd.f32 %v1084_v21, %v1006_v17  ;;  %v1086_v23 = vpop.f32.mrb[1].mxu0  ;;  %v1171_v21 = vld [vmem:[#allocation6 + $0x8] sm:$0xff] }
 0x308   : > { %v1087_v30 = vadd.f32 %v1086_v23, %v1010_v24 }
 0x309   : > { %v1186_v25 = vmul.f32 %v9862_v19, %v1085_v22  ;;  %v1288_v27 = vmul.f32 %v9865_v20, %v1085_v22  ;;  %v1172_v22 = vld [vmem:[#allocation6 + $0x10] sm:$0xff] }
 0x30a   : > { %v1090_v28 = vpop.f32.mrb[2].mxu0 }
 0x30b   : > { %v1092_v29 = vpop.f32.mrb[3].mxu0  ;;  %6919 = vmatprep.mubr.f32.mxu0 %v1186_v25  ;;  %6926 = vmatprep.mubr.f32.mxu1 %v1288_v27  ;;  %v1091_v33 = vadd.f32 %v1090_v28, %v1006_v17  ;;  %v1170_v17 = vld [vmem:[#allocation6] sm:$0xff]  ;;  %v1175_v28 = vld [vmem:[#allocation6 + $0x28] sm:$0xff] }
 0x30c   : > { %v1093_v31 = vadd.f32 %v1092_v29, %v1010_v24  ;;  %v6914_v38 = vpop.f32.mrb[0].mxu1  ;;  %v7567_v23 = vpack.c.bf16 %v1171_v21, %v1170_v17  ;;  %v1173_v24 = vld [vmem:[#allocation6 + $0x18] sm:$0xff]  ;;  %v1174_v27 = vld [vmem:[#allocation6 + $0x20] sm:$0xff] }
 0x30d   : > { %v1187_v34 = vmul.f32 %v9862_v19, %v1091_v33  ;;  %v1289_v35 = vmul.f32 %v9865_v20, %v1091_v33  ;;  %v1167_v39 = vadd.f32 %v6914_v38, %v1014_v37  ;;  %v1161_v40 = vpop.f32.mrb[1].mxu1  ;;  %v7571_v25 = vpack.c.bf16 %v1173_v24, %v1172_v22  ;;  %v1178_v33 = vld [vmem:[#allocation6 + $0x40] sm:$0xff]  ;;  %v1181_v38 = vld [vmem:[#allocation6 + $0x58] sm:$0xff] }
 0x30e   : > { %v7551_v32 = vpack.c.bf16 %v1093_v31, %v1087_v30  ;;  %v1162_v41 = vadd.f32 %v1161_v40, %v1014_v37  ;;  %v7575_v29 = vpack.c.bf16 %v1175_v28, %v1174_v27  ;;  %v1176_v30 = vld [vmem:[#allocation6 + $0x30] sm:$0xff]  ;;  %v1177_v31 = vld [vmem:[#allocation6 + $0x38] sm:$0xff]  ;;  %v1182_v40 = vld [vmem:[#allocation6 + $0x60] sm:$0xff] }
 0x30f   : > { %v1388_v42 = vmul.f32 %v9865_v20, %v1167_v39  ;;  %v1287_v45 = vmul.f32 %v9862_v19, %v1167_v39  ;;  %v1180_v37 = vld [vmem:[#allocation6 + $0x50] sm:$0xff]  ;;  %v1681_v24 = vld [vmem:[%s10703_s19 + $0x48] sm:$0xff]  ;;  %v1680_v28 = vld [vmem:[%s10703_s19 + $0x40] sm:$0xff] }
 0x310   : > { %7552 = vmatprep.subr.bf16.mxu0 %v7551_v32  ;;  %7556 = vmatprep.subr.bf16.mxu1 %v7551_v32  ;;  %v1387_v43 = vmul.f32 %v9865_v20, %v1162_v41  ;;  %v1286_v46 = vmul.f32 %v9862_v19, %v1162_v41  ;;  %v7587_v39 = vpack.c.bf16 %v1181_v38, %v1180_v37  ;;  %v1183_v41 = vld [vmem:[#allocation6 + $0x68] sm:$0xff] }
 0x311   : > { %7554 = vmatpush3.bf16.xpose.msra.mxu0 %v7551_v32  ;;  %7558 = vmatpush3.bf16.xpose.msra.mxu1 %v7551_v32  ;;  %v7579_v32 = vpack.c.bf16 %v1177_v31, %v1176_v30  ;;  %v1685_v31 = vld [vmem:[%s10703_s19 + $0x68] sm:$0xff] }
 0x312   : > { %v7559_v44 = vpack.c.bf16 %v1388_v42, %v1387_v43  ;;  %v9880_v47 = vpack.c.bf16 %v1287_v45, %v1286_v46  ;;  %7568 = vmatprep.subr.bf16.mxu1 %v7567_v23  ;;  %v7591_v42 = vpack.c.bf16 %v1183_v41, %v1182_v40  ;;  %v1184_v43 = vld [vmem:[#allocation6 + $0x70] sm:$0xff]  ;;  %v1689_v38 = vld [vmem:[%s10703_s19 + $0x88] sm:$0xff]  ;;  %v1688_v41 = vld [vmem:[%s10703_s19 + $0x80] sm:$0xff] }
 0x314   : > { %7560 = vmatprep.subr.bf16.mxu0 %v7559_v44 }
 0x318   : > { %6920 = vmatmul.mubr.f32.vlgmr.msra.gmra.mrb[4].mxu0 %v1187_v34  ;;  %6927 = vmatmul.mubr.f32.vlgmr.msra.gmra.mrb[2].mxu1 %v1289_v35  ;;  %v1179_v34 = vld [vmem:[#allocation6 + $0x48] sm:$0xff] }
 0x319   : > { %7562 = vmatpush3.bf16.msra.mxu0 %v7559_v44  ;;  %7570 = vmatpush3.bf16.msra.mxu1 %v7567_v23  ;;  %v7583_v35 = vpack.c.bf16 %v1179_v34, %v1178_v33  ;;  %v1185_v44 = vld [vmem:[#allocation6 + $0x78] sm:$0xff] }
 0x31a   : > { %7564 = vmatprep.subr.bf16.mxu0 %v9880_v47  ;;  %7572 = vmatprep.subr.bf16.mxu1 %v7571_v25  ;;  %v7595_v45 = vpack.c.bf16 %v1185_v44, %v1184_v43  ;;  %v1684_v34 = vld [vmem:[%s10703_s19 + $0x60] sm:$0xff]  ;;  %v1693_v44 = vld [vmem:[%s10703_s19 + $0xa8] sm:$0xff] }
 0x31d   : > { %7574 = vmatpush3.bf16.msra.mxu1 %v7571_v25  ;;  %v1683_v25 = vld [vmem:[%s10703_s19 + $0x58] sm:$0xff] }
 0x31e   : > { %7576 = vmatprep.subr.bf16.mxu1 %v7575_v29  ;;  %v7607_v27 = vpack.c.bf16 %v1683_v25, %v1681_v24  ;;  %v1819_v24 = vld [vmem:[#allocation9 + $0xb0] sm:$0xff]  ;;  %v1820_v25 = vld [vmem:[#allocation9 + $0xb8] sm:$0xff] }
 0x321   : > { %7578 = vmatpush3.bf16.msra.mxu1 %v7575_v29  ;;  %v1682_v29 = vld [vmem:[%s10703_s19 + $0x50] sm:$0xff] }
 0x322   : > { %7580 = vmatprep.subr.bf16.mxu1 %v7579_v32  ;;  %v7609_v30 = vpack.c.bf16 %v1682_v29, %v1680_v28  ;;  %v7643_v28 = vpack.c.bf16 %v1820_v25, %v1819_v24  ;;  %v1803_v29 = vld [vmem:[#allocation9 + $0x30] sm:$0xff] }
 0x323   : > { %v1811_v25 = vld [vmem:[#allocation9 + $0x70] sm:$0xff] }
 0x325   : > { %7582 = vmatpush3.bf16.msra.mxu1 %v7579_v32  ;;  %v1687_v32 = vld [vmem:[%s10703_s19 + $0x78] sm:$0xff] }
 0x326   : > { %7584 = vmatprep.subr.bf16.mxu1 %v7583_v35  ;;  %v7611_v33 = vpack.c.bf16 %v1687_v32, %v1685_v31  ;;  %v1821_v31 = vld [vmem:[#allocation9 + $0xc0] sm:$0xff]  ;;  %v1822_v32 = vld [vmem:[#allocation9 + $0xc8] sm:$0xff] }
 0x329   : > { %7586 = vmatpush3.bf16.msra.mxu1 %v7583_v35  ;;  %v1686_v35 = vld [vmem:[%s10703_s19 + $0x70] sm:$0xff] }
 0x32a   : > { %7588 = vmatprep.subr.bf16.mxu1 %v7587_v39  ;;  %v7613_v37 = vpack.c.bf16 %v1686_v35, %v1684_v34  ;;  %v7647_v34 = vpack.c.bf16 %v1822_v32, %v1821_v31  ;;  %v1805_v35 = vld [vmem:[#allocation9 + $0x40] sm:$0xff] }
 0x32d   : > { %7590 = vmatpush3.bf16.msra.mxu1 %v7587_v39  ;;  %v1691_v39 = vld [vmem:[%s10703_s19 + $0x98] sm:$0xff] }
 0x32e   : > { %7592 = vmatprep.subr.bf16.mxu1 %v7591_v42  ;;  %v7615_v40 = vpack.c.bf16 %v1691_v39, %v1689_v38  ;;  %v1823_v38 = vld [vmem:[#allocation9 + $0xd0] sm:$0xff]  ;;  %v1824_v39 = vld [vmem:[#allocation9 + $0xd8] sm:$0xff] }
 0x331   : > { %7594 = vmatpush3.bf16.msra.mxu1 %v7591_v42  ;;  %v1690_v42 = vld [vmem:[%s10703_s19 + $0x90] sm:$0xff] }
 0x332   : > { %7596 = vmatprep.subr.bf16.mxu1 %v7595_v45  ;;  %v7617_v43 = vpack.c.bf16 %v1690_v42, %v1688_v41  ;;  %v7651_v41 = vpack.c.bf16 %v1824_v39, %v1823_v38  ;;  %v1807_v42 = vld [vmem:[#allocation9 + $0x50] sm:$0xff] }
 0x335   : > { %7598 = vmatpush3.bf16.msra.mxu1 %v7595_v45  ;;  %v1695_v45 = vld [vmem:[%s10703_s19 + $0xb8] sm:$0xff] }
 0x3eb   : > { %v6921_v48 = vpop.f32.mrb[4].mxu0  ;;  %v6928_v49 = vpop.f32.mrb[2].mxu1 }
 0x3ec   : > { %v1254_v50 = vpop.f32.mrb[5].mxu0  ;;  %v1356_v51 = vpop.f32.mrb[3].mxu1  ;;  %v1368_v54 = vsel %vm1263_vm4, %v6928_v49, -inf  ;;  %v1267_v55 = vsel %vm1263_vm4, %v6921_v48, -inf }
 0x3ed   : > { %v1365_v52 = vsel %vm1263_vm4, %v1356_v51, -inf  ;;  %v1264_v53 = vsel %vm1263_vm4, %v1254_v50, -inf }
 0x3ee   : > { %1366 = vmax.xlane.f32.xlu0 %v1365_v52  ;;  %1265 = vmax.xlane.f32.xlu1 %v1264_v53 }
 0x3f2   : > { %1369 = vmax.xlane.f32.xlu0 %v1368_v54  ;;  %1268 = vmax.xlane.f32.xlu1 %v1267_v55 }
 0x47b   : > { %v1367_v56 = vpop.xlane.xlu0 %1366  ;;  %v1266_v57 = vpop.xlane.xlu1 %1265 }
 0x47c   : > { %v1371_v58 = vsub.f32 %v1356_v51, %v1367_v56  ;;  %v1270_v59 = vsub.f32 %v1254_v50, %v1266_v57 }
 0x47e   : > { %v1373_v60 = vmul.f32 1.442695, %v1371_v58  ;;  %v1272_v61 = vmul.f32 1.442695, %v1270_v59 }
 0x47f   : > { %v1370_v62 = vpop.xlane.xlu0 %1369  ;;  %v1269_v63 = vpop.xlane.xlu1 %1268 }
 0x480   : > { %8549 = vpow2.f32 %v1373_v60  ;;  %v1372_v1 = vsub.f32 %v6928_v49, %v1370_v62  ;;  %v1271_v2 = vsub.f32 %v6921_v48, %v1269_v63  ;;  %v1672_v62 = vld [vmem:[%s10703_s19] sm:$0xff] }
 0x481   : > { %8551 = vpow2.f32 %v1272_v61  ;;  %v1673_v61 = vld [vmem:[%s10703_s19 + $0x8] sm:$0xff] }
 0x482   : > { %v1375_v3 = vmul.f32 1.442695, %v1372_v1  ;;  %v1274_v4 = vmul.f32 1.442695, %v1271_v2  ;;  %v1674_v1 = vld [vmem:[%s10703_s19 + $0x10] sm:$0xff]  ;;  %v1677_v2 = vld [vmem:[%s10703_s19 + $0x28] sm:$0xff] }
 0x484   : > { %8553 = vpow2.f32 %v1375_v3  ;;  %v1679_v3 = vld [vmem:[%s10703_s19 + $0x38] sm:$0xff] }
 0x485   : > { %8555 = vpow2.f32 %v1274_v4  ;;  %v7601_v4 = vpack.c.bf16 %v1674_v1, %v1672_v62  ;;  %v1813_v62 = vld [vmem:[#allocation9 + $0x80] sm:$0xff] }
 0x486   : > { %v1797_v1 = vld [vmem:[#allocation9] sm:$0xff] }
 0x48a   : > { %v8550_v5 = vpop.eup %8549 }
 0x48b   : > { %v1377_v6 = vsel %vm1263_vm4, %v8550_v5, 0.0  ;;  %v9888_v7 = vpop.eup %8551 }
 0x48c   : > { %1378 = vadd.xlane.f32.xlu0 %v1377_v6  ;;  %v1276_v11 = vsel %vm1263_vm4, %v9888_v7, 0.0  ;;  %v9923_v6 = vld [vmem:[#allocation10] sm:$0xff] }
 0x48e   : > { %v8554_v9 = vpop.eup %8553 }
 0x48f   : > { %v1380_v10 = vsel %vm1263_vm4, %v8554_v9, 0.0  ;;  %v9893_v12 = vpop.eup %8555 }
 0x490   : > { %1381 = vadd.xlane.f32.xlu1 %v1380_v10  ;;  %1277 = vadd.xlane.f32.xlu0 %v1276_v11  ;;  %v1279_v16 = vsel %vm1263_vm4, %v9893_v12, 0.0 }
 0x494   : > { %1280 = vadd.xlane.f32.xlu1 %v1279_v16 }
 0x519   : > { %v1379_v46 = vpop.xlane.xlu0 %1378 }
 0x51a   : > { %8557 = vrcp.f32 %v1379_v46  ;;  %v7619_v46 = vpack.c.bf16 %v1695_v45, %v1693_v44  ;;  %v1825_v44 = vld [vmem:[#allocation9 + $0xe0] sm:$0xff]  ;;  %v1826_v45 = vld [vmem:[#allocation9 + $0xe8] sm:$0xff] }
 0x51d   : > { %v1278_v48 = vpop.xlane.xlu0 %1277  ;;  %v1382_v49 = vpop.xlane.xlu1 %1381 }
 0x51e   : > { %8559 = vrcp.f32 %v1278_v48  ;;  %v1692_v48 = vld [vmem:[%s10703_s19 + $0xa0] sm:$0xff] }
 0x51f   : > { %8561 = vrcp.f32 %v1382_v49  ;;  %v1694_v49 = vld [vmem:[%s10703_s19 + $0xb0] sm:$0xff] }
 0x521   : > { %v1281_v50 = vpop.xlane.xlu1 %1280 }
 0x522   : > { %8563 = vrcp.f32 %v1281_v50  ;;  %v1697_v50 = vld [vmem:[%s10703_s19 + $0xc8] sm:$0xff] }
 0x524   : > { %v8558_v51 = vpop.eup %8557 }
 0x525   : > { %v1385_v52 = vmul.f32 %v8558_v51, %v8550_v5  ;;  %v7603_v5 = vpack.c.bf16 %v1679_v3, %v1677_v2  ;;  %v7621_v51 = vpack.c.bf16 %v1694_v49, %v1692_v48  ;;  %v1798_v3 = vld [vmem:[#allocation9 + $0x8] sm:$0xff]  ;;  %v7655_v48 = vpack.c.bf16 %v1826_v45, %v1825_v44  ;;  %v1954_v45 = vld [vmem:[#allocation2 + $0x188] sm:$0xff] }
 0x527   : > { %6933 = vmatprep.mubr.msk.f32.mxu0 %vm1263_vm4, %v1385_v52  ;;  %v1699_v52 = vld [vmem:[%s10703_s19 + $0xd8] sm:$0xff] }
 0x528   : > { %v8560_v53 = vpop.eup %8559 }
 0x529   : > { %v8562_v54 = vpop.eup %8561  ;;  %v1284_v55 = vmul.f32 %v8560_v53, %v9888_v7  ;;  %v1554_v7 = vrot.slane %v9923_v6, %v9852_v15  ;;  %v1696_v53 = vld [vmem:[%s10703_s19 + $0xc0] sm:$0xff] }
 0x52a   : > { %v1386_v56 = vmul.f32 %v8562_v54, %v8554_v9  ;;  %v1698_v54 = vld [vmem:[%s10703_s19 + $0xd0] sm:$0xff] }
 0x52c   : > { %6934 = vmatmul.mubr.msk.f32.vlgmr.msra.gmra.mrb[6].mxu0 %vm1263_vm4, %v1386_v56  ;;  %v8564_v57 = vpop.eup %8563  ;;  %v1701_v56 = vld [vmem:[%s10703_s19 + $0xe8] sm:$0xff] }
 0x52d   : > { %7566 = vmatpush3.bf16.msra.mxu0 %v9880_v47  ;;  %6940 = vmatprep.mubr.msk.f32.mxu0 %vm1263_vm4, %v1284_v55  ;;  %v1285_v58 = vmul.f32 %v8564_v57, %v9893_v12  ;;  %v1675_v47 = vld [vmem:[%s10703_s19 + $0x18] sm:$0xff]  ;;  %v7623_v55 = vpack.c.bf16 %v1699_v52, %v1697_v50 }
 0x52e   : > { %v7599_v63 = vpack.c.bf16 %v1675_v47, %v1673_v61  ;;  %v1703_v57 = vld [vmem:[%s10703_s19 + $0xf8] sm:$0xff]  ;;  %v1702_v61 = vld [vmem:[%s10703_s19 + $0xf0] sm:$0xff] }
 0x530   : > { %7600 = vmatprep.subr.bf16.mxu0 %v7599_v63  ;;  %v1814_v63 = vld [vmem:[#allocation9 + $0x88] sm:$0xff] }
 0x531   : > { %v7631_v2 = vpack.c.bf16 %v1814_v63, %v1813_v62 }
 0x533   : > { %7632 = vmatprep.subr.bf16.mxu1 %v7631_v2  ;;  %v1663_v2 = vrot.slane %v9923_v6, %v9859_v18 }
 0x534   : > { %6941 = vmatmul.mubr.msk.f32.vlgmr.msra.gmra.mrb[6].mxu0 %vm1263_vm4, %v1285_v58  ;;  %v7625_v58 = vpack.c.bf16 %v1698_v54, %v1696_v53 }
 0x535   : > { %1780 = vmatprep.mubr.f32.mxu0 %v9221_v0  ;;  %7602 = vmatpush1.bf16.msra.mxu0 %v7601_v4  ;;  %v1815_v4 = vld [vmem:[#allocation9 + $0x90] sm:$0xff] }
 0x536   : > { %7604 = vmatprep.subr.bf16.mxu0 %v7603_v5  ;;  %v1816_v5 = vld [vmem:[#allocation9 + $0x98] sm:$0xff] }
 0x607   : > { %v6942_v59 = vpop.f32.mrb[6].mxu0 }
 0x608   : > { %v1542_v60 = vpop.f32.mrb[7].mxu0 }
 0x609   : > { %6975 = vmatprep.mubr.f32.mxu1 %v1542_v60  ;;  %v1700_v60 = vld [vmem:[%s10703_s19 + $0xe0] sm:$0xff] }
 0x60a   : > { %6976 = vmatmul.mubr.f32.vlgmr.msra.gmra.mrb[4].mxu1 %v6942_v59  ;;  %v7627_v59 = vpack.c.bf16 %v1703_v57, %v1701_v56  ;;  %v7629_v47 = vpack.c.bf16 %v1702_v61, %v1700_v60 }
 0x6dd   : > { %v6977_v9 = vpop.f32.mrb[4].mxu1 }
 0x6de   : > { %v1621_v10 = vpop.f32.mrb[5].mxu1  ;;  %v1627_v11 = vadd.f32 %v6977_v9, %v1554_v7  ;;  %v7635_v9 = vpack.c.bf16 %v1816_v5, %v1815_v4  ;;  %v1669_v5 = vrot.slane %v9923_v6, %v9873_v36 }
 0x6df   : > { %v1622_v12 = vadd.f32 %v1621_v10, %v1554_v7  ;;  %v7633_v7 = vpack.c.bf16 %v1798_v3, %v1797_v1  ;;  %v1799_v10 = vld [vmem:[#allocation9 + $0x10] sm:$0xff] }
 0x6e0   : > { %v9931_v17 = vadd.f32 %v1627_v11, %v9843_v8  ;;  %v1678_v8 = vld [vmem:[%s10703_s19 + $0x30] sm:$0xff]  ;;  %v1800_v11 = vld [vmem:[#allocation9 + $0x18] sm:$0xff] }
 0x6e1   : > { %v9928_v16 = vadd.f32 %v1622_v12, %v9837_v26  ;;  %v1676_v26 = vld [vmem:[%s10703_s19 + $0x20] sm:$0xff]  ;;  %v1817_v12 = vld [vmem:[#allocation9 + $0xa0] sm:$0xff]  ;;  %7634 = vmatpush3.bf16.msra.mxu1 %v7633_v7 }
 0x6e2   : > { %v1639_v22 = vmul.f32 %v9931_v17, %v9931_v17  ;;  %v7605_v23 = vpack.c.bf16 %v1678_v8, %v1676_v26  ;;  %7636 = vmatprep.subr.bf16.mxu1 %v7635_v9  ;;  %v1801_v8 = vld [vmem:[#allocation9 + $0x20] sm:$0xff] }
 0x6e3   : > { %1632 = vadd.xlane.f32.xlu0 %v9928_v16  ;;  %v1638_v21 = vmul.f32 %v9928_v16, %v9928_v16 }
 0x6e4   : > { %7606 = vmatpush1.bf16.msra.mxu0 %v7605_v23  ;;  %v1802_v23 = vld [vmem:[#allocation9 + $0x28] sm:$0xff] }
 0x6e5   : > { %1640 = vadd.xlane.f32.xlu1 %v1638_v21  ;;  %7608 = vmatprep.subr.bf16.mxu0 %v7607_v27  ;;  %v1818_v21 = vld [vmem:[#allocation9 + $0xa8] sm:$0xff]  ;;  %v7641_v27 = vpack.c.bf16 %v1802_v23, %v1801_v8  ;;  %v1828_v23 = vld [vmem:[#allocation9 + $0xf8] sm:$0xff] }
 0x6e6   : > { %v7639_v26 = vpack.c.bf16 %v1818_v21, %v1817_v12 }
 0x6e7   : > { %1634 = vadd.xlane.f32.xlu0 %v9931_v17 }
 0x6e8   : > { %7610 = vmatpush1.bf16.msra.mxu0 %v7609_v30  ;;  %v1804_v30 = vld [vmem:[#allocation9 + $0x38] sm:$0xff] }
 0x6e9   : > { %1642 = vadd.xlane.f32.xlu1 %v1639_v22  ;;  %7612 = vmatprep.subr.bf16.mxu0 %v7611_v33  ;;  %v7637_v22 = vpack.c.bf16 %v1800_v11, %v1799_v10  ;;  %v7645_v33 = vpack.c.bf16 %v1804_v30, %v1803_v29  ;;  %v1704_v29 = vld [vmem:[#allocation7] sm:$0x3] }
 0x6ea   : > { %v1709_v30 = vrot.slane %v1704_v29, %v9852_v15  ;;  %v1713_v31 = vrot.slane %v1704_v29, %v9859_v18  ;;  %v1967_v29 = vld [vmem:[#allocation2 + $0x1f0] sm:$0xff] }
 0x6eb   : > { %7638 = vmatpush3.bf16.msra.mxu1 %v7637_v22  ;;  %v1809_v22 = vld [vmem:[#allocation9 + $0x60] sm:$0xff] }
 0x6ec   : > { %7614 = vmatpush1.bf16.msra.mxu0 %v7613_v37  ;;  %7640 = vmatprep.subr.bf16.mxu1 %v7639_v26  ;;  %v1806_v37 = vld [vmem:[#allocation9 + $0x48] sm:$0xff] }
 0x6ed   : > { %7616 = vmatprep.subr.bf16.mxu0 %v7615_v40  ;;  %v7649_v40 = vpack.c.bf16 %v1806_v37, %v1805_v35  ;;  %v1810_v26 = vld [vmem:[#allocation9 + $0x68] sm:$0xff] }
 0x6ee   : > { %v7657_v8 = vpack.c.bf16 %v1810_v26, %v1809_v22  ;;  %v1969_v22 = vld [vmem:[#allocation2 + $0x200] sm:$0xff] }
 0x6ef   : > { %7642 = vmatpush3.bf16.msra.mxu1 %v7641_v27  ;;  %v1812_v27 = vld [vmem:[#allocation9 + $0x78] sm:$0xff] }
 0x6f0   : > { %7618 = vmatpush1.bf16.msra.mxu0 %v7617_v43  ;;  %7644 = vmatprep.subr.bf16.mxu1 %v7643_v28  ;;  %v1808_v43 = vld [vmem:[#allocation9 + $0x58] sm:$0xff]  ;;  %v7661_v28 = vpack.c.bf16 %v1812_v27, %v1811_v25  ;;  %v1972_v27 = vld [vmem:[#allocation2 + $0x218] sm:$0xff] }
 0x6f1   : > { %7620 = vmatprep.subr.bf16.mxu0 %v7619_v46  ;;  %v7653_v46 = vpack.c.bf16 %v1808_v43, %v1807_v42  ;;  %v1961_v26 = vld [vmem:[#allocation2 + $0x1c0] sm:$0xff] }
 0x6f3   : > { %7646 = vmatpush3.bf16.msra.mxu1 %v7645_v33 }
 0x6f4   : > { %7622 = vmatpush1.bf16.msra.mxu0 %v7621_v51  ;;  %7648 = vmatprep.subr.bf16.mxu1 %v7647_v34 }
 0x6f5   : > { %7624 = vmatprep.subr.bf16.mxu0 %v7623_v55 }
 0x6f7   : > { %7650 = vmatpush3.bf16.msra.mxu1 %v7649_v40 }
 0x6f8   : > { %7626 = vmatpush1.bf16.msra.mxu0 %v7625_v58  ;;  %7652 = vmatprep.subr.bf16.mxu1 %v7651_v41 }
 0x6f9   : > { %7628 = vmatprep.subr.bf16.mxu0 %v7627_v59 }
 0x6fb   : > { %7654 = vmatpush3.bf16.msra.mxu1 %v7653_v46  ;;  %v1957_v46 = vld [vmem:[#allocation2 + $0x1a0] sm:$0xff] }
 0x6fc   : > { %7630 = vmatpush1.bf16.msra.mxu0 %v7629_v47  ;;  %7656 = vmatprep.subr.bf16.mxu1 %v7655_v48  ;;  %v1953_v48 = vld [vmem:[#allocation2 + $0x180] sm:$0xff] }
 0x6ff   : > { %7658 = vmatpush3.bf16.msra.mxu1 %v7657_v8 }
 0x770   : > { %v1633_v49 = vpop.xlane.xlu0 %1632 }
 0x771   : > { %v1636_v50 = vmul.f32 0.015625, %v1633_v49  ;;  %v7663_v49 = vpack.c.bf16 %v1957_v46, %v1954_v45  ;;  %v1984_v46 = vld [vmem:[#allocation2 + $0x278] sm:$0xff] }
 0x772   : > { %v1641_v51 = vpop.xlane.xlu1 %1640 }
 0x773   : > { %v1646_v52 = vmul.f32 %v1636_v50, %v1636_v50  ;;  %v1644_v53 = vmul.f32 0.015625, %v1641_v51  ;;  %v1652_v1 = vsub.f32 %v9928_v16, %v1636_v50  ;;  %v1956_v50 = vld [vmem:[#allocation2 + $0x198] sm:$0xff]  ;;  %7664 = vmatprep.subr.bf16.mxu0 %v7663_v49  ;;  %v1979_v49 = vld [vmem:[#allocation2 + $0x250] sm:$0xff] }
 0x774   : > { %v1635_v54 = vpop.xlane.xlu0 %1634  ;;  %v1960_v51 = vld [vmem:[#allocation2 + $0x1b8] sm:$0xff] }
 0x775   : > { %v1648_v55 = vsub.f32 %v1644_v53, %v1646_v52  ;;  %v1637_v56 = vmul.f32 0.015625, %v1635_v54  ;;  %v1963_v52 = vld [vmem:[#allocation2 + $0x1d0] sm:$0xff]  ;;  %v7665_v53 = vpack.c.bf16 %v1956_v50, %v1953_v48 }
 0x776   : > { %v1643_v57 = vpop.xlane.xlu1 %1642  ;;  %v7667_v54 = vpack.c.bf16 %v1963_v52, %v1960_v51  ;;  %v1987_v48 = vld [vmem:[#allocation2 + $0x290] sm:$0xff]  ;;  %v1982_v51 = vld [vmem:[#allocation2 + $0x268] sm:$0xff] }
 0x777   : > { %v1650_v58 = vmax.f32 %v1648_v55, 0.0  ;;  %v1647_v59 = vmul.f32 %v1637_v56, %v1637_v56  ;;  %v1645_v60 = vmul.f32 0.015625, %v1643_v57  ;;  %v1653_v7 = vsub.f32 %v9931_v17, %v1637_v56  ;;  %v1827_v17 = vld [vmem:[#allocation9 + $0xf0] sm:$0xff]  ;;  %v1955_v55 = vld [vmem:[#allocation2 + $0x190] sm:$0xff]  ;;  %v1958_v56 = vld [vmem:[#allocation2 + $0x1a8] sm:$0xff] }
 0x778   : > { %v7659_v24 = vpack.c.bf16 %v1828_v23, %v1827_v17  ;;  %v7695_v57 = vpack.c.bf16 %v1958_v56, %v1955_v55  ;;  %v1964_v17 = vld [vmem:[#allocation2 + $0x1d8] sm:$0xff]  ;;  %v1965_v23 = vld [vmem:[#allocation2 + $0x1e0] sm:$0xff]  ;;  %v7683_v50 = vpack.c.bf16 %v1987_v48, %v1984_v46  ;;  %v1983_v52 = vld [vmem:[#allocation2 + $0x270] sm:$0xff] }
 0x779   : > { %v1654_v61 = vadd.f32 1e-05, %v1650_v58  ;;  %v1649_v47 = vsub.f32 %v1645_v60, %v1647_v59  ;;  %v10034_v58 = vsub.s32 3, %v9847_v13  ;;  %v7699_v25 = vpack.c.bf16 %v1964_v17, %v1961_v26  ;;  %v1990_v56 = vld [vmem:[#allocation2 + $0x2a8] sm:$0xff]  ;;  %v1997_v26 = vld [vmem:[#allocation2 + $0x2e0] sm:$0xff] }
 0x77a   : > { %7660 = vmatprep.subr.bf16.mxu1 %v7659_v24  ;;  %v1968_v24 = vld [vmem:[#allocation2 + $0x1f8] sm:$0xff] }
 0x77b   : > { %8565 = vrsqrt.f32 %v1654_v61  ;;  %v1651_v62 = vmax.f32 %v1649_v47, 0.0  ;;  %7662 = vmatpush3.bf16.msra.mxu1 %v7661_v28  ;;  %v1832_v60 = vrot.slane %v9923_v6, %v10034_v58  ;;  %v1975_v28 = vld [vmem:[#allocation2 + $0x230] sm:$0xff] }
 0x77c   : > { %7696 = vmatprep.subr.bf16.mxu1 %v7695_v57 }
 0x77d   : > { %v1655_v63 = vadd.f32 1e-05, %v1651_v62 }
 0x77f   : > { %8567 = vrsqrt.f32 %v1655_v63 }
 0x785   : > { %v8566_v3 = vpop.eup %8565 }
 0x786   : > { %v1658_v4 = vmul.f32 %v8566_v3, %v1652_v1 }
 0x788   : > { %v1664_v9 = vmul.f32 %v1663_v2, %v1658_v4 }
 0x789   : > { %v8568_v10 = vpop.eup %8567 }
 0x78a   : > { %v10023_v11 = vadd.f32 %v1669_v5, %v1664_v9  ;;  %v1659_v12 = vmul.f32 %v8568_v10, %v1653_v7  ;;  %v1959_v10 = vld [vmem:[#allocation2 + $0x1b0] sm:$0xff] }
 0x78c   : > { %1781 = vmatmul.mubr.f32.vlgmr.msra.gmra.mrb[8].mxu0 %v10023_v11  ;;  %v1665_v21 = vmul.f32 %v1663_v2, %v1659_v12  ;;  %v1962_v12 = vld [vmem:[#allocation2 + $0x1c8] sm:$0xff] }
 0x78d   : > { %1786 = vmatprep.mubr.f32.mxu0 %v9221_v0  ;;  %7666 = vmatpush1.bf16.msra.mxu0 %v7665_v53  ;;  %v1986_v53 = vld [vmem:[#allocation2 + $0x288] sm:$0xff] }
 0x78e   : > { %v10027_v16 = vadd.f32 %v1669_v5, %v1665_v21  ;;  %7668 = vmatprep.subr.bf16.mxu0 %v7667_v54  ;;  %v1966_v21 = vld [vmem:[#allocation2 + $0x1e8] sm:$0xff]  ;;  %v7711_v54 = vpack.c.bf16 %v1982_v51, %v1979_v49  ;;  %v7685_v55 = vpack.c.bf16 %v1986_v53, %v1983_v52 }
 0x78f   : > { %v7671_v8 = vpack.c.bf16 %v1969_v22, %v1966_v21 }
 0x790   : > { %1787 = vmatmul.mubr.f32.gmra.mrb[10].mxu0 %v10027_v16 }
 0x791   : > { %2083 = vmatprep.mubr.f32.mxu0 %v9221_v0 }
 0x85f   : > { %v1782_v32 = vpop.f32.mrb[8].mxu0 }
 0x860   : > { %v1783_v33 = vadd.f32 %v1782_v32, %v1709_v30  ;;  %v1784_v34 = vpop.f32.mrb[9].mxu0  ;;  %v1971_v32 = vld [vmem:[#allocation2 + $0x210] sm:$0xff] }
 0x861   : > { %v1785_v35 = vadd.f32 %v1784_v34, %v1713_v31 }
 0x862   : > { %v1793_v39 = vmax.f32 %v1783_v33, 0.0  ;;  %v1974_v33 = vld [vmem:[#allocation2 + $0x228] sm:$0xff] }
 0x863   : > { %v1794_v37 = vmax.f32 %v1785_v35, 0.0  ;;  %v1788_v38 = vpop.f32.mrb[10].mxu0  ;;  %v7677_v35 = vpack.c.bf16 %v1974_v33, %v1971_v32 }
 0x864   : > { %v1789_v40 = vadd.f32 %v1788_v38, %v1709_v30  ;;  %v1790_v41 = vpop.f32.mrb[11].mxu0  ;;  %v7675_v30 = vpack.c.bf16 %v1975_v28, %v1972_v27  ;;  %v1981_v38 = vld [vmem:[#allocation2 + $0x260] sm:$0xff] }
 0x865   : > { %v1791_v42 = vadd.f32 %v1790_v41, %v1713_v31  ;;  %1897 = vmatprep.mubr.f32.mxu1 %v1794_v37  ;;  %v1970_v31 = vld [vmem:[#allocation2 + $0x208] sm:$0xff]  ;;  %v1976_v41 = vld [vmem:[#allocation2 + $0x238] sm:$0xff] }
 0x866   : > { %1898 = vmatmul.mubr.f32.vlgmr.msra.gmra.mrb[6].mxu1 %v1793_v39  ;;  %v1795_v44 = vmax.f32 %v1789_v40, 0.0  ;;  %v7703_v34 = vpack.c.bf16 %v1970_v31, %v1967_v29  ;;  %v1978_v37 = vld [vmem:[#allocation2 + $0x248] sm:$0xff]  ;;  %v1973_v39 = vld [vmem:[#allocation2 + $0x220] sm:$0xff] }
 0x867   : > { %v1796_v43 = vmax.f32 %v1791_v42, 0.0  ;;  %7698 = vmatpush3.bf16.msra.mxu1 %v7695_v57  ;;  %v7679_v40 = vpack.c.bf16 %v1981_v38, %v1978_v37  ;;  %v1977_v42 = vld [vmem:[#allocation2 + $0x240] sm:$0xff] }
 0x868   : > { %7700 = vmatprep.subr.bf16.mxu1 %v7699_v25  ;;  %v1993_v57 = vld [vmem:[#allocation2 + $0x2c0] sm:$0xff] }
 0x869   : > { %1902 = vmatprep.mubr.f32.mxu1 %v1796_v43  ;;  %v1980_v43 = vld [vmem:[#allocation2 + $0x258] sm:$0xff] }
 0x86a   : > { %1903 = vmatmul.mubr.f32.gmra.mrb[8].mxu1 %v1795_v44  ;;  %v7707_v44 = vpack.c.bf16 %v1976_v41, %v1973_v39  ;;  %v7681_v45 = vpack.c.bf16 %v1980_v43, %v1977_v42  ;;  %v10054_v41 = vsub.s32 5, %v9847_v13 }
 0x86b   : > { %7702 = vmatpush3.bf16.msra.mxu1 %v7699_v25 }
 0x86c   : > { %7704 = vmatprep.subr.bf16.mxu1 %v7703_v34  ;;  %v1947_v46 = vrot.slane %v9923_v6, %v10054_v41 }
 0x86f   : > { %7706 = vmatpush3.bf16.msra.mxu1 %v7703_v34 }
 0x870   : > { %7708 = vmatprep.subr.bf16.mxu1 %v7707_v44 }
 0x873   : > { %7710 = vmatpush3.bf16.msra.mxu1 %v7707_v44 }
 0x874   : > { %7712 = vmatprep.subr.bf16.mxu1 %v7711_v54 }
 0x877   : > { %7714 = vmatpush3.bf16.msra.mxu1 %v7711_v54 }
 0x939   : > { %v6521_v59 = vpop.f32.mrb[6].mxu1 }
 0x93a   : > { %v6522_v61 = vpop.f32.mrb[7].mxu1 }
 0x93b   : > { %v6523_v47 = vadd.f32 %v6522_v61, %v6521_v59  ;;  %v1985_v59 = vld [vmem:[#allocation2 + $0x280] sm:$0xff]  ;;  %v1988_v61 = vld [vmem:[#allocation2 + $0x298] sm:$0xff] }
 0x93d   : > { %v1900_v62 = vadd.f32 %v6523_v47, %v1832_v60  ;;  %v6524_v63 = vpop.f32.mrb[8].mxu1  ;;  %v1989_v47 = vld [vmem:[#allocation2 + $0x2a0] sm:$0xff] }
 0x93e   : > { %v6525_v1 = vpop.f32.mrb[9].mxu1 }
 0x93f   : > { %v6526_v2 = vadd.f32 %v6525_v1, %v6524_v63  ;;  %v10039_v3 = vadd.f32 %v1900_v62, %v10023_v11  ;;  %v7669_v11 = vpack.c.bf16 %v1962_v12, %v1959_v10  ;;  %v1992_v62 = vld [vmem:[#allocation2 + $0x2b8] sm:$0xff]  ;;  %v7715_v63 = vpack.c.bf16 %v1988_v61, %v1985_v59  ;;  %v1994_v10 = vld [vmem:[#allocation2 + $0x2c8] sm:$0xff]  ;;  %v1995_v12 = vld [vmem:[#allocation2 + $0x2d0] sm:$0xff] }
 0x940   : > { %v7689_v1 = vpack.c.bf16 %v1992_v62, %v1989_v47 }
 0x941   : > { %v1905_v4 = vadd.f32 %v6526_v2, %v1832_v60  ;;  %1910 = vadd.xlane.f32.xlu0 %v10039_v3  ;;  %v1916_v5 = vmul.f32 %v10039_v3, %v10039_v3  ;;  %7670 = vmatpush1.bf16.msra.mxu0 %v7669_v11  ;;  %v7687_v60 = vpack.c.bf16 %v1993_v57, %v1990_v56  ;;  %v1996_v2 = vld [vmem:[#allocation2 + $0x2d8] sm:$0xff]  ;;  %v1998_v11 = vld [vmem:[#allocation2 + $0x2e8] sm:$0xff] }
 0x942   : > { %7672 = vmatprep.subr.bf16.mxu0 %v7671_v8  ;;  %7716 = vmatprep.subr.bf16.mxu1 %v7715_v63  ;;  %v7693_v22 = vpack.c.bf16 %v1998_v11, %v1995_v12  ;;  %v2000_v8 = vld [vmem:[#allocation2 + $0x2f8] sm:$0xff] }
 0x943   : > { %1918 = vadd.xlane.f32.xlu1 %v1916_v5  ;;  %v10045_v7 = vadd.f32 %v1905_v4, %v10027_v16  ;;  %v7673_v16 = vpack.c.bf16 %v1968_v24, %v1965_v23  ;;  %v1999_v4 = vld [vmem:[#allocation2 + $0x2f0] sm:$0xff]  ;;  %7718 = vmatpush3.bf16.msra.mxu1 %v7715_v63  ;;  %v7723_v17 = vpack.c.bf16 %v2000_v8, %v1997_v26 }
 0x944   : > { %v1991_v5 = vld [vmem:[#allocation2 + $0x2b0] sm:$0xff] }
 0x945   : > { %1912 = vadd.xlane.f32.xlu0 %v10045_v7  ;;  %v1917_v9 = vmul.f32 %v10045_v7, %v10045_v7  ;;  %7674 = vmatpush1.bf16.msra.mxu0 %v7673_v16  ;;  %v7719_v21 = vpack.c.bf16 %v1994_v10, %v1991_v5 }
 0x946   : > { %7676 = vmatprep.subr.bf16.mxu0 %v7675_v30 }
 0x947   : > { %1920 = vadd.xlane.f32.xlu1 %v1917_v9  ;;  %v7691_v9 = vpack.c.bf16 %v1999_v4, %v1996_v2  ;;  %7720 = vmatprep.subr.bf16.mxu1 %v7719_v21 }
 0x948   : > { %7722 = vmatpush3.bf16.msra.mxu1 %v7719_v21 }
 0x949   : > { %7678 = vmatpush1.bf16.msra.mxu0 %v7677_v35  ;;  %7724 = vmatprep.subr.bf16.mxu1 %v7723_v17 }
 0x94a   : > { %7680 = vmatprep.subr.bf16.mxu0 %v7679_v40  ;;  %v10051_v40 = vsub.s32 4, %v9847_v13 }
 0x94c   : > { %7726 = vmatpush3.bf16.msra.mxu1 %v7723_v17  ;;  %v1941_v43 = vrot.slane %v9923_v6, %v10051_v40  ;;  %v2002_v6 = vld [vmem:[#allocation4 + $0x3] sm:$0x7] }
 0x94d   : > { %7682 = vmatpush1.bf16.msra.mxu0 %v7681_v45  ;;  %v2015_v57 = vrot.slane %v2002_v6, %v9873_v36  ;;  %v2011_v59 = vrot.slane %v2002_v6, %v9859_v18 }
 0x94e   : > { %7684 = vmatprep.subr.bf16.mxu0 %v7683_v50 }
 0x951   : > { %7686 = vmatpush1.bf16.msra.mxu0 %v7685_v55 }
 0x952   : > { %7688 = vmatprep.subr.bf16.mxu0 %v7687_v60 }
 0x955   : > { %7690 = vmatpush1.bf16.msra.mxu0 %v7689_v1 }
 0x956   : > { %7692 = vmatprep.subr.bf16.mxu0 %v7691_v9 }
 0x959   : > { %7694 = vmatpush1.bf16.msra.mxu0 %v7693_v22 }
 0x9ce   : > { %v1911_v23 = vpop.xlane.xlu0 %1910 }
 0x9cf   : > { %v1914_v24 = vmul.f32 0.015625, %v1911_v23 }
 0x9d0   : > { %v1919_v25 = vpop.xlane.xlu1 %1918 }
 0x9d1   : > { %v1924_v16 = vmul.f32 %v1914_v24, %v1914_v24  ;;  %v1922_v27 = vmul.f32 0.015625, %v1919_v25  ;;  %v1930_v42 = vsub.f32 %v10039_v3, %v1914_v24 }
 0x9d2   : > { %v1913_v28 = vpop.xlane.xlu0 %1912 }
 0x9d3   : > { %v1926_v29 = vsub.f32 %v1922_v27, %v1924_v16  ;;  %v1915_v30 = vmul.f32 0.015625, %v1913_v28 }
 0x9d4   : > { %v1921_v31 = vpop.xlane.xlu1 %1920 }
 0x9d5   : > { %v1928_v32 = vmax.f32 %v1926_v29, 0.0  ;;  %v1925_v33 = vmul.f32 %v1915_v30, %v1915_v30  ;;  %v1923_v34 = vmul.f32 0.015625, %v1921_v31  ;;  %v1931_v48 = vsub.f32 %v10045_v7, %v1915_v30 }
 0x9d6   : > { %v2007_v7 = vrot.slane %v2002_v6, %v9852_v15 }
 0x9d7   : > { %v1932_v35 = vadd.f32 1e-05, %v1928_v32  ;;  %v1927_v37 = vsub.f32 %v1923_v34, %v1925_v33 }
 0x9d9   : > { %8569 = vrsqrt.f32 %v1932_v35  ;;  %v1929_v38 = vmax.f32 %v1927_v37, 0.0 }
 0x9db   : > { %v1933_v39 = vadd.f32 1e-05, %v1929_v38 }
 0x9dd   : > { %8571 = vrsqrt.f32 %v1933_v39 }
 0x9e3   : > { %v8570_v44 = vpop.eup %8569 }
 0x9e4   : > { %v1936_v45 = vmul.f32 %v8570_v44, %v1930_v42 }
 0x9e6   : > { %v1942_v49 = vmul.f32 %v1941_v43, %v1936_v45 }
 0x9e7   : > { %v8572_v50 = vpop.eup %8571 }
 0x9e8   : > { %v10062_v51 = vadd.f32 %v1947_v46, %v1942_v49  ;;  %v1937_v52 = vmul.f32 %v8572_v50, %v1931_v48 }
 0x9ea   : > { %2084 = vmatmul.mubr.f32.vlgmr.msra.gmra.mrb[12].mxu0 %v10062_v51  ;;  %7010 = vmatprep.mubr.f32.mxu1 %v10062_v51  ;;  %v1943_v3 = vmul.f32 %v1941_v43, %v1937_v52 }
 0x9eb   : > { %2089 = vmatprep.mubr.f32.mxu0 %v9221_v0 }
 0x9ec   : > { %v10067_v53 = vadd.f32 %v1947_v46, %v1943_v3 }
 0x9ee   : > { %2090 = vmatmul.mubr.f32.gmra.mrb[14].mxu0 %v10067_v53  ;;  %7011 = vmatmul.mubr.f32.vlgmr.msra.gmra.mrb[10].mxu1 %v10067_v53 }
 0x9ef   : > { %2783 = vmatprep.mubr.f32.mxu1 %v9221_v0 }
 0xabd   : > { %v2085_v54 = vpop.f32.mrb[12].mxu0 }
 0xabe   : > { %v2086_v55 = vadd.f32 %v2085_v54, %v2007_v7  ;;  %v2087_v56 = vpop.f32.mrb[13].mxu0 }
 0xabf   : > { %v2088_v2 = vadd.f32 %v2087_v56, %v2011_v59 }
 0xac0   : > { %v2188_v60 = vmul.f32 %v9862_v19, %v2086_v55  ;;  %v2289_v23 = vmul.f32 %v9865_v20, %v2086_v55 }
 0xac1   : > { %v2091_v61 = vpop.f32.mrb[14].mxu0  ;;  %v7012_v47 = vpop.f32.mrb[10].mxu1 }
 0xac2   : > { %v2168_v62 = vadd.f32 %v7012_v47, %v2015_v57  ;;  %v2093_v63 = vpop.f32.mrb[15].mxu0  ;;  %v2162_v1 = vpop.f32.mrb[11].mxu1  ;;  %7017 = vmatprep.mubr.f32.mxu0 %v2188_v60  ;;  %v2092_v8 = vadd.f32 %v2091_v61, %v2007_v7  ;;  %v2172_v47 = vld [vmem:[#allocation6 + $0x80] sm:$0xff] }
 0xac3   : > { %v2094_v4 = vadd.f32 %v2093_v63, %v2011_v59  ;;  %v2163_v5 = vadd.f32 %v2162_v1, %v2015_v57 }
 0xac4   : > { %v2288_v9 = vmul.f32 %v9862_v19, %v2168_v62  ;;  %v2389_v10 = vmul.f32 %v9865_v20, %v2168_v62  ;;  %v2189_v17 = vmul.f32 %v9862_v19, %v2092_v8  ;;  %v2290_v24 = vmul.f32 %v9865_v20, %v2092_v8  ;;  %v2173_v62 = vld [vmem:[#allocation6 + $0x88] sm:$0xff]  ;;  %v2176_v8 = vld [vmem:[#allocation6 + $0xa0] sm:$0xff] }
 0xac5   : > { %v7727_v12 = vpack.c.bf16 %v2094_v4, %v2088_v2  ;;  %v2287_v11 = vmul.f32 %v9862_v19, %v2163_v5  ;;  %v2388_v21 = vmul.f32 %v9865_v20, %v2163_v5  ;;  %v7743_v4 = vpack.c.bf16 %v2173_v62, %v2172_v47 }
 0xac7   : > { %7728 = vmatprep.subr.bf16.mxu0 %v7727_v12  ;;  %v7735_v22 = vpack.c.bf16 %v2389_v10, %v2388_v21  ;;  %v10080_v26 = vpack.c.bf16 %v2288_v9, %v2287_v11  ;;  %v2175_v11 = vld [vmem:[#allocation6 + $0x98] sm:$0xff] }
 0xac8   : > { %7730 = vmatpush3.bf16.xpose.msra.mxu0 %v7727_v12 }
 0xac9   : > { %7732 = vmatprep.subr.bf16.mxu0 %v7727_v12 }
 0xacf   : > { %7018 = vmatmul.mubr.f32.vlgmr.msra.gmra.mrb[16].mxu0 %v2189_v17  ;;  %v2177_v17 = vld [vmem:[#allocation6 + $0xa8] sm:$0xff] }
 0xad0   : > { %7734 = vmatpush3.bf16.xpose.msra.mxu0 %v7727_v12  ;;  %7024 = vmatprep.mubr.f32.mxu0 %v2289_v23  ;;  %v2174_v12 = vld [vmem:[#allocation6 + $0x90] sm:$0xff]  ;;  %v7751_v23 = vpack.c.bf16 %v2177_v17, %v2176_v8  ;;  %v6411_v17 = vld [vmem:[%s10703_s19 + $0x188] sm:$0xff] }
 0xad1   : > { %7736 = vmatprep.subr.bf16.mxu0 %v7735_v22 }
 0xad7   : > { %7025 = vmatmul.mubr.f32.vlgmr.msra.gmra.mrb[18].mxu0 %v2290_v24  ;;  %v2178_v24 = vld [vmem:[#allocation6 + $0xb0] sm:$0xff] }
 0xad8   : > { %7738 = vmatpush3.bf16.msra.mxu0 %v7735_v22  ;;  %v7747_v22 = vpack.c.bf16 %v2175_v11, %v2174_v12  ;;  %v6409_v12 = vld [vmem:[%s10703_s19 + $0x178] sm:$0xff] }
 0xad9   : > { %7740 = vmatprep.subr.bf16.mxu0 %v10080_v26 }
 0xba2   : > { %v7019_v25 = vpop.f32.mrb[16].mxu0 }
 0xba3   : > { %v2256_v16 = vpop.f32.mrb[17].mxu0  ;;  %v2268_v31 = vsel %vm1263_vm4, %v7019_v25, -inf }
 0xba4   : > { %v2265_v32 = vsel %vm1263_vm4, %v2256_v16, -inf }
 0xbaa   : > { %v7026_v27 = vpop.f32.mrb[18].mxu0 }
 0xbab   : > { %v2357_v28 = vpop.f32.mrb[19].mxu0  ;;  %v2369_v29 = vsel %vm1263_vm4, %v7026_v27, -inf }
 0xbac   : > { %2370 = vmax.xlane.f32.xlu1 %v2369_v29  ;;  %v2366_v30 = vsel %vm1263_vm4, %v2357_v28, -inf  ;;  %v2182_v29 = vld [vmem:[#allocation6 + $0xd0] sm:$0xff] }
 0xbad   : > { %2367 = vmax.xlane.f32.xlu0 %v2366_v30  ;;  %v2183_v30 = vld [vmem:[#allocation6 + $0xd8] sm:$0xff] }
 0xbb0   : > { %2269 = vmax.xlane.f32.xlu1 %v2268_v31  ;;  %v7763_v31 = vpack.c.bf16 %v2183_v30, %v2182_v29  ;;  %v6414_v30 = vld [vmem:[%s10703_s19 + $0x1a0] sm:$0xff] }
 0xbb1   : > { %2266 = vmax.xlane.f32.xlu0 %v2265_v32  ;;  %v2184_v32 = vld [vmem:[#allocation6 + $0xe0] sm:$0xff] }
 0xc39   : > { %v2371_v33 = vpop.xlane.xlu1 %2370 }
 0xc3a   : > { %v2373_v34 = vsub.f32 %v7026_v27, %v2371_v33  ;;  %v2368_v35 = vpop.xlane.xlu0 %2367  ;;  %v2181_v27 = vld [vmem:[#allocation6 + $0xc8] sm:$0xff] }
 0xc3b   : > { %v2372_v37 = vsub.f32 %v2357_v28, %v2368_v35  ;;  %v2185_v33 = vld [vmem:[#allocation6 + $0xe8] sm:$0xff]  ;;  %v2186_v35 = vld [vmem:[#allocation6 + $0xf0] sm:$0xff] }
 0xc3c   : > { %v2376_v38 = vmul.f32 1.442695, %v2373_v34  ;;  %v7767_v34 = vpack.c.bf16 %v2185_v33, %v2184_v32  ;;  %v6419_v33 = vld [vmem:[%s10703_s19 + $0x1c8] sm:$0xff] }
 0xc3d   : > { %v2374_v39 = vmul.f32 1.442695, %v2372_v37  ;;  %v2270_v42 = vpop.xlane.xlu1 %2269  ;;  %v2187_v37 = vld [vmem:[#allocation6 + $0xf8] sm:$0xff] }
 0xc3e   : > { %8573 = vpow2.f32 %v2376_v38  ;;  %v2272_v43 = vsub.f32 %v7019_v25, %v2270_v42  ;;  %v2267_v44 = vpop.xlane.xlu0 %2266  ;;  %v2179_v25 = vld [vmem:[#allocation6 + $0xb8] sm:$0xff]  ;;  %v7771_v38 = vpack.c.bf16 %v2187_v37, %v2186_v35 }
 0xc3f   : > { %8575 = vpow2.f32 %v2374_v39  ;;  %v2271_v45 = vsub.f32 %v2256_v16, %v2267_v44  ;;  %v2180_v16 = vld [vmem:[#allocation6 + $0xc0] sm:$0xff]  ;;  %v6397_v44 = vld [vmem:[%s10703_s19 + $0x118] sm:$0xff] }
 0xc40   : > { %v2275_v46 = vmul.f32 1.442695, %v2272_v43  ;;  %v7759_v28 = vpack.c.bf16 %v2181_v27, %v2180_v16  ;;  %v6395_v43 = vld [vmem:[%s10703_s19 + $0x108] sm:$0xff]  ;;  %v6418_v35 = vld [vmem:[%s10703_s19 + $0x1c0] sm:$0xff] }
 0xc41   : > { %v2273_v48 = vmul.f32 1.442695, %v2271_v45  ;;  %v6394_v45 = vld [vmem:[%s10703_s19 + $0x100] sm:$0xff]  ;;  %v6415_v27 = vld [vmem:[%s10703_s19 + $0x1a8] sm:$0xff] }
 0xc42   : > { %8577 = vpow2.f32 %v2275_v46  ;;  %v7775_v46 = vpack.c.bf16 %v6397_v44, %v6395_v43 }
 0xc43   : > { %8579 = vpow2.f32 %v2273_v48  ;;  %v6396_v48 = vld [vmem:[%s10703_s19 + $0x110] sm:$0xff] }
 0xc44   : > { %7776 = vmatprep.subr.bf16.mxu1 %v7775_v46  ;;  %v6424_v46 = vld [vmem:[%s10703_s19 + $0x1f0] sm:$0xff] }
 0xc48   : > { %v8574_v49 = vpop.eup %8573 }
 0xc49   : > { %v8576_v50 = vpop.eup %8575  ;;  %v2381_v52 = vsel %vm1263_vm4, %v8574_v49, 0.0 }
 0xc4a   : > { %2382 = vadd.xlane.f32.xlu1 %v2381_v52  ;;  %v2378_v3 = vsel %vm1263_vm4, %v8576_v50, 0.0  ;;  %v7777_v52 = vpack.c.bf16 %v6396_v48, %v6394_v45  ;;  %v6422_v45 = vld [vmem:[%s10703_s19 + $0x1e0] sm:$0xff] }
 0xc4b   : > { %2379 = vadd.xlane.f32.xlu0 %v2378_v3  ;;  %v2958_v48 = vld [vmem:[#allocation12 + $0x8] sm:$0xff] }
 0xc4c   : > { %v8578_v6 = vpop.eup %8577  ;;  %7778 = vmatpush1.bf16.msra.mxu1 %v7777_v52 }
 0xc4d   : > { %v8580_v7 = vpop.eup %8579  ;;  %v2280_v54 = vsel %vm1263_vm4, %v8578_v6, 0.0 }
 0xc4e   : > { %2281 = vadd.xlane.f32.xlu1 %v2280_v54  ;;  %v2277_v55 = vsel %vm1263_vm4, %v8580_v7, 0.0 }
 0xc4f   : > { %2278 = vadd.xlane.f32.xlu0 %v2277_v55  ;;  %v10123_v55 = vld [vmem:[#allocation10 + $0x8] sm:$0xff] }
 0xcd7   : > { %v2383_v56 = vpop.xlane.xlu1 %2382 }
 0xcd8   : > { %8581 = vrcp.f32 %v2383_v56  ;;  %v2380_v57 = vpop.xlane.xlu0 %2379  ;;  %v2555_v56 = vrot.slane %v10123_v55, %v9852_v15 }
 0xcd9   : > { %8583 = vrcp.f32 %v2380_v57 }
 0xcdb   : > { %v2282_v60 = vpop.xlane.xlu1 %2281 }
 0xcdc   : > { %v2279_v59 = vpop.xlane.xlu0 %2278 }
 0xcdd   : > { %8585 = vrcp.f32 %v2279_v59 }
 0xcde   : > { %8587 = vrcp.f32 %v2282_v60 }
 0xce2   : > { %v8582_v61 = vpop.eup %8581 }
 0xce3   : > { %v8584_v63 = vpop.eup %8583  ;;  %v2387_v2 = vmul.f32 %v8582_v61, %v8574_v49  ;;  %v6399_v49 = vld [vmem:[%s10703_s19 + $0x128] sm:$0xff] }
 0xce4   : > { %v2386_v1 = vmul.f32 %v8584_v63, %v8576_v50  ;;  %v6401_v50 = vld [vmem:[%s10703_s19 + $0x138] sm:$0xff] }
 0xce5   : > { %v7779_v3 = vpack.c.bf16 %v6401_v50, %v6399_v49  ;;  %v2961_v49 = vld [vmem:[#allocation12 + $0x20] sm:$0xff]  ;;  %v7805_v50 = vpack.c.bf16 %v6424_v46, %v6422_v45 }
 0xce6   : > { %7031 = vmatprep.mubr.msk.f32.mxu0 %vm1263_vm4, %v2386_v1  ;;  %v7839_v52 = vpack.c.bf16 %v2961_v49, %v2958_v48 }
 0xce7   : > { %v8586_v5 = vpop.eup %8585  ;;  %7032 = vmatmul.mubr.msk.f32.vlgmr.msra.gmra.mrb[20].mxu0 %vm1263_vm4, %v2387_v2  ;;  %7780 = vmatprep.subr.bf16.mxu1 %v7779_v3  ;;  %v2817_v3 = vld [vmem:[#allocation9 + $0x180] sm:$0xff] }
 0xce8   : > { %7742 = vmatpush3.bf16.msra.mxu0 %v10080_v26  ;;  %v2285_v9 = vmul.f32 %v8586_v5, %v8580_v7  ;;  %v8588_v10 = vpop.eup %8587  ;;  %v7755_v26 = vpack.c.bf16 %v2179_v25, %v2178_v24  ;;  %v6400_v7 = vld [vmem:[%s10703_s19 + $0x130] sm:$0xff]  ;;  %v6410_v25 = vld [vmem:[%s10703_s19 + $0x180] sm:$0xff] }
 0xce9   : > { %7744 = vmatprep.subr.bf16.mxu0 %v7743_v4  ;;  %v2286_v21 = vmul.f32 %v8588_v10, %v8578_v6  ;;  %v6398_v6 = vld [vmem:[%s10703_s19 + $0x120] sm:$0xff]  ;;  %v6404_v5 = vld [vmem:[%s10703_s19 + $0x150] sm:$0xff]  ;;  %v6407_v10 = vld [vmem:[%s10703_s19 + $0x168] sm:$0xff] }
 0xcea   : > { %7038 = vmatprep.mubr.msk.f32.mxu0 %vm1263_vm4, %v2285_v9  ;;  %v7781_v54 = vpack.c.bf16 %v6400_v7, %v6398_v6  ;;  %v7787_v11 = vpack.c.bf16 %v6409_v12, %v6407_v10  ;;  %v2818_v6 = vld [vmem:[#allocation9 + $0x188] sm:$0xff]  ;;  %v2801_v7 = vld [vmem:[#allocation9 + $0x100] sm:$0xff]  ;;  %v2823_v10 = vld [vmem:[#allocation9 + $0x1b0] sm:$0xff] }
 0xceb   : > { %v2824_v12 = vld [vmem:[#allocation9 + $0x1b8] sm:$0xff] }
 0xcec   : > { %7782 = vmatpush1.bf16.msra.mxu1 %v7781_v54  ;;  %v7807_v54 = vpack.c.bf16 %v2818_v6, %v2817_v3 }
 0xcef   : > { %7039 = vmatmul.mubr.msk.f32.vlgmr.msra.gmra.mrb[20].mxu0 %vm1263_vm4, %v2286_v21  ;;  %v6406_v21 = vld [vmem:[%s10703_s19 + $0x160] sm:$0xff] }
 0xcf0   : > { %7746 = vmatpush3.bf16.msra.mxu0 %v7743_v4  ;;  %v6402_v4 = vld [vmem:[%s10703_s19 + $0x140] sm:$0xff] }
 0xcf1   : > { %7748 = vmatprep.subr.bf16.mxu0 %v7747_v22  ;;  %v7785_v9 = vpack.c.bf16 %v6404_v5, %v6402_v4  ;;  %v2805_v5 = vld [vmem:[#allocation9 + $0x120] sm:$0xff] }
 0xcf4   : > { %7750 = vmatpush3.bf16.msra.mxu0 %v7747_v22  ;;  %v6408_v22 = vld [vmem:[%s10703_s19 + $0x170] sm:$0xff] }
 0xcf5   : > { %7752 = vmatprep.subr.bf16.mxu0 %v7751_v23  ;;  %v7789_v8 = vpack.c.bf16 %v6408_v22, %v6406_v21  ;;  %v7819_v21 = vpack.c.bf16 %v2824_v12, %v2823_v10  ;;  %v2807_v22 = vld [vmem:[#allocation9 + $0x130] sm:$0xff] }
 0xcf8   : > { %7754 = vmatpush3.bf16.msra.mxu0 %v7751_v23  ;;  %v6413_v23 = vld [vmem:[%s10703_s19 + $0x198] sm:$0xff] }
 0xcf9   : > { %7756 = vmatprep.subr.bf16.mxu0 %v7755_v26  ;;  %v7791_v24 = vpack.c.bf16 %v6413_v23, %v6411_v17  ;;  %v2825_v17 = vld [vmem:[#allocation9 + $0x1c0] sm:$0xff]  ;;  %v2826_v23 = vld [vmem:[#allocation9 + $0x1c8] sm:$0xff] }
 0xcfc   : > { %7758 = vmatpush3.bf16.msra.mxu0 %v7755_v26  ;;  %v6412_v26 = vld [vmem:[%s10703_s19 + $0x190] sm:$0xff] }
 0xcfd   : > { %7760 = vmatprep.subr.bf16.mxu0 %v7759_v28  ;;  %v7793_v16 = vpack.c.bf16 %v6412_v26, %v6410_v25  ;;  %v7823_v25 = vpack.c.bf16 %v2826_v23, %v2825_v17  ;;  %v2809_v26 = vld [vmem:[#allocation9 + $0x140] sm:$0xff]  ;;  %v2973_v17 = vld [vmem:[#allocation12 + $0x80] sm:$0xff] }
 0xd00   : > { %7762 = vmatpush3.bf16.msra.mxu0 %v7759_v28  ;;  %v6417_v28 = vld [vmem:[%s10703_s19 + $0x1b8] sm:$0xff] }
 0xd01   : > { %7764 = vmatprep.subr.bf16.mxu0 %v7763_v31  ;;  %v7795_v29 = vpack.c.bf16 %v6417_v28, %v6415_v27  ;;  %v2827_v27 = vld [vmem:[#allocation9 + $0x1d0] sm:$0xff]  ;;  %v2828_v28 = vld [vmem:[#allocation9 + $0x1d8] sm:$0xff] }
 0xd04   : > { %7766 = vmatpush3.bf16.msra.mxu0 %v7763_v31  ;;  %v6416_v31 = vld [vmem:[%s10703_s19 + $0x1b0] sm:$0xff] }
 0xd05   : > { %7768 = vmatprep.subr.bf16.mxu0 %v7767_v34  ;;  %v7797_v32 = vpack.c.bf16 %v6416_v31, %v6414_v30  ;;  %v7827_v30 = vpack.c.bf16 %v2828_v28, %v2827_v27  ;;  %v2811_v31 = vld [vmem:[#allocation9 + $0x150] sm:$0xff]  ;;  %v2976_v27 = vld [vmem:[#allocation12 + $0x98] sm:$0xff]  ;;  %v2979_v28 = vld [vmem:[#allocation12 + $0xb0] sm:$0xff] }
 0xd08   : > { %7770 = vmatpush3.bf16.msra.mxu0 %v7767_v34  ;;  %v6421_v34 = vld [vmem:[%s10703_s19 + $0x1d8] sm:$0xff] }
 0xd09   : > { %7772 = vmatprep.subr.bf16.mxu0 %v7771_v38  ;;  %v7799_v37 = vpack.c.bf16 %v6421_v34, %v6419_v33  ;;  %v2829_v33 = vld [vmem:[#allocation9 + $0x1e0] sm:$0xff]  ;;  %v2830_v34 = vld [vmem:[#allocation9 + $0x1e8] sm:$0xff] }
 0xd0c   : > { %7774 = vmatpush3.bf16.msra.mxu0 %v7771_v38  ;;  %v6420_v38 = vld [vmem:[%s10703_s19 + $0x1d0] sm:$0xff] }
 0xd0d   : > { %v7801_v43 = vpack.c.bf16 %v6420_v38, %v6418_v35  ;;  %7808 = vmatprep.subr.bf16.mxu0 %v7807_v54 }
 0xdc2   : > { %v7040_v39 = vpop.f32.mrb[20].mxu0 }
 0xdc3   : > { %v2543_v42 = vpop.f32.mrb[21].mxu0 }
 0xdc4   : > { %7073 = vmatprep.mubr.f32.mxu0 %v2543_v42  ;;  %v6425_v42 = vld [vmem:[%s10703_s19 + $0x1f8] sm:$0xff] }
 0xdc5   : > { %7074 = vmatmul.mubr.f32.vlgmr.msra.gmra.mrb[22].mxu0 %v7040_v39  ;;  %v6423_v39 = vld [vmem:[%s10703_s19 + $0x1e8] sm:$0xff] }
 0xdc6   : > { %v7803_v44 = vpack.c.bf16 %v6425_v42, %v6423_v39 }
 0xe98   : > { %v7075_v57 = vpop.f32.mrb[22].mxu0 }
 0xe99   : > { %v2622_v59 = vpop.f32.mrb[23].mxu0  ;;  %v2628_v60 = vadd.f32 %v7075_v57, %v2555_v56  ;;  %v2819_v57 = vld [vmem:[#allocation9 + $0x190] sm:$0xff] }
 0xe9a   : > { %v2623_v61 = vadd.f32 %v2622_v59, %v2555_v56  ;;  %v2802_v56 = vld [vmem:[#allocation9 + $0x108] sm:$0xff]  ;;  %v2820_v59 = vld [vmem:[#allocation9 + $0x198] sm:$0xff] }
 0xe9b   : > { %v10131_v62 = vadd.f32 %v2628_v60, %v10067_v53  ;;  %v6405_v53 = vld [vmem:[%s10703_s19 + $0x158] sm:$0xff]  ;;  %v7809_v60 = vpack.c.bf16 %v2802_v56, %v2801_v7 }
 0xe9c   : > { %v10128_v47 = vadd.f32 %v2623_v61, %v10062_v51  ;;  %v6403_v51 = vld [vmem:[%s10703_s19 + $0x148] sm:$0xff]  ;;  %v7811_v61 = vpack.c.bf16 %v2820_v59, %v2819_v57  ;;  %v2664_v59 = vrot.slane %v10123_v55, %v9859_v18 }
 0xe9d   : > { %v2640_v1 = vmul.f32 %v10131_v62, %v10131_v62  ;;  %v7783_v2 = vpack.c.bf16 %v6405_v53, %v6403_v51  ;;  %v2821_v51 = vld [vmem:[#allocation9 + $0x1a0] sm:$0xff]  ;;  %v2822_v53 = vld [vmem:[#allocation9 + $0x1a8] sm:$0xff]  ;;  %7810 = vmatpush3.bf16.msra.mxu0 %v7809_v60 }
 0xe9e   : > { %2633 = vadd.xlane.f32.xlu0 %v10128_v47  ;;  %v2639_v63 = vmul.f32 %v10128_v47, %v10128_v47  ;;  %7812 = vmatprep.subr.bf16.mxu0 %v7811_v61  ;;  %v7815_v4 = vpack.c.bf16 %v2822_v53, %v2821_v51  ;;  %v2960_v51 = vld [vmem:[#allocation12 + $0x18] sm:$0xff] }
 0xe9f   : > { %7784 = vmatprep.subr.bf16.mxu1 %v7783_v2  ;;  %v2964_v53 = vld [vmem:[#allocation12 + $0x38] sm:$0xff] }
 0xea0   : > { %2641 = vadd.xlane.f32.xlu1 %v2639_v63  ;;  %7786 = vmatpush1.bf16.msra.mxu1 %v7785_v9  ;;  %v2803_v63 = vld [vmem:[#allocation9 + $0x110] sm:$0xff]  ;;  %v2806_v9 = vld [vmem:[#allocation9 + $0x128] sm:$0xff] }
 0xea1   : > { %7788 = vmatprep.subr.bf16.mxu1 %v7787_v11  ;;  %v7817_v11 = vpack.c.bf16 %v2806_v9, %v2805_v5 }
 0xea2   : > { %2635 = vadd.xlane.f32.xlu0 %v10131_v62 }
 0xea4   : > { %2643 = vadd.xlane.f32.xlu1 %v2640_v1  ;;  %7790 = vmatpush1.bf16.msra.mxu1 %v7789_v8  ;;  %v2804_v1 = vld [vmem:[#allocation9 + $0x118] sm:$0xff] }
 0xea5   : > { %7792 = vmatprep.subr.bf16.mxu1 %v7791_v24  ;;  %v7813_v2 = vpack.c.bf16 %v2804_v1, %v2803_v63  ;;  %v2808_v8 = vld [vmem:[#allocation9 + $0x138] sm:$0xff]  ;;  %v2670_v63 = vrot.slane %v10123_v55, %v9873_v36  ;;  %v2957_v1 = vld [vmem:[#allocation12] sm:$0xff] }
 0xea6   : > { %v7821_v24 = vpack.c.bf16 %v2808_v8, %v2807_v22  ;;  %v7841_v10 = vpack.c.bf16 %v2960_v51, %v2957_v1  ;;  %v2966_v22 = vld [vmem:[#allocation12 + $0x48] sm:$0xff]  ;;  %v2813_v51 = vld [vmem:[#allocation9 + $0x160] sm:$0xff] }
 0xea7   : > { %7814 = vmatpush3.bf16.msra.mxu0 %v7813_v2  ;;  %v2967_v2 = vld [vmem:[#allocation12 + $0x50] sm:$0xff]  ;;  %v2970_v8 = vld [vmem:[#allocation12 + $0x68] sm:$0xff] }
 0xea8   : > { %7794 = vmatpush1.bf16.msra.mxu1 %v7793_v16  ;;  %7816 = vmatprep.subr.bf16.mxu0 %v7815_v4  ;;  %v2810_v16 = vld [vmem:[#allocation9 + $0x148] sm:$0xff]  ;;  %v10231_v1 = vld [vmem:[%s929_s23] sm:$0xff] }
 0xea9   : > { %7796 = vmatprep.subr.bf16.mxu1 %v7795_v29  ;;  %v7825_v29 = vpack.c.bf16 %v2810_v16, %v2809_v26  ;;  %v2969_v26 = vld [vmem:[#allocation12 + $0x60] sm:$0xff]  ;;  %v2972_v16 = vld [vmem:[#allocation12 + $0x78] sm:$0xff] }
 0xeab   : > { %7818 = vmatpush3.bf16.msra.mxu0 %v7817_v11 }
 0xeac   : > { %7798 = vmatpush1.bf16.msra.mxu1 %v7797_v32  ;;  %7820 = vmatprep.subr.bf16.mxu0 %v7819_v21  ;;  %v2812_v32 = vld [vmem:[#allocation9 + $0x158] sm:$0xff]  ;;  %v2963_v21 = vld [vmem:[#allocation12 + $0x30] sm:$0xff] }
 0xead   : > { %7800 = vmatprep.subr.bf16.mxu1 %v7799_v37  ;;  %v7829_v35 = vpack.c.bf16 %v2812_v32, %v2811_v31  ;;  %v7831_v37 = vpack.c.bf16 %v2830_v34, %v2829_v33  ;;  %v2975_v31 = vld [vmem:[#allocation12 + $0x90] sm:$0xff]  ;;  %v2978_v32 = vld [vmem:[#allocation12 + $0xa8] sm:$0xff]  ;;  %v2985_v34 = vld [vmem:[#allocation12 + $0xe0] sm:$0xff] }
 0xeae   : > { %v2982_v33 = vld [vmem:[#allocation12 + $0xc8] sm:$0xff] }
 0xeaf   : > { %7822 = vmatpush3.bf16.msra.mxu0 %v7821_v24  ;;  %v7845_v24 = vpack.c.bf16 %v2966_v22, %v2963_v21  ;;  %v2707_v21 = vld [vmem:[#allocation7 + $0x2] sm:$0x3] }
 0xeb0   : > { %7802 = vmatpush1.bf16.msra.mxu1 %v7801_v43  ;;  %7824 = vmatprep.subr.bf16.mxu0 %v7823_v25  ;;  %v7847_v25 = vpack.c.bf16 %v2973_v17, %v2970_v8  ;;  %v2712_v22 = vrot.slane %v2707_v21, %v9852_v15  ;;  %v2716_v8 = vrot.slane %v2707_v21, %v9859_v18 }
 0xeb1   : > { %7804 = vmatprep.subr.bf16.mxu1 %v7803_v44 }
 0xeb3   : > { %7826 = vmatpush3.bf16.msra.mxu0 %v7825_v29  ;;  %v7849_v29 = vpack.c.bf16 %v2972_v16, %v2969_v26 }
 0xeb4   : > { %7806 = vmatpush1.bf16.msra.mxu1 %v7805_v50  ;;  %7828 = vmatprep.subr.bf16.mxu0 %v7827_v30  ;;  %v7851_v30 = vpack.c.bf16 %v2979_v28, %v2976_v27 }
 0xeb5   : > { %7840 = vmatprep.subr.bf16.mxu1 %v7839_v52 }
 0xeb7   : > { %7830 = vmatpush3.bf16.msra.mxu0 %v7829_v35  ;;  %v7853_v35 = vpack.c.bf16 %v2978_v32, %v2975_v31 }
 0xeb8   : > { %7832 = vmatprep.subr.bf16.mxu0 %v7831_v37  ;;  %v7855_v37 = vpack.c.bf16 %v2985_v34, %v2982_v33  ;;  %v10241_v33 = vld [vmem:[#allocation13] sm:$0x7] }
 0xeb9   : > { %v3010_v34 = vrot.slane %v10241_v33, %v9852_v15 }
 0xf2b   : > { %v2634_v38 = vpop.xlane.xlu0 %2633 }
 0xf2c   : > { %v2637_v39 = vmul.f32 0.015625, %v2634_v38  ;;  %v2981_v38 = vld [vmem:[#allocation12 + $0xc0] sm:$0xff] }
 0xf2d   : > { %v2642_v42 = vpop.xlane.xlu1 %2641 }
 0xf2e   : > { %v2647_v43 = vmul.f32 %v2637_v39, %v2637_v39  ;;  %v2645_v44 = vmul.f32 0.015625, %v2642_v42  ;;  %v2653_v57 = vsub.f32 %v10128_v47, %v2637_v39  ;;  %v7843_v47 = vpack.c.bf16 %v2967_v2, %v2964_v53  ;;  %v2984_v39 = vld [vmem:[#allocation12 + $0xd8] sm:$0xff] }
 0xf2f   : > { %v2636_v45 = vpop.xlane.xlu0 %2635  ;;  %v2988_v42 = vld [vmem:[#allocation12 + $0xf8] sm:$0xff] }
 0xf30   : > { %v2649_v46 = vsub.f32 %v2645_v44, %v2647_v43  ;;  %v2638_v48 = vmul.f32 0.015625, %v2636_v45  ;;  %v2991_v43 = vld [vmem:[#allocation12 + $0x110] sm:$0xff]  ;;  %v7857_v44 = vpack.c.bf16 %v2984_v39, %v2981_v38  ;;  %v2814_v53 = vld [vmem:[#allocation9 + $0x168] sm:$0xff] }
 0xf31   : > { %v2644_v49 = vpop.xlane.xlu1 %2643  ;;  %v7859_v45 = vpack.c.bf16 %v2991_v43, %v2988_v42  ;;  %v7833_v2 = vpack.c.bf16 %v2814_v53, %v2813_v51  ;;  %v2989_v51 = vld [vmem:[#allocation12 + $0x100] sm:$0xff]  ;;  %v2992_v53 = vld [vmem:[#allocation12 + $0x118] sm:$0xff] }
 0xf32   : > { %v2651_v50 = vmax.f32 %v2649_v46, 0.0  ;;  %v2648_v52 = vmul.f32 %v2638_v48, %v2638_v48  ;;  %v2646_v3 = vmul.f32 0.015625, %v2644_v49  ;;  %v2654_v4 = vsub.f32 %v10131_v62, %v2638_v48  ;;  %v2987_v46 = vld [vmem:[#allocation12 + $0xf0] sm:$0xff]  ;;  %v2990_v48 = vld [vmem:[#allocation12 + $0x108] sm:$0xff] }
 0xf33   : > { %v2994_v49 = vld [vmem:[#allocation12 + $0x128] sm:$0xff]  ;;  %7834 = vmatpush3.bf16.msra.mxu0 %v7833_v2  ;;  %v7887_v2 = vpack.c.bf16 %v2992_v53, %v2989_v51 }
 0xf34   : > { %v2655_v6 = vadd.f32 1e-05, %v2651_v50  ;;  %v2650_v7 = vsub.f32 %v2646_v3, %v2648_v52  ;;  %v2997_v50 = vld [vmem:[#allocation12 + $0x140] sm:$0xff]  ;;  %v7861_v52 = vpack.c.bf16 %v2990_v48, %v2987_v46  ;;  %v2962_v46 = vld [vmem:[#allocation12 + $0x28] sm:$0xff] }
 0xf35   : > { %v7863_v3 = vpack.c.bf16 %v2997_v50, %v2994_v49  ;;  %v2965_v48 = vld [vmem:[#allocation12 + $0x40] sm:$0xff]  ;;  %v9223_v49 = vmov 0.0|0.0   ;;  %v3164_v53 = vld [vmem:[#allocation15 + $0x8] sm:$0xff] }
 0xf36   : > { %8589 = vrsqrt.f32 %v2655_v6  ;;  %v2652_v54 = vmax.f32 %v2650_v7, 0.0  ;;  %v2993_v6 = vld [vmem:[#allocation12 + $0x120] sm:$0xff]  ;;  %v2996_v7 = vld [vmem:[#allocation12 + $0x138] sm:$0xff] }
 0xf38   : > { %v2656_v56 = vadd.f32 1e-05, %v2652_v54  ;;  %v3000_v54 = vld [vmem:[#allocation12 + $0x158] sm:$0xff] }
 0xf3a   : > { %8591 = vrsqrt.f32 %v2656_v56  ;;  %v3003_v56 = vld [vmem:[#allocation12 + $0x170] sm:$0xff] }
 0xf40   : > { %v8590_v60 = vpop.eup %8589 }
 0xf41   : > { %v2659_v61 = vmul.f32 %v8590_v60, %v2653_v57  ;;  %v7865_v57 = vpack.c.bf16 %v2996_v7, %v2993_v6  ;;  %v2999_v60 = vld [vmem:[#allocation12 + $0x150] sm:$0xff]  ;;  %v2974_v7 = vld [vmem:[#allocation12 + $0x88] sm:$0xff] }
 0xf42   : > { %v2971_v6 = vld [vmem:[#allocation12 + $0x70] sm:$0xff] }
 0xf43   : > { %v2665_v5 = vmul.f32 %v2664_v59, %v2659_v61  ;;  %v3002_v61 = vld [vmem:[#allocation12 + $0x168] sm:$0xff] }
 0xf44   : > { %v8592_v9 = vpop.eup %8591 }
 0xf45   : > { %v10217_v12 = vadd.f32 %v2670_v63, %v2665_v5  ;;  %v2660_v11 = vmul.f32 %v8592_v9, %v2654_v4  ;;  %v2831_v4 = vld [vmem:[#allocation9 + $0x1f0] sm:$0xff]  ;;  %v2832_v5 = vld [vmem:[#allocation9 + $0x1f8] sm:$0xff] }
 0xf46   : > { %v7835_v9 = vpack.c.bf16 %v2832_v5, %v2831_v4  ;;  %v2995_v4 = vld [vmem:[#allocation12 + $0x130] sm:$0xff]  ;;  %v2998_v5 = vld [vmem:[#allocation12 + $0x148] sm:$0xff] }
 0xf47   : > { %2784 = vmatmul.mubr.f32.vlgmr.msra.gmra.mrb[12].mxu1 %v10217_v12  ;;  %v2666_v23 = vmul.f32 %v2664_v59, %v2660_v11  ;;  %v7867_v59 = vpack.c.bf16 %v3003_v56, %v3000_v54  ;;  %v7878_v54 = vpack.c.bf16 %v2974_v7, %v2971_v6  ;;  %v2977_v56 = vld [vmem:[#allocation12 + $0xa0] sm:$0xff] }
 0xf48   : > { %7842 = vmatpush1.bf16.msra.mxu1 %v7841_v10  ;;  %2789 = vmatprep.mubr.f32.mxu1 %v9221_v0  ;;  %v2815_v10 = vld [vmem:[#allocation9 + $0x170] sm:$0xff] }
 0xf49   : > { %7844 = vmatprep.subr.bf16.mxu1 %v7843_v47  ;;  %v10221_v62 = vadd.f32 %v2670_v63, %v2666_v23  ;;  %v7869_v63 = vpack.c.bf16 %v3002_v61, %v2999_v60  ;;  %v2816_v47 = vld [vmem:[#allocation9 + $0x178] sm:$0xff]  ;;  %7836 = vmatprep.subr.bf16.mxu0 %v7835_v9  ;;  %v2983_v60 = vld [vmem:[#allocation12 + $0xd0] sm:$0xff]  ;;  %v7890_v9 = vpack.c.bf16 %v2998_v5, %v2995_v4 }
 0xf4a   : > { %v7837_v11 = vpack.c.bf16 %v2816_v47, %v2815_v10  ;;  %v2986_v61 = vld [vmem:[#allocation12 + $0xe8] sm:$0xff]  ;;  %v3001_v10 = vld [vmem:[#allocation12 + $0x160] sm:$0xff]  ;;  %v3004_v47 = vld [vmem:[#allocation12 + $0x178] sm:$0xff] }
 0xf4b   : > { %2790 = vmatmul.mubr.f32.gmra.mrb[14].mxu1 %v10221_v62 }
 0xf4c   : > { %7846 = vmatpush1.bf16.msra.mxu1 %v7845_v24  ;;  %3086 = vmatprep.mubr.f32.mxu1 %v9221_v0 }
 0xf4d   : > { %7848 = vmatprep.subr.bf16.mxu1 %v7847_v25  ;;  %7838 = vmatpush3.bf16.msra.mxu0 %v7837_v11  ;;  %v7893_v11 = vpack.c.bf16 %v3004_v47, %v3001_v10  ;;  %v3166_v10 = vld [vmem:[#allocation15 + $0x18] sm:$0xff] }
 0xf4e   : > { %7871 = vmatprep.subr.bf16.mxu0 %v9223_v49 }
 0xf50   : > { %7850 = vmatpush1.bf16.msra.mxu1 %v7849_v29 }
 0xf51   : > { %7852 = vmatprep.subr.bf16.mxu1 %v7851_v30 }
 0xf54   : > { %7854 = vmatpush1.bf16.msra.mxu1 %v7853_v35  ;;  %v3014_v35 = vrot.slane %v10241_v33, %v9859_v18 }
 0xf55   : > { %7856 = vmatprep.subr.bf16.mxu1 %v7855_v37 }
 0xf58   : > { %7858 = vmatpush1.bf16.msra.mxu1 %v7857_v44 }
 0xf59   : > { %7860 = vmatprep.subr.bf16.mxu1 %v7859_v45  ;;  %v2959_v45 = vld [vmem:[#allocation12 + $0x10] sm:$0xff] }
 0xf5a   : > { %v7872_v50 = vpack.c.bf16 %v2962_v46, %v2959_v45 }
 0xf5c   : > { %7862 = vmatpush1.bf16.msra.mxu1 %v7861_v52  ;;  %v2968_v52 = vld [vmem:[#allocation12 + $0x58] sm:$0xff] }
 0xf5d   : > { %7864 = vmatprep.subr.bf16.mxu1 %v7863_v3  ;;  %v7875_v3 = vpack.c.bf16 %v2968_v52, %v2965_v48 }
 0xf60   : > { %7866 = vmatpush1.bf16.msra.mxu1 %v7865_v57  ;;  %v2980_v57 = vld [vmem:[#allocation12 + $0xb8] sm:$0xff] }
 0xf61   : > { %7868 = vmatprep.subr.bf16.mxu1 %v7867_v59  ;;  %v7881_v59 = vpack.c.bf16 %v2980_v57, %v2977_v56 }
 0xf64   : > { %7870 = vmatpush1.bf16.msra.mxu1 %v7869_v63  ;;  %v7884_v63 = vpack.c.bf16 %v2986_v61, %v2983_v60 }
 0xf65   : > { %7111 = vmatprep.subr.mxu1 %v9221_v0 }
 0xf67   : > { %3087 = vmatmul.mubr.f32.vlgmr.msra.gmra.mrb[16].mxu1 %v10231_v1 }
 0xf68   : > { %7113 = vmatprep.mubr.msk.f32.mxu1 %vm9222_vm5, %v9221_v0 }
0x101a   : > { %v2785_v17 = vpop.f32.mrb[12].mxu1 }
0x101b   : > { %v2786_v23 = vadd.f32 %v2785_v17, %v2712_v22  ;;  %v2787_v24 = vpop.f32.mrb[13].mxu1 }
0x101c   : > { %v2788_v25 = vadd.f32 %v2787_v24, %v2716_v8 }
0x101d   : > { %v2796_v27 = vmax.f32 %v2786_v23, 0.0 }
0x101e   : > { %v2797_v26 = vmax.f32 %v2788_v25, 0.0  ;;  %v2791_v16 = vpop.f32.mrb[14].mxu1  ;;  %v10270_v25 = vsel %vm948_vm6, -1e+30, %v9221_v0 }
0x101f   : > { %v2792_v28 = vadd.f32 %v2791_v16, %v2712_v22  ;;  %v2793_v29 = vpop.f32.mrb[15].mxu1 }
0x1020   : > { %v2794_v30 = vadd.f32 %v2793_v29, %v2716_v8  ;;  %2901 = vmatprep.mubr.f32.mxu0 %v2797_v26 }
0x1021   : > { %2902 = vmatmul.mubr.f32.vlgmr.msra.gmra.mrb[24].mxu0 %v2796_v27  ;;  %v2798_v32 = vmax.f32 %v2792_v28, 0.0 }
0x1022   : > { %v2799_v31 = vmax.f32 %v2794_v30, 0.0  ;;  %7873 = vmatpush3.bf16.msra.mxu0 %v7872_v50 }
0x1023   : > { %7874 = vmatprep.subr.bf16.mxu0 %v9223_v49 }
0x1024   : > { %2906 = vmatprep.mubr.f32.mxu0 %v2799_v31 }
0x1025   : > { %2907 = vmatmul.mubr.f32.gmra.mrb[26].mxu0 %v2798_v32 }
0x1026   : > { %7108 = vmatprep.mubr.msk.f32.mxu0 %vm9222_vm5, %v9221_v0  ;;  %7876 = vmatpush3.bf16.msra.mxu0 %v7875_v3 }
0x1027   : > { %7877 = vmatprep.subr.bf16.mxu0 %v9223_v49 }
0x102a   : > { %7879 = vmatpush3.bf16.msra.mxu0 %v7878_v54 }
0x102b   : > { %7880 = vmatprep.subr.bf16.mxu0 %v9223_v49 }
0x102e   : > { %7882 = vmatpush3.bf16.msra.mxu0 %v7881_v59 }
0x102f   : > { %7883 = vmatprep.subr.bf16.mxu0 %v9223_v49 }
0x1032   : > { %7885 = vmatpush3.bf16.msra.mxu0 %v7884_v63 }
0x1033   : > { %7886 = vmatprep.subr.bf16.mxu0 %v9223_v49 }
0x1036   : > { %7888 = vmatpush3.bf16.msra.mxu0 %v7887_v2 }
0x1037   : > { %7889 = vmatprep.subr.bf16.mxu0 %v9223_v49 }
0x103a   : > { %v3088_v37 = vpop.f32.mrb[16].mxu1  ;;  %7891 = vmatpush3.bf16.msra.mxu0 %v7890_v9  ;;  %v3165_v9 = vld [vmem:[#allocation15 + $0x10] sm:$0xff] }
0x103b   : > { %v3089_v38 = vadd.f32 %v3088_v37, %v3010_v34  ;;  %v3090_v39 = vpop.f32.mrb[17].mxu1  ;;  %7892 = vmatprep.subr.bf16.mxu0 %v9223_v49  ;;  %v7899_v47 = vpack.c.bf16 %v3166_v10, %v3165_v9 }
0x103c   : > { %v3091_v42 = vadd.f32 %v3090_v39, %v3014_v35  ;;  %v2836_v39 = vrot.slane %v10123_v55, %v10034_v58 }
0x103d   : > { %v3179_v43 = vmul.f32 %v9862_v19, %v3089_v38  ;;  %v3263_v44 = vmul.f32 %v9865_v20, %v3089_v38 }
0x103e   : > { %7112 = vmatpush3.xpose.msra.mxu1 %v3091_v42  ;;  %7894 = vmatpush3.bf16.msra.mxu0 %v7893_v11  ;;  %v3167_v11 = vld [vmem:[#allocation15 + $0x20] sm:$0xff] }
0x103f   : > { %7116 = vmatprep.subr.mxu1 %v9221_v0  ;;  %7919 = vmatprep.subr.bf16.mxu0 %v9223_v49 }
0x1041   : > { %7114 = vmatmul.mubr.f32.vlgmr.msra.gmra.mrb[18].mxu1 %v3179_v43  ;;  %7109 = vmatmul.mubr.f32.vlgmr.msra.gmra.mrb[28].mxu0 %v10231_v1 }
0x1042   : > { %7117 = vmatpush3.xpose.msra.mxu1 %v3091_v42  ;;  %7118 = vmatprep.mubr.msk.f32.mxu1 %vm9222_vm5, %v9221_v0 }
0x1043   : > { %7121 = vmatprep.subr.mxu1 %v9221_v0  ;;  %7198 = vmatprep.mubr.msk.f32.mxu0 %vm9222_vm5, %v9221_v0 }
0x1045   : > { %7119 = vmatmul.mubr.f32.vlgmr.msra.gmra.mrb[20].mxu1 %v3263_v44 }
0x1046   : > { %7123 = vmatprep.mubr.msk.f32.mxu1 %vm9222_vm5, %v9221_v0 }
0x10f4   : > { %v6611_v21 = vpop.f32.mrb[24].mxu0 }
0x10f5   : > { %v6612_v22 = vpop.f32.mrb[25].mxu0 }
0x10f6   : > { %v6613_v8 = vadd.f32 %v6612_v22, %v6611_v21  ;;  %v3168_v21 = vld [vmem:[#allocation15 + $0x28] sm:$0xff] }
0x10f7   : > { %v7902_v22 = vpack.c.bf16 %v3168_v21, %v3167_v11  ;;  %v3689_v11 = vld [vmem:[#allocation18 + $0x40] sm:$0xff]  ;;  %v3691_v21 = vld [vmem:[#allocation18 + $0x50] sm:$0xff] }
0x10f8   : > { %v6614_v17 = vpop.f32.mrb[26].mxu0  ;;  %v2904_v43 = vadd.f32 %v6613_v8, %v2836_v39  ;;  %v3169_v8 = vld [vmem:[#allocation15 + $0x30] sm:$0xff] }
0x10f9   : > { %v6615_v23 = vpop.f32.mrb[27].mxu0 }
0x10fa   : > { %v6616_v24 = vadd.f32 %v6615_v23, %v6614_v17  ;;  %v10279_v45 = vadd.f32 %v2904_v43, %v10217_v12  ;;  %v3018_v12 = vrot.slane %v10241_v33, %v9873_v36  ;;  %v3163_v33 = vld [vmem:[#allocation15] sm:$0xff]  ;;  %v3170_v17 = vld [vmem:[#allocation15 + $0x38] sm:$0xff] }
0x10fb   : > { %v7896_v4 = vpack.c.bf16 %v3164_v53, %v3163_v33  ;;  %v7905_v23 = vpack.c.bf16 %v3170_v17, %v3169_v8  ;;  %v3690_v53 = vld [vmem:[#allocation18 + $0x48] sm:$0xff]  ;;  %v3696_v8 = vld [vmem:[#allocation18 + $0x78] sm:$0xff] }
0x10fc   : > { %v2909_v46 = vadd.f32 %v6616_v24, %v2836_v39  ;;  %v2920_v3 = vmul.f32 %v10279_v45, %v10279_v45  ;;  %v3171_v24 = vld [vmem:[#allocation15 + $0x40] sm:$0xff] }
0x10fe   : > { %v10283_v52 = vadd.f32 %v2909_v46, %v10221_v62 }
0x1100   : > { %v2921_v7 = vmul.f32 %v10283_v52, %v10283_v52 }
0x1114   : > { %v3246_v26 = vpop.f32.mrb[18].mxu1  ;;  %v3159_v62 = vpop.f32.mrb[28].mxu0 }
0x1115   : > { %v3247_v16 = vadd.f32 %v3246_v26, %v10270_v25  ;;  %v7115_v27 = vpop.f32.mrb[19].mxu1  ;;  %v3160_v54 = vadd.f32 %v3159_v62, %v3018_v12  ;;  %v7110_v56 = vpop.f32.mrb[29].mxu0  ;;  %v3172_v26 = vld [vmem:[#allocation15 + $0x48] sm:$0xff]  ;;  %v3688_v62 = vld [vmem:[#allocation18 + $0x38] sm:$0xff] }
0x1116   : > { %v3173_v27 = vld [vmem:[#allocation15 + $0x50] sm:$0xff]  ;;  %v3686_v12 = vld [vmem:[#allocation18 + $0x28] sm:$0xff] }
0x1117   : > { %v3251_v28 = vsel %vm3250_vm7, %v3247_v16, -inf  ;;  %v3345_v57 = vmul.f32 %v9865_v20, %v3160_v54  ;;  %v3262_v63 = vmul.f32 %v9862_v19, %v3160_v54 }
0x1118   : > { %3252 = vmax.xlane.f32.xlu1 %v3251_v28  ;;  %v3330_v29 = vpop.f32.mrb[20].mxu1  ;;  %v3174_v28 = vld [vmem:[#allocation15 + $0x58] sm:$0xff] }
0x1119   : > { %v3331_v30 = vadd.f32 %v3330_v29, %v10270_v25  ;;  %v7120_v31 = vpop.f32.mrb[21].mxu1  ;;  %7122 = vmatpush3.msra.mxu1 %v3345_v57  ;;  %v7911_v29 = vpack.c.bf16 %v3174_v28, %v3173_v27  ;;  %v3695_v27 = vld [vmem:[#allocation18 + $0x70] sm:$0xff]  ;;  %v3698_v28 = vld [vmem:[#allocation18 + $0x88] sm:$0xff] }
0x111a   : > { %7126 = vmatprep.subr.mxu1 %v9221_v0  ;;  %v3176_v31 = vld [vmem:[#allocation15 + $0x68] sm:$0xff] }
0x111b   : > { %v3334_v32 = vsel %vm3250_vm7, %v3331_v30, -inf }
0x111c   : > { %3335 = vmax.xlane.f32.xlu0 %v3334_v32 }
0x11a5   : > { %v3253_v34 = vpop.xlane.xlu1 %3252 }
0x11a6   : > { %v3254_v14 = vsub.f32 %v3247_v16, %v3253_v34  ;;  %v7908_v16 = vpack.c.bf16 %v3172_v26, %v3171_v24  ;;  %v3177_v34 = vld [vmem:[#allocation15 + $0x70] sm:$0xff]  ;;  %v7953_v24 = vpack.c.bf16 %v3691_v21, %v3689_v11  ;;  %v3594_v21 = vld [vmem:[#allocation16 + $0x18] sm:$0xff] }
0x11a8   : > { %v3255_v35 = vmul.f32 1.442695, %v3254_v14  ;;  %v3178_v14 = vld [vmem:[#allocation15 + $0x78] sm:$0xff] }
0x11a9   : > { %v3336_v37 = vpop.xlane.xlu0 %3335 }
0x11aa   : > { %8593 = vpow2.f32 %v3255_v35  ;;  %v3337_v38 = vsub.f32 %v3331_v30, %v3336_v37  ;;  %v3175_v30 = vld [vmem:[#allocation15 + $0x60] sm:$0xff]  ;;  %v7917_v35 = vpack.c.bf16 %v3178_v14, %v3177_v34  ;;  %v3682_v37 = vld [vmem:[#allocation18 + $0x8] sm:$0xff]  ;;  %v3699_v14 = vld [vmem:[#allocation18 + $0x90] sm:$0xff] }
0x11ab   : > { %v7914_v32 = vpack.c.bf16 %v3176_v31, %v3175_v30  ;;  %v3697_v34 = vld [vmem:[#allocation18 + $0x80] sm:$0xff] }
0x11ac   : > { %v3338_v42 = vmul.f32 1.442695, %v3337_v38  ;;  %v3684_v38 = vld [vmem:[#allocation18 + $0x18] sm:$0xff] }
0x11ad   : > { %v7943_v39 = vpack.c.bf16 %v3684_v38, %v3682_v37  ;;  %v3704_v37 = vld [vmem:[#allocation18 + $0xb8] sm:$0xff]  ;;  %v7961_v38 = vpack.c.bf16 %v3699_v14, %v3697_v34  ;;  %v3599_v14 = vld [vmem:[#allocation16 + $0x40] sm:$0xff] }
0x11ae   : > { %8595 = vpow2.f32 %v3338_v42 }
0x11b4   : > { %v8594_v44 = vpop.eup %8593 }
0x11b5   : > { %v3257_v48 = vsel %vm3250_vm7, %v8594_v44, 0.0 }
0x11b6   : > { %3258 = vadd.xlane.f32.xlu1 %v3257_v48 }
0x11b8   : > { %v8596_v50 = vpop.eup %8595 }
0x11b9   : > { %v3340_v6 = vsel %vm3250_vm7, %v8596_v50, 0.0 }
0x11ba   : > { %2922 = vadd.xlane.f32.xlu1 %v2920_v3  ;;  %3341 = vadd.xlane.f32.xlu0 %v3340_v6  ;;  %v3681_v3 = vld [vmem:[#allocation18] sm:$0xff]  ;;  %v3683_v6 = vld [vmem:[#allocation18 + $0x10] sm:$0xff] }
0x11be   : > { %2914 = vadd.xlane.f32.xlu0 %v10279_v45  ;;  %2924 = vadd.xlane.f32.xlu1 %v2921_v7 }
0x11c2   : > { %2916 = vadd.xlane.f32.xlu0 %v10283_v52 }
0x1243   : > { %v3259_v60 = vpop.xlane.xlu1 %3258 }
0x1247   : > { %v3342_v59 = vpop.xlane.xlu0 %3341 }
0x1248   : > { %8597 = vrcp.f32 %v3342_v59  ;;  %v7945_v59 = vpack.c.bf16 %v3683_v6, %v3681_v3 }
0x1249   : > { %8599 = vrcp.f32 %v3259_v60  ;;  %v7947_v60 = vpack.c.bf16 %v3688_v62, %v3686_v12  ;;  %v3707_v12 = vld [vmem:[#allocation18 + $0xd0] sm:$0xff] }
0x124b   : > { %v2915_v42 = vpop.xlane.xlu0 %2914 }
0x124c   : > { %v10311_v43 = vmul.f32 0.015625, %v2915_v42  ;;  %v3701_v42 = vld [vmem:[#allocation18 + $0xa0] sm:$0xff] }
0x124e   : > { %v2928_v48 = vmul.f32 %v10311_v43, %v10311_v43 }
0x124f   : > { %v2917_v46 = vpop.xlane.xlu0 %2916 }
0x1252   : > { %v8598_v61 = vpop.eup %8597 }
0x1253   : > { %v3344_v51 = vmul.f32 %v8598_v61, %v8596_v50  ;;  %v8600_v2 = vpop.eup %8599  ;;  %v10315_v50 = vmul.f32 0.015625, %v2917_v46  ;;  %v3685_v61 = vld [vmem:[#allocation18 + $0x20] sm:$0xff]  ;;  %v3706_v46 = vld [vmem:[#allocation18 + $0xc8] sm:$0xff] }
0x1254   : > { %v3261_v5 = vmul.f32 %v8600_v2, %v8594_v44  ;;  %v2923_v44 = vpop.xlane.xlu1 %2922  ;;  %v3692_v2 = vld [vmem:[#allocation18 + $0x58] sm:$0xff] }
0x1255   : > { %7124 = vmatmul.mubr.msk.f32.vlgmr.msra.gmra.mrb[22].mxu1 %vm3250_vm7, %v3344_v51  ;;  %v2926_v7 = vmul.f32 0.015625, %v2923_v44  ;;  %v2929_v57 = vmul.f32 %v10315_v50, %v10315_v50  ;;  %v3703_v44 = vld [vmem:[#allocation18 + $0xb0] sm:$0xff] }
0x1256   : > { %7127 = vmatpush3.msra.mxu1 %v3262_v63  ;;  %7128 = vmatprep.mubr.msk.f32.mxu1 %vm9222_vm5, %v9221_v0  ;;  %v3687_v63 = vld [vmem:[#allocation18 + $0x30] sm:$0xff]  ;;  %v7965_v3 = vpack.c.bf16 %v3703_v44, %v3701_v42  ;;  %v3602_v42 = vld [vmem:[#allocation16 + $0x58] sm:$0xff] }
0x1257   : > { %7895 = vmatprep.subr.bf16.mxu1 %v9223_v49  ;;  %v2930_v56 = vsub.f32 %v2926_v7, %v2928_v48  ;;  %v7949_v10 = vpack.c.bf16 %v3687_v63, %v3685_v61  ;;  %v3708_v48 = vld [vmem:[#allocation18 + $0xd8] sm:$0xff]  ;;  %v3705_v7 = vld [vmem:[#allocation18 + $0xc0] sm:$0xff] }
0x1258   : > { %v2925_v54 = vpop.xlane.xlu1 %2924  ;;  %v7967_v6 = vpack.c.bf16 %v3708_v48, %v3706_v46  ;;  %v3604_v46 = vld [vmem:[#allocation16 + $0x68] sm:$0xff] }
0x1259   : > { %v2927_v51 = vmul.f32 0.015625, %v2925_v54  ;;  %v3710_v54 = vld [vmem:[#allocation18 + $0xe8] sm:$0xff] }
0x125b   : > { %v2931_v9 = vsub.f32 %v2927_v51, %v2929_v57  ;;  %v2934_v57 = vsub.f32 %v10279_v45, %v10311_v43  ;;  %v3709_v51 = vld [vmem:[#allocation18 + $0xe0] sm:$0xff]  ;;  %v2951_v45 = vrot.slane %v10123_v55, %v10054_v41 }
0x125d   : > { %7129 = vmatmul.mubr.msk.f32.vlgmr.msra.gmra.mrb[22].mxu1 %vm3250_vm7, %v3261_v5  ;;  %v2932_v5 = vmax.f32 %v2930_v56, 0.0  ;;  %v3712_v56 = vld [vmem:[#allocation18 + $0xf8] sm:$0xff] }
0x125e   : > { %7897 = vmatpush3.bf16.msra.mxu1 %v7896_v4  ;;  %7163 = vmatprep.mubr.msk.f32.mxu1 %vm9222_vm5, %v9221_v0  ;;  %v7971_v63 = vpack.c.bf16 %v3712_v56, %v3710_v54 }
0x125f   : > { %7898 = vmatprep.subr.bf16.mxu1 %v9223_v49  ;;  %v2936_v17 = vadd.f32 1e-05, %v2932_v5 }
0x1261   : > { %8601 = vrsqrt.f32 %v2936_v17  ;;  %v3596_v17 = vld [vmem:[#allocation16 + $0x28] sm:$0xff] }
0x1262   : > { %7900 = vmatpush3.bf16.msra.mxu1 %v7899_v47  ;;  %v7951_v47 = vpack.c.bf16 %v3692_v2, %v3690_v53  ;;  %v2935_v2 = vsub.f32 %v10283_v52, %v10315_v50  ;;  %v3591_v52 = vld [vmem:[#allocation16] sm:$0xff]  ;;  %v3592_v50 = vld [vmem:[#allocation16 + $0x8] sm:$0xff] }
0x1263   : > { %7901 = vmatprep.subr.bf16.mxu1 %v9223_v49  ;;  %v7920_v11 = vpack.c.bf16 %v3592_v50, %v3591_v52 }
0x1265   : > { %7921 = vmatpush3.bf16.msra.mxu0 %v7920_v11 }
0x1266   : > { %7903 = vmatpush3.bf16.msra.mxu1 %v7902_v22  ;;  %v3694_v22 = vld [vmem:[#allocation18 + $0x68] sm:$0xff]  ;;  %7922 = vmatprep.subr.bf16.mxu0 %v9223_v49 }
0x1267   : > { %7904 = vmatprep.subr.bf16.mxu1 %v9223_v49  ;;  %v7955_v26 = vpack.c.bf16 %v3696_v8, %v3694_v22  ;;  %v3595_v8 = vld [vmem:[#allocation16 + $0x20] sm:$0xff] }
0x126a   : > { %7906 = vmatpush3.bf16.msra.mxu1 %v7905_v23  ;;  %v2933_v23 = vmax.f32 %v2931_v9, 0.0 }
0x126b   : > { %7907 = vmatprep.subr.bf16.mxu1 %v9223_v49  ;;  %v8602_v62 = vpop.eup %8601 }
0x126c   : > { %v2937_v30 = vadd.f32 1e-05, %v2933_v23  ;;  %v2940_v61 = vmul.f32 %v8602_v62, %v2934_v57  ;;  %v7926_v23 = vpack.c.bf16 %v3596_v17, %v3595_v8 }
0x126e   : > { %7909 = vmatpush3.bf16.msra.mxu1 %v7908_v16  ;;  %v3693_v16 = vld [vmem:[#allocation18 + $0x60] sm:$0xff]  ;;  %8603 = vrsqrt.f32 %v2937_v30 }
0x126f   : > { %7910 = vmatprep.subr.bf16.mxu1 %v9223_v49  ;;  %v7957_v31 = vpack.c.bf16 %v3695_v27, %v3693_v16 }
0x1272   : > { %7912 = vmatpush3.bf16.msra.mxu1 %v7911_v29  ;;  %v3700_v29 = vld [vmem:[#allocation18 + $0x98] sm:$0xff] }
0x1273   : > { %7913 = vmatprep.subr.bf16.mxu1 %v9223_v49 }
0x1276   : > { %7915 = vmatpush3.bf16.msra.mxu1 %v7914_v32  ;;  %v7959_v32 = vpack.c.bf16 %v3700_v29, %v3698_v28 }
0x1277   : > { %7916 = vmatprep.subr.bf16.mxu1 %v9223_v49 }
0x1278   : > { %v8604_v53 = vpop.eup %8603 }
0x1279   : > { %v2941_v9 = vmul.f32 %v8604_v53, %v2935_v2 }
0x127a   : > { %7918 = vmatpush3.bf16.msra.mxu1 %v7917_v35  ;;  %v3702_v35 = vld [vmem:[#allocation18 + $0xa8] sm:$0xff] }
0x127b   : > { %7944 = vmatprep.subr.bf16.mxu1 %v7943_v39  ;;  %v7963_v39 = vpack.c.bf16 %v3704_v37, %v3702_v35  ;;  %v3600_v35 = vld [vmem:[#allocation16 + $0x48] sm:$0xff] }
0x127c   : > { %v7932_v37 = vpack.c.bf16 %v3600_v35, %v3599_v14 }
0x1330   : > { %v3488_v33 = vpop.f32.mrb[22].mxu1 }
0x1331   : > { %v7130_v4 = vpop.f32.mrb[23].mxu1  ;;  %7164 = vmatmul.mubr.f32.vlgmr.msra.gmra.mrb[24].mxu1 %v3488_v33  ;;  %v3711_v33 = vld [vmem:[#allocation18 + $0xf0] sm:$0xff] }
0x1332   : > { %7946 = vmatpush1.bf16.msra.mxu1 %v7945_v59  ;;  %3789 = vmatprep.mubr.f32.mxu1 %v9221_v0  ;;  %v7969_v59 = vpack.c.bf16 %v3707_v12, %v3705_v7  ;;  %v7973_v4 = vpack.c.bf16 %v3711_v33, %v3709_v51  ;;  %v3606_v7 = vld [vmem:[#allocation16 + $0x78] sm:$0xff] }
0x1333   : > { %7948 = vmatprep.subr.bf16.mxu1 %v7947_v60  ;;  %v2945_v60 = vrot.slane %v10123_v55, %v10051_v40  ;;  %v3593_v55 = vld [vmem:[#allocation16 + $0x10] sm:$0xff] }
0x1334   : > { %v7923_v22 = vpack.c.bf16 %v3594_v21, %v3593_v55 }
0x1335   : > { %v2946_v5 = vmul.f32 %v2945_v60, %v2940_v61 }
0x1336   : > { %7950 = vmatpush1.bf16.msra.mxu1 %v7949_v10  ;;  %v2947_v10 = vmul.f32 %v2945_v60, %v2941_v9  ;;  %7924 = vmatpush3.bf16.msra.mxu0 %v7923_v22 }
0x1337   : > { %7952 = vmatprep.subr.bf16.mxu1 %v7951_v47  ;;  %v10328_v43 = vadd.f32 %v2951_v45, %v2946_v5  ;;  %7925 = vmatprep.subr.bf16.mxu0 %v9223_v49 }
0x1338   : > { %v10333_v47 = vadd.f32 %v2951_v45, %v2947_v10 }
0x133a   : > { %7954 = vmatpush1.bf16.msra.mxu1 %v7953_v24  ;;  %7927 = vmatpush3.bf16.msra.mxu0 %v7926_v23  ;;  %v10341_v24 = vld [vmem:[#allocation27] sm:$0xff] }
0x133b   : > { %7956 = vmatprep.subr.bf16.mxu1 %v7955_v26  ;;  %7928 = vmatprep.subr.bf16.mxu0 %v9223_v49  ;;  %v3495_v26 = vrot.slane %v10341_v24, %v9852_v15  ;;  %v3584_v23 = vrot.slane %v10341_v24, %v9859_v18 }
0x133e   : > { %7958 = vmatpush1.bf16.msra.mxu1 %v7957_v31  ;;  %v3597_v31 = vld [vmem:[#allocation16 + $0x30] sm:$0xff] }
0x133f   : > { %7960 = vmatprep.subr.bf16.mxu1 %v7959_v32  ;;  %v3598_v32 = vld [vmem:[#allocation16 + $0x38] sm:$0xff] }
0x1340   : > { %v7929_v34 = vpack.c.bf16 %v3598_v32, %v3597_v31 }
0x1342   : > { %7962 = vmatpush1.bf16.msra.mxu1 %v7961_v38  ;;  %7930 = vmatpush3.bf16.msra.mxu0 %v7929_v34  ;;  %v3713_v38 = vld [vmem:[#allocation19] sm:$0x3] }
0x1343   : > { %7964 = vmatprep.subr.bf16.mxu1 %v7963_v39  ;;  %7931 = vmatprep.subr.bf16.mxu0 %v9223_v49  ;;  %v3601_v39 = vld [vmem:[#allocation16 + $0x50] sm:$0xff]  ;;  %v3722_v48 = vrot.slane %v3713_v38, %v9859_v18  ;;  %v3718_v62 = vrot.slane %v3713_v38, %v9852_v15 }
0x1344   : > { %v7935_v44 = vpack.c.bf16 %v3602_v42, %v3601_v39 }
0x1346   : > { %7966 = vmatpush1.bf16.msra.mxu1 %v7965_v3  ;;  %7933 = vmatpush3.bf16.msra.mxu0 %v7932_v37 }
0x1347   : > { %7968 = vmatprep.subr.bf16.mxu1 %v7967_v6  ;;  %7934 = vmatprep.subr.bf16.mxu0 %v9223_v49  ;;  %v3605_v6 = vld [vmem:[#allocation16 + $0x70] sm:$0xff] }
0x1348   : > { %v7941_v57 = vpack.c.bf16 %v3606_v7, %v3605_v6 }
0x134a   : > { %7970 = vmatpush1.bf16.msra.mxu1 %v7969_v59  ;;  %7936 = vmatpush3.bf16.msra.mxu0 %v7935_v44 }
0x134b   : > { %7972 = vmatprep.subr.bf16.mxu1 %v7971_v63  ;;  %7937 = vmatprep.subr.bf16.mxu0 %v9223_v49 }
0x134e   : > { %7974 = vmatpush1.bf16.msra.mxu1 %v7973_v4 }
0x134f   : > { %7987 = vmatprep.subr.bf16.mxu1 %v9223_v49 }
0x1351   : > { %3790 = vmatmul.mubr.f32.vlgmr.msra.gmra.mrb[26].mxu1 %v10328_v43 }
0x1352   : > { %3795 = vmatprep.mubr.f32.mxu1 %v9221_v0 }
0x1355   : > { %3796 = vmatmul.mubr.f32.gmra.mrb[28].mxu1 %v10333_v47 }
0x1356   : > { %7261 = vmatprep.mubr.msk.f32.mxu1 %vm9222_vm5, %v9221_v0 }
0x1404   : > { %v3562_v16 = vpop.f32.mrb[24].mxu1 }
0x1405   : > { %v3563_v27 = vadd.f32 %v3562_v16, %v3495_v26  ;;  %v7165_v28 = vpop.f32.mrb[25].mxu1 }
0x1407   : > { %v3566_v29 = vadd.f32 %v3563_v27, %v10231_v1  ;;  %v3603_v1 = vld [vmem:[#allocation16 + $0x60] sm:$0xff]  ;;  %v3589_v27 = vrot.slane %v10341_v24, %v9873_v36 }
0x1408   : > { %v7938_v3 = vpack.c.bf16 %v3604_v46, %v3603_v1 }
0x1409   : > { %3567 = vadd.xlane.f32.xlu0 %v3566_v29  ;;  %v3570_v30 = vmul.f32 %v3566_v29, %v3566_v29 }
0x140a   : > { %7939 = vmatpush3.bf16.msra.mxu0 %v7938_v3 }
0x140b   : > { %3571 = vadd.xlane.f32.xlu1 %v3570_v30  ;;  %7940 = vmatprep.subr.bf16.mxu0 %v9223_v49 }
0x140e   : > { %7942 = vmatpush3.bf16.msra.mxu0 %v7941_v57 }
0x140f   : > { %7975 = vmatprep.subr.bf16.mxu0 %v9223_v49 }
0x1424   : > { %v3791_v12 = vpop.f32.mrb[26].mxu1 }
0x1425   : > { %v3793_v54 = vpop.f32.mrb[27].mxu1  ;;  %v3792_v60 = vadd.f32 %v3791_v12, %v3718_v62 }
0x1426   : > { %v3794_v56 = vadd.f32 %v3793_v54, %v3722_v48 }
0x1428   : > { %v3797_v59 = vpop.f32.mrb[28].mxu1  ;;  %v10354_v53 = vmul.f32 %v9862_v19, %v3794_v56  ;;  %v3984_v2 = vmul.f32 %v9865_v20, %v3794_v56 }
0x1429   : > { %v3798_v61 = vadd.f32 %v3797_v59, %v3718_v62  ;;  %v3799_v63 = vpop.f32.mrb[29].mxu1  ;;  %v3802_v59 = vld [vmem:[#allocation21] sm:$0xff] }
0x142a   : > { %v3800_v51 = vadd.f32 %v3799_v63, %v3722_v48 }
0x142b   : > { %v7976_v33 = vpack.c.bf16 %v3798_v61, %v3792_v60  ;;  %v3803_v60 = vld [vmem:[#allocation21 + $0x8] sm:$0xff]  ;;  %v3804_v61 = vld [vmem:[#allocation21 + $0x10] sm:$0xff] }
0x142c   : > { %v10358_v4 = vmul.f32 %v9862_v19, %v3800_v51  ;;  %v3985_v5 = vmul.f32 %v9865_v20, %v3800_v51  ;;  %v7988_v63 = vpack.c.bf16 %v3803_v60, %v3802_v59  ;;  %v3805_v51 = vld [vmem:[#allocation21 + $0x18] sm:$0xff]  ;;  %v4237_v59 = vld [vmem:[#allocation22 + $0x30] sm:$0xff] }
0x142e   : > { %v7982_v9 = vpack.c.bf16 %v3985_v5, %v3984_v2  ;;  %v7985_v45 = vpack.c.bf16 %v10358_v4, %v10354_v53  ;;  %7989 = vmatpush3.bf16.msra.mxu1 %v7988_v63  ;;  %v3806_v2 = vld [vmem:[#allocation21 + $0x20] sm:$0xff]  ;;  %v3807_v5 = vld [vmem:[#allocation21 + $0x28] sm:$0xff]  ;;  %v4238_v53 = vld [vmem:[#allocation22 + $0x38] sm:$0xff] }
0x142f   : > { %7990 = vmatprep.subr.bf16.mxu1 %v9223_v49  ;;  %v4242_v63 = vld [vmem:[#allocation22 + $0x58] sm:$0xff] }
0x1496   : > { %v3568_v10 = vpop.xlane.xlu0 %3567 }
0x1497   : > { %v3569_v52 = vmul.f32 0.015625, %v3568_v10  ;;  %v3808_v10 = vld [vmem:[#allocation21 + $0x30] sm:$0xff] }
0x1498   : > { %v3572_v50 = vpop.xlane.xlu1 %3571 }
0x1499   : > { %v3574_v55 = vmul.f32 %v3569_v52, %v3569_v52  ;;  %v3573_v11 = vmul.f32 0.015625, %v3572_v50  ;;  %v3577_v17 = vsub.f32 %v3566_v29, %v3569_v52  ;;  %v3610_v29 = vrot.slane %v10341_v24, %v10034_v58  ;;  %v3809_v52 = vld [vmem:[#allocation21 + $0x38] sm:$0xff] }
0x149a   : > { %v7997_v50 = vpack.c.bf16 %v3809_v52, %v3808_v10  ;;  %v4243_v52 = vld [vmem:[#allocation22 + $0x60] sm:$0xff] }
0x149b   : > { %v3575_v21 = vsub.f32 %v3573_v11, %v3574_v55  ;;  %v3810_v55 = vld [vmem:[#allocation21 + $0x40] sm:$0xff]  ;;  %v3811_v11 = vld [vmem:[#allocation21 + $0x48] sm:$0xff] }
0x149d   : > { %v3576_v22 = vmax.f32 %v3575_v21, 0.0  ;;  %v8000_v21 = vpack.c.bf16 %v3811_v11, %v3810_v55  ;;  %v4248_v11 = vld [vmem:[#allocation22 + $0x88] sm:$0xff] }
0x149f   : > { %v3578_v8 = vadd.f32 1e-05, %v3576_v22  ;;  %v3812_v22 = vld [vmem:[#allocation21 + $0x50] sm:$0xff] }
0x14a1   : > { %8605 = vrsqrt.f32 %v3578_v8  ;;  %v3813_v8 = vld [vmem:[#allocation21 + $0x58] sm:$0xff] }
0x14ab   : > { %v8606_v26 = vpop.eup %8605 }
0x14ac   : > { %v3580_v16 = vmul.f32 %v8606_v26, %v3577_v17  ;;  %v8003_v17 = vpack.c.bf16 %v3813_v8, %v3812_v22  ;;  %v3815_v26 = vld [vmem:[#allocation21 + $0x68] sm:$0xff]  ;;  %v4247_v8 = vld [vmem:[#allocation22 + $0x80] sm:$0xff] }
0x14ae   : > { %v3585_v28 = vmul.f32 %v3584_v23, %v3580_v16  ;;  %v3814_v23 = vld [vmem:[#allocation21 + $0x60] sm:$0xff] }
0x14af   : > { %v8006_v16 = vpack.c.bf16 %v3815_v26, %v3814_v23  ;;  %v4252_v23 = vld [vmem:[#allocation22 + $0xa8] sm:$0xff] }
0x14b0   : > { %v10367_v30 = vadd.f32 %v3589_v27, %v3585_v28  ;;  %v3816_v27 = vld [vmem:[#allocation21 + $0x70] sm:$0xff]  ;;  %v3817_v28 = vld [vmem:[#allocation21 + $0x78] sm:$0xff] }
0x14b2   : > { %7199 = vmatmul.mubr.f32.vlgmr.msra.gmra.mrb[30].mxu0 %v10367_v30 }
0x14b3   : > { %7977 = vmatpush3.bf16.xpose.msra.mxu0 %v7976_v33  ;;  %7205 = vmatprep.mubr.msk.f32.mxu0 %vm9222_vm5, %v9221_v0 }
0x14b4   : > { %7978 = vmatprep.subr.bf16.mxu0 %v9223_v49 }
0x1585   : > { %v3677_v31 = vpop.f32.mrb[30].mxu0 }
0x1586   : > { %v3678_v32 = vadd.f32 %v3677_v31, %v3610_v29  ;;  %v7200_v34 = vpop.f32.mrb[31].mxu0  ;;  %v8009_v29 = vpack.c.bf16 %v3817_v28, %v3816_v27  ;;  %v4251_v27 = vld [vmem:[#allocation22 + $0xa0] sm:$0xff]  ;;  %v4253_v28 = vld [vmem:[#allocation22 + $0xb0] sm:$0xff] }
0x1588   : > { %v3818_v14 = vmul.f32 %v9862_v19, %v3678_v32  ;;  %v3902_v35 = vmul.f32 %v9865_v20, %v3678_v32 }
0x158a   : > { %7206 = vmatmul.mubr.f32.vlgmr.msra.gmra.mrb[32].mxu0 %v3818_v14 }
0x158b   : > { %7980 = vmatpush3.bf16.xpose.msra.mxu0 %v7976_v33  ;;  %7212 = vmatprep.mubr.msk.f32.mxu0 %vm9222_vm5, %v9221_v0  ;;  %v7991_v33 = vpack.c.bf16 %v3805_v51, %v3804_v61  ;;  %v4240_v61 = vld [vmem:[#allocation22 + $0x48] sm:$0xff] }
0x158c   : > { %7981 = vmatprep.subr.bf16.mxu0 %v9223_v49  ;;  %v8019_v51 = vpack.c.bf16 %v4242_v63, %v4240_v61  ;;  %v4369_v61 = vld [vmem:[#allocation25 + $0xa8] sm:$0xff] }
0x158d   : > { %7992 = vmatpush3.bf16.msra.mxu1 %v7991_v33  ;;  %v4239_v33 = vld [vmem:[#allocation22 + $0x40] sm:$0xff] }
0x158e   : > { %7993 = vmatprep.subr.bf16.mxu1 %v9223_v49 }
0x1592   : > { %7213 = vmatmul.mubr.f32.vlgmr.msra.gmra.mrb[34].mxu0 %v3902_v35 }
0x1593   : > { %7983 = vmatpush3.bf16.msra.mxu0 %v7982_v9  ;;  %7219 = vmatprep.mubr.msk.f32.mxu0 %vm9222_vm5, %v9221_v0  ;;  %v7994_v9 = vpack.c.bf16 %v3807_v5, %v3806_v2  ;;  %v4241_v2 = vld [vmem:[#allocation22 + $0x50] sm:$0xff] }
0x1594   : > { %7984 = vmatprep.subr.bf16.mxu0 %v9223_v49  ;;  %v8021_v5 = vpack.c.bf16 %v4241_v2, %v4239_v33  ;;  %v4352_v33 = vld [vmem:[#allocation25 + $0x20] sm:$0xff]  ;;  %v4353_v2 = vld [vmem:[#allocation25 + $0x28] sm:$0xff] }
0x1595   : > { %7995 = vmatpush3.bf16.msra.mxu1 %v7994_v9  ;;  %v4246_v9 = vld [vmem:[#allocation22 + $0x78] sm:$0xff] }
0x1596   : > { %7996 = vmatprep.subr.bf16.mxu1 %v9223_v49 }
0x1599   : > { %7998 = vmatpush3.bf16.msra.mxu1 %v7997_v50  ;;  %v4245_v50 = vld [vmem:[#allocation22 + $0x70] sm:$0xff] }
0x159a   : > { %7999 = vmatprep.subr.bf16.mxu1 %v9223_v49  ;;  %v8025_v55 = vpack.c.bf16 %v4245_v50, %v4243_v52  ;;  %v4354_v52 = vld [vmem:[#allocation25 + $0x30] sm:$0xff]  ;;  %v4355_v50 = vld [vmem:[#allocation25 + $0x38] sm:$0xff] }
0x159d   : > { %8001 = vmatpush3.bf16.msra.mxu1 %v8000_v21  ;;  %v4250_v21 = vld [vmem:[#allocation22 + $0x98] sm:$0xff] }
0x159e   : > { %8002 = vmatprep.subr.bf16.mxu1 %v9223_v49  ;;  %v8027_v22 = vpack.c.bf16 %v4250_v21, %v4248_v11  ;;  %v4373_v11 = vld [vmem:[#allocation25 + $0xc8] sm:$0xff]  ;;  %v8057_v21 = vpack.c.bf16 %v4355_v50, %v4354_v52 }
0x15a1   : > { %8004 = vmatpush3.bf16.msra.mxu1 %v8003_v17  ;;  %v4249_v17 = vld [vmem:[#allocation22 + $0x90] sm:$0xff] }
0x15a2   : > { %8005 = vmatprep.subr.bf16.mxu1 %v9223_v49  ;;  %v8029_v26 = vpack.c.bf16 %v4249_v17, %v4247_v8  ;;  %v4356_v8 = vld [vmem:[#allocation25 + $0x40] sm:$0xff]  ;;  %v4357_v17 = vld [vmem:[#allocation25 + $0x48] sm:$0xff] }
0x15a5   : > { %8007 = vmatpush3.bf16.msra.mxu1 %v8006_v16  ;;  %v4254_v16 = vld [vmem:[#allocation22 + $0xb8] sm:$0xff] }
0x15a6   : > { %8008 = vmatprep.subr.bf16.mxu1 %v9223_v49 }
0x15a9   : > { %8010 = vmatpush3.bf16.msra.mxu1 %v8009_v29  ;;  %v8031_v29 = vpack.c.bf16 %v4254_v16, %v4252_v23  ;;  %v4374_v23 = vld [vmem:[#allocation25 + $0xd0] sm:$0xff]  ;;  %v8061_v16 = vpack.c.bf16 %v4357_v17, %v4356_v8 }
0x15aa   : > { %v4486_v17 = vld [vmem:[#allocation12 + $0x198] sm:$0xff] }
0x165d   : > { %v3885_v37 = vpop.f32.mrb[32].mxu0 }
0x165e   : > { %v7207_v38 = vpop.f32.mrb[33].mxu0  ;;  %v3889_v39 = vsel %vm1263_vm4, %v3885_v37, -inf }
0x165f   : > { %3890 = vmax.xlane.f32.xlu1 %v3889_v39 }
0x1665   : > { %v3969_v42 = vpop.f32.mrb[34].mxu0 }
0x1666   : > { %v7214_v44 = vpop.f32.mrb[35].mxu0  ;;  %v3973_v1 = vsel %vm1263_vm4, %v3969_v42, -inf }
0x1667   : > { %3974 = vmax.xlane.f32.xlu0 %v3973_v1  ;;  %v4234_v44 = vld [vmem:[#allocation22 + $0x18] sm:$0xff]  ;;  %v4231_v1 = vld [vmem:[#allocation22] sm:$0xff] }
0x16ec   : > { %v3891_v46 = vpop.xlane.xlu1 %3890 }
0x16ed   : > { %v3892_v48 = vsub.f32 %v3885_v37, %v3891_v46 }
0x16ef   : > { %v3893_v3 = vmul.f32 1.442695, %v3892_v48  ;;  %v4233_v48 = vld [vmem:[#allocation22 + $0x10] sm:$0xff] }
0x16f0   : > { %v8013_v4 = vpack.c.bf16 %v4233_v48, %v4231_v1  ;;  %v4259_v1 = vld [vmem:[#allocation22 + $0xe0] sm:$0xff] }
0x16f1   : > { %8607 = vpow2.f32 %v3893_v3  ;;  %v4236_v3 = vld [vmem:[#allocation22 + $0x28] sm:$0xff] }
0x16f4   : > { %v3975_v6 = vpop.xlane.xlu0 %3974 }
0x16f5   : > { %v3976_v7 = vsub.f32 %v3969_v42, %v3975_v6  ;;  %v4232_v42 = vld [vmem:[#allocation22 + $0x8] sm:$0xff]  ;;  %v4135_v6 = vrot.slane %v10341_v24, %v10051_v40 }
0x16f6   : > { %v8011_v46 = vpack.c.bf16 %v4234_v44, %v4232_v42 }
0x16f7   : > { %v3977_v12 = vmul.f32 1.442695, %v3976_v7 }
0x16f9   : > { %8609 = vpow2.f32 %v3977_v12 }
0x16fb   : > { %v8608_v62 = vpop.eup %8607 }
0x16fc   : > { %v3895_v54 = vsel %vm1263_vm4, %v8608_v62, 0.0 }
0x16fd   : > { %3896 = vadd.xlane.f32.xlu1 %v3895_v54 }
0x1703   : > { %v8610_v56 = vpop.eup %8609 }
0x1704   : > { %v3979_v57 = vsel %vm1263_vm4, %v8610_v56, 0.0 }
0x1705   : > { %3980 = vadd.xlane.f32.xlu0 %v3979_v57  ;;  %v4235_v57 = vld [vmem:[#allocation22 + $0x20] sm:$0xff] }
0x1706   : > { %v8017_v60 = vpack.c.bf16 %v4237_v59, %v4235_v57  ;;  %v4350_v57 = vld [vmem:[#allocation25 + $0x10] sm:$0xff]  ;;  %v4351_v59 = vld [vmem:[#allocation25 + $0x18] sm:$0xff] }
0x1707   : > { %v8049_v63 = vpack.c.bf16 %v4351_v59, %v4350_v57  ;;  %v4378_v59 = vld [vmem:[#allocation25 + $0xf0] sm:$0xff] }
0x178a   : > { %v3897_v32 = vpop.xlane.xlu1 %3896 }
0x1792   : > { %v3981_v31 = vpop.xlane.xlu0 %3980 }
0x1793   : > { %8611 = vrcp.f32 %v3981_v31  ;;  %v4256_v31 = vld [vmem:[#allocation22 + $0xc8] sm:$0xff] }
0x1794   : > { %8613 = vrcp.f32 %v3897_v32  ;;  %v4258_v32 = vld [vmem:[#allocation22 + $0xd8] sm:$0xff] }
0x179d   : > { %v8612_v34 = vpop.eup %8611 }
0x179e   : > { %v3983_v14 = vmul.f32 %v8612_v34, %v8610_v56  ;;  %v8614_v35 = vpop.eup %8613  ;;  %v8033_v34 = vpack.c.bf16 %v4253_v28, %v4251_v27  ;;  %v4358_v28 = vld [vmem:[#allocation25 + $0x50] sm:$0xff] }
0x179f   : > { %v3899_v37 = vmul.f32 %v8614_v35, %v8608_v62  ;;  %v4255_v35 = vld [vmem:[#allocation22 + $0xc0] sm:$0xff] }
0x17a0   : > { %7220 = vmatmul.mubr.msk.f32.vlgmr.msra.gmra.mrb[36].mxu0 %vm1263_vm4, %v3983_v14  ;;  %v8035_v14 = vpack.c.bf16 %v4258_v32, %v4256_v31  ;;  %v4376_v31 = vld [vmem:[#allocation25 + $0xe0] sm:$0xff]  ;;  %v4377_v32 = vld [vmem:[#allocation25 + $0xe8] sm:$0xff] }
0x17a1   : > { %7986 = vmatpush3.bf16.msra.mxu0 %v7985_v45  ;;  %7226 = vmatprep.mubr.msk.f32.mxu0 %vm9222_vm5, %v9221_v0  ;;  %v8015_v45 = vpack.c.bf16 %v4238_v53, %v4236_v3  ;;  %v4364_v3 = vld [vmem:[#allocation25 + $0x80] sm:$0xff]  ;;  %v4365_v53 = vld [vmem:[#allocation25 + $0x88] sm:$0xff] }
0x17a2   : > { %8012 = vmatprep.subr.bf16.mxu0 %v8011_v46  ;;  %v4261_v46 = vld [vmem:[#allocation22 + $0xf0] sm:$0xff] }
0x17a3   : > { %v8041_v48 = vpack.c.bf16 %v4261_v46, %v4259_v1 }
0x17a8   : > { %7227 = vmatmul.mubr.msk.f32.vlgmr.msra.gmra.mrb[36].mxu0 %vm1263_vm4, %v3899_v37  ;;  %v4257_v37 = vld [vmem:[#allocation22 + $0xd0] sm:$0xff] }
0x17a9   : > { %4339 = vmatprep.mubr.f32.mxu0 %v9221_v0  ;;  %8014 = vmatpush1.bf16.msra.mxu0 %v8013_v4  ;;  %v8037_v42 = vpack.c.bf16 %v4257_v37, %v4255_v35  ;;  %v4348_v4 = vld [vmem:[#allocation25] sm:$0xff] }
0x17aa   : > { %8016 = vmatprep.subr.bf16.mxu0 %v8015_v45  ;;  %v8043_v45 = vpack.c.bf16 %v4365_v53, %v4364_v3  ;;  %v4224_v53 = vrot.slane %v10341_v24, %v10054_v41 }
0x17ac   : > { %8044 = vmatprep.subr.bf16.mxu1 %v8043_v45 }
0x17ad   : > { %8018 = vmatpush1.bf16.msra.mxu0 %v8017_v60  ;;  %v4368_v60 = vld [vmem:[#allocation25 + $0xa0] sm:$0xff] }
0x17ae   : > { %8020 = vmatprep.subr.bf16.mxu0 %v8019_v51  ;;  %v8051_v51 = vpack.c.bf16 %v4369_v61, %v4368_v60  ;;  %v4362_v61 = vld [vmem:[#allocation25 + $0x70] sm:$0xff] }
0x17b1   : > { %8022 = vmatpush1.bf16.msra.mxu0 %v8021_v5  ;;  %v4370_v5 = vld [vmem:[#allocation25 + $0xb0] sm:$0xff] }
0x187b   : > { %v4128_v38 = vpop.f32.mrb[36].mxu0 }
0x187c   : > { %v7228_v39 = vpop.f32.mrb[37].mxu0  ;;  %7262 = vmatmul.mubr.f32.vlgmr.msra.gmra.mrb[30].mxu1 %v4128_v38  ;;  %v4260_v38 = vld [vmem:[#allocation22 + $0xe8] sm:$0xff] }
0x187d   : > { %v4262_v39 = vld [vmem:[#allocation22 + $0xf8] sm:$0xff] }
0x187e   : > { %v8039_v44 = vpack.c.bf16 %v4262_v39, %v4260_v38 }
0x194f   : > { %v4202_v7 = vpop.f32.mrb[30].mxu1 }
0x1950   : > { %v4203_v12 = vadd.f32 %v4202_v7, %v4135_v6  ;;  %v7263_v62 = vpop.f32.mrb[31].mxu1  ;;  %v4349_v6 = vld [vmem:[#allocation25 + $0x8] sm:$0xff]  ;;  %v4366_v7 = vld [vmem:[#allocation25 + $0x90] sm:$0xff] }
0x1951   : > { %v8045_v62 = vpack.c.bf16 %v4349_v6, %v4348_v4 }
0x1952   : > { %v10405_v54 = vadd.f32 %v4203_v12, %v10367_v30  ;;  %v4244_v30 = vld [vmem:[#allocation22 + $0x68] sm:$0xff]  ;;  %v4367_v12 = vld [vmem:[#allocation25 + $0x98] sm:$0xff] }
0x1953   : > { %v8023_v10 = vpack.c.bf16 %v4246_v9, %v4244_v30  ;;  %8046 = vmatpush3.bf16.msra.mxu1 %v8045_v62  ;;  %v4371_v30 = vld [vmem:[#allocation25 + $0xb8] sm:$0xff]  ;;  %v8053_v9 = vpack.c.bf16 %v4353_v2, %v4352_v33  ;;  %v4360_v62 = vld [vmem:[#allocation25 + $0x60] sm:$0xff] }
0x1954   : > { %4207 = vadd.xlane.f32.xlu0 %v10405_v54  ;;  %v4210_v56 = vmul.f32 %v10405_v54, %v10405_v54  ;;  %v4263_v33 = vld [vmem:[#allocation24] sm:$0x3] }
0x1955   : > { %8024 = vmatprep.subr.bf16.mxu0 %v8023_v10  ;;  %v8055_v10 = vpack.c.bf16 %v4371_v30, %v4370_v5  ;;  %v4268_v2 = vrot.slane %v4263_v33, %v9852_v15  ;;  %v4272_v5 = vrot.slane %v4263_v33, %v9859_v18  ;;  %v4503_v33 = vld [vmem:[#allocation12 + $0x220] sm:$0xff] }
0x1956   : > { %4211 = vadd.xlane.f32.xlu1 %v4210_v56  ;;  %8026 = vmatpush1.bf16.msra.mxu0 %v8025_v55  ;;  %v8047_v56 = vpack.c.bf16 %v4367_v12, %v4366_v7  ;;  %v4372_v55 = vld [vmem:[#allocation25 + $0xc0] sm:$0xff] }
0x1957   : > { %8028 = vmatprep.subr.bf16.mxu0 %v8027_v22  ;;  %v8059_v22 = vpack.c.bf16 %v4373_v11, %v4372_v55  ;;  %v4484_v11 = vld [vmem:[#allocation12 + $0x188] sm:$0xff] }
0x1958   : > { %8048 = vmatprep.subr.bf16.mxu1 %v8047_v56  ;;  %v4361_v56 = vld [vmem:[#allocation25 + $0x68] sm:$0xff] }
0x1959   : > { %8050 = vmatpush3.bf16.msra.mxu1 %v8049_v63  ;;  %v8069_v57 = vpack.c.bf16 %v4361_v56, %v4360_v62  ;;  %v4363_v63 = vld [vmem:[#allocation25 + $0x78] sm:$0xff]  ;;  %v4497_v62 = vld [vmem:[#allocation12 + $0x1f0] sm:$0xff] }
0x195a   : > { %8030 = vmatpush1.bf16.msra.mxu0 %v8029_v26  ;;  %8052 = vmatprep.subr.bf16.mxu1 %v8051_v51  ;;  %v4375_v26 = vld [vmem:[#allocation25 + $0xd8] sm:$0xff]  ;;  %v8073_v51 = vpack.c.bf16 %v4363_v63, %v4362_v61  ;;  %v4501_v63 = vld [vmem:[#allocation12 + $0x210] sm:$0xff] }
0x195b   : > { %8032 = vmatprep.subr.bf16.mxu0 %v8031_v29  ;;  %v8063_v27 = vpack.c.bf16 %v4375_v26, %v4374_v23  ;;  %v4359_v29 = vld [vmem:[#allocation25 + $0x58] sm:$0xff]  ;;  %v4485_v23 = vld [vmem:[#allocation12 + $0x190] sm:$0xff] }
0x195c   : > { %v4488_v26 = vld [vmem:[#allocation12 + $0x1a8] sm:$0xff] }
0x195d   : > { %8054 = vmatpush3.bf16.msra.mxu1 %v8053_v9 }
0x195e   : > { %8034 = vmatpush1.bf16.msra.mxu0 %v8033_v34  ;;  %8056 = vmatprep.subr.bf16.mxu1 %v8055_v10  ;;  %v8065_v34 = vpack.c.bf16 %v4359_v29, %v4358_v28  ;;  %v4490_v28 = vld [vmem:[#allocation12 + $0x1b8] sm:$0xff]  ;;  %v4493_v29 = vld [vmem:[#allocation12 + $0x1d0] sm:$0xff] }
0x195f   : > { %8036 = vmatprep.subr.bf16.mxu0 %v8035_v14  ;;  %v8067_v14 = vpack.c.bf16 %v4377_v32, %v4376_v31  ;;  %v8079_v31 = vpack.c.bf16 %v4493_v29, %v4490_v28  ;;  %v4382_v32 = vsub.s32 7, %v9847_v13  ;;  %v4515_v28 = vld [vmem:[#allocation12 + $0x280] sm:$0xff] }
0x1961   : > { %8058 = vmatpush3.bf16.msra.mxu1 %v8057_v21  ;;  %v4487_v21 = vld [vmem:[#allocation12 + $0x1a0] sm:$0xff] }
0x1962   : > { %8038 = vmatpush1.bf16.msra.mxu0 %v8037_v42  ;;  %8060 = vmatprep.subr.bf16.mxu1 %v8059_v22  ;;  %v4483_v22 = vld [vmem:[#allocation12 + $0x180] sm:$0xff]  ;;  %v8075_v8 = vpack.c.bf16 %v4487_v21, %v4484_v11  ;;  %v4509_v11 = vld [vmem:[#allocation12 + $0x250] sm:$0xff] }
0x1963   : > { %8040 = vmatprep.subr.bf16.mxu0 %v8039_v44 }
0x1965   : > { %8062 = vmatpush3.bf16.msra.mxu1 %v8061_v16  ;;  %v8077_v16 = vpack.c.bf16 %v4486_v17, %v4483_v22  ;;  %v4512_v22 = vld [vmem:[#allocation12 + $0x268] sm:$0xff]  ;;  %v4517_v17 = vld [vmem:[#allocation12 + $0x290] sm:$0xff] }
0x1966   : > { %8042 = vmatpush1.bf16.msra.mxu0 %v8041_v48  ;;  %8064 = vmatprep.subr.bf16.mxu1 %v8063_v27  ;;  %v4228_v48 = vsub.s32 6, %v9847_v13  ;;  %v8108_v27 = vpack.c.bf16 %v4488_v26, %v4485_v23  ;;  %v8120_v23 = vpack.c.bf16 %v4512_v22, %v4509_v11  ;;  %v6019_v13 = vld [vmem:[#allocation28 + $0x30] sm:$0xff] }
0x1967   : > { %8076 = vmatprep.subr.bf16.mxu0 %v8075_v8  ;;  %v4514_v8 = vld [vmem:[#allocation12 + $0x278] sm:$0xff] }
0x1968   : > { %v4229_v6 = vrot.slane %v10341_v24, %v4228_v48  ;;  %v8095_v26 = vpack.c.bf16 %v4517_v17, %v4514_v8 }
0x1969   : > { %8066 = vmatpush3.bf16.msra.mxu1 %v8065_v34 }
0x196a   : > { %8068 = vmatprep.subr.bf16.mxu1 %v8067_v14  ;;  %v4383_v14 = vrot.slane %v10341_v24, %v4382_v32  ;;  %v4499_v24 = vld [vmem:[#allocation12 + $0x200] sm:$0xff] }
0x196d   : > { %8070 = vmatpush3.bf16.msra.mxu1 %v8069_v57  ;;  %v4500_v57 = vld [vmem:[#allocation12 + $0x208] sm:$0xff] }
0x19e1   : > { %v4208_v35 = vpop.xlane.xlu0 %4207 }
0x19e2   : > { %v4209_v37 = vmul.f32 0.015625, %v4208_v35 }
0x19e3   : > { %v4212_v38 = vpop.xlane.xlu1 %4211 }
0x19e4   : > { %v4214_v39 = vmul.f32 %v4209_v37, %v4209_v37  ;;  %v4213_v42 = vmul.f32 0.015625, %v4212_v38  ;;  %v4217_v3 = vsub.f32 %v10405_v54, %v4209_v37  ;;  %v4379_v54 = vld [vmem:[#allocation25 + $0xf8] sm:$0xff] }
0x19e5   : > { %v8071_v60 = vpack.c.bf16 %v4379_v54, %v4378_v59  ;;  %v8114_v59 = vpack.c.bf16 %v4500_v57, %v4497_v62  ;;  %v4502_v54 = vld [vmem:[#allocation12 + $0x218] sm:$0xff] }
0x19e6   : > { %v4215_v44 = vsub.f32 %v4213_v42, %v4214_v39 }
0x19e7   : > { %8072 = vmatprep.subr.bf16.mxu1 %v8071_v60  ;;  %v4505_v60 = vld [vmem:[#allocation12 + $0x230] sm:$0xff] }
0x19e8   : > { %v4216_v1 = vmax.f32 %v4215_v44, 0.0  ;;  %8074 = vmatpush3.bf16.msra.mxu1 %v8073_v51  ;;  %v4489_v44 = vld [vmem:[#allocation12 + $0x1b0] sm:$0xff]  ;;  %v8087_v61 = vpack.c.bf16 %v4505_v60, %v4502_v54  ;;  %v4504_v51 = vld [vmem:[#allocation12 + $0x228] sm:$0xff] }
0x19e9   : > { %8107 = vmatprep.subr.bf16.mxu1 %v9223_v49 }
0x19ea   : > { %v4218_v46 = vadd.f32 1e-05, %v4216_v1  ;;  %v4492_v1 = vld [vmem:[#allocation12 + $0x1c8] sm:$0xff] }
0x19ec   : > { %8615 = vrsqrt.f32 %v4218_v46  ;;  %v4491_v46 = vld [vmem:[#allocation12 + $0x1c0] sm:$0xff] }
0x19f6   : > { %v8616_v4 = vpop.eup %8615 }
0x19f7   : > { %v4220_v45 = vmul.f32 %v8616_v4, %v4217_v3  ;;  %v8081_v3 = vpack.c.bf16 %v4492_v1, %v4489_v44  ;;  %v4521_v44 = vld [vmem:[#allocation12 + $0x2b0] sm:$0xff]  ;;  %v4524_v1 = vld [vmem:[#allocation12 + $0x2c8] sm:$0xff] }
0x19f9   : > { %v4225_v7 = vmul.f32 %v4224_v53, %v4220_v45  ;;  %v4494_v53 = vld [vmem:[#allocation12 + $0x1d8] sm:$0xff]  ;;  %v4496_v45 = vld [vmem:[#allocation12 + $0x1e8] sm:$0xff] }
0x19fa   : > { %v8111_v4 = vpack.c.bf16 %v4494_v53, %v4491_v46  ;;  %v4526_v46 = vld [vmem:[#allocation12 + $0x2d8] sm:$0xff] }
0x19fb   : > { %v4230_v12 = vadd.f32 %v4229_v6, %v4225_v7  ;;  %v8083_v6 = vpack.c.bf16 %v4499_v24, %v4496_v45  ;;  %v4495_v7 = vld [vmem:[#allocation12 + $0x1e0] sm:$0xff]  ;;  %v4525_v24 = vld [vmem:[#allocation12 + $0x2d0] sm:$0xff] }
0x19fd   : > { %4340 = vmatmul.mubr.f32.vlgmr.msra.gmra.mrb[38].mxu0 %v4230_v12 }
0x19fe   : > { %4613 = vmatprep.mubr.f32.mxu0 %v9221_v0  ;;  %8078 = vmatpush1.bf16.msra.mxu0 %v8077_v16  ;;  %v4513_v16 = vld [vmem:[#allocation12 + $0x270] sm:$0xff] }
0x19ff   : > { %8080 = vmatprep.subr.bf16.mxu0 %v8079_v31  ;;  %v4518_v31 = vld [vmem:[#allocation12 + $0x298] sm:$0xff] }
0x1a02   : > { %8082 = vmatpush1.bf16.msra.mxu0 %v8081_v3  ;;  %v4529_v3 = vld [vmem:[#allocation12 + $0x2f0] sm:$0xff] }
0x1a03   : > { %8084 = vmatprep.subr.bf16.mxu0 %v8083_v6  ;;  %v8103_v45 = vpack.c.bf16 %v4529_v3, %v4526_v46  ;;  %v4528_v6 = vld [vmem:[#allocation12 + $0x2e8] sm:$0xff] }
0x1a04   : > { %v8105_v62 = vpack.c.bf16 %v4528_v6, %v4525_v24 }
0x1ad0   : > { %v4341_v30 = vpop.f32.mrb[38].mxu0 }
0x1ad1   : > { %v4342_v9 = vadd.f32 %v4341_v30, %v4268_v2  ;;  %v4343_v10 = vpop.f32.mrb[39].mxu0  ;;  %v8089_v2 = vpack.c.bf16 %v4504_v51, %v4501_v63 }
0x1ad2   : > { %v4344_v52 = vadd.f32 %v4343_v10, %v4272_v5  ;;  %v4506_v5 = vld [vmem:[#allocation12 + $0x238] sm:$0xff]  ;;  %v4511_v10 = vld [vmem:[#allocation12 + $0x260] sm:$0xff] }
0x1ad3   : > { %v4346_v55 = vmax.f32 %v4342_v9, 0.0  ;;  %v8117_v30 = vpack.c.bf16 %v4506_v5, %v4503_v33  ;;  %v4508_v9 = vld [vmem:[#allocation12 + $0x248] sm:$0xff] }
0x1ad4   : > { %v4347_v50 = vmax.f32 %v4344_v52, 0.0  ;;  %v8091_v52 = vpack.c.bf16 %v4511_v10, %v4508_v9 }
0x1ad6   : > { %4448 = vmatprep.mubr.f32.mxu1 %v4347_v50  ;;  %v4507_v50 = vld [vmem:[#allocation12 + $0x240] sm:$0xff] }
0x1ad7   : > { %4449 = vmatmul.mubr.f32.vlgmr.msra.gmra.mrb[32].mxu1 %v4346_v55  ;;  %v4510_v55 = vld [vmem:[#allocation12 + $0x258] sm:$0xff] }
0x1ad8   : > { %7296 = vmatprep.mubr.msk.f32.mxu1 %vm9222_vm5, %v9221_v0  ;;  %8109 = vmatpush3.bf16.msra.mxu1 %v8108_v27  ;;  %v8093_v21 = vpack.c.bf16 %v4510_v55, %v4507_v50  ;;  %v4516_v27 = vld [vmem:[#allocation12 + $0x288] sm:$0xff] }
0x1ad9   : > { %8110 = vmatprep.subr.bf16.mxu1 %v9223_v49  ;;  %v8097_v29 = vpack.c.bf16 %v4516_v27, %v4513_v16 }
0x1adc   : > { %8112 = vmatpush3.bf16.msra.mxu1 %v8111_v4  ;;  %v8126_v4 = vpack.c.bf16 %v4524_v1, %v4521_v44 }
0x1add   : > { %8113 = vmatprep.subr.bf16.mxu1 %v9223_v49 }
0x1ae0   : > { %8115 = vmatpush3.bf16.msra.mxu1 %v8114_v59 }
0x1ae1   : > { %8116 = vmatprep.subr.bf16.mxu1 %v9223_v49 }
0x1ae4   : > { %8118 = vmatpush3.bf16.msra.mxu1 %v8117_v30 }
0x1ae5   : > { %8119 = vmatprep.subr.bf16.mxu1 %v9223_v49 }
0x1ae8   : > { %8121 = vmatpush3.bf16.msra.mxu1 %v8120_v23 }
0x1ae9   : > { %8122 = vmatprep.subr.bf16.mxu1 %v9223_v49 }
0x1baa   : > { %v6737_v34 = vpop.f32.mrb[32].mxu1 }
0x1bab   : > { %v6738_v35 = vpop.f32.mrb[33].mxu1 }
0x1bac   : > { %v6739_v37 = vadd.f32 %v6738_v35, %v6737_v34  ;;  %v4520_v34 = vld [vmem:[#allocation12 + $0x2a8] sm:$0xff]  ;;  %v8123_v35 = vpack.c.bf16 %v4518_v31, %v4515_v28 }
0x1bae   : > { %v4451_v38 = vadd.f32 %v6739_v37, %v4383_v14  ;;  %v4523_v14 = vld [vmem:[#allocation12 + $0x2c0] sm:$0xff]  ;;  %8124 = vmatpush3.bf16.msra.mxu1 %v8123_v35 }
0x1baf   : > { %v8099_v37 = vpack.c.bf16 %v4523_v14, %v4520_v34  ;;  %8125 = vmatprep.subr.bf16.mxu1 %v9223_v49 }
0x1bb0   : > { %v10428_v39 = vadd.f32 %v4451_v38, %v4230_v12  ;;  %v4498_v12 = vld [vmem:[#allocation12 + $0x1f8] sm:$0xff]  ;;  %v4519_v38 = vld [vmem:[#allocation12 + $0x2a0] sm:$0xff] }
0x1bb1   : > { %v8085_v56 = vpack.c.bf16 %v4498_v12, %v4495_v7  ;;  %v4527_v7 = vld [vmem:[#allocation12 + $0x2e0] sm:$0xff]  ;;  %v4530_v12 = vld [vmem:[#allocation12 + $0x2f8] sm:$0xff] }
0x1bb2   : > { %4455 = vadd.xlane.f32.xlu0 %v10428_v39  ;;  %v4458_v42 = vmul.f32 %v10428_v39, %v10428_v39  ;;  %8127 = vmatpush3.bf16.msra.mxu1 %v8126_v4 }
0x1bb3   : > { %8086 = vmatpush1.bf16.msra.mxu0 %v8085_v56  ;;  %v8129_v56 = vpack.c.bf16 %v4530_v12, %v4527_v7  ;;  %8128 = vmatprep.subr.bf16.mxu1 %v9223_v49 }
0x1bb4   : > { %4459 = vadd.xlane.f32.xlu1 %v4458_v42  ;;  %8088 = vmatprep.subr.bf16.mxu0 %v8087_v61  ;;  %v4522_v42 = vld [vmem:[#allocation12 + $0x2b8] sm:$0xff] }
0x1bb5   : > { %v8101_v53 = vpack.c.bf16 %v4522_v42, %v4519_v38 }
0x1bb6   : > { %8130 = vmatpush3.bf16.msra.mxu1 %v8129_v56 }
0x1bb7   : > { %8090 = vmatpush1.bf16.msra.mxu0 %v8089_v2  ;;  %8155 = vmatprep.subr.bf16.mxu1 %v9223_v49  ;;  %v2956_v2 = vld [vmem:[#allocation27 + $0x8] sm:$0xff] }
0x1bb8   : > { %8092 = vmatprep.subr.bf16.mxu0 %v8091_v52  ;;  %v4472_v30 = vrot.slane %v2956_v2, %v9852_v15  ;;  %v4477_v52 = vrot.slane %v2956_v2, %v9859_v18 }
0x1bbb   : > { %8094 = vmatpush1.bf16.msra.mxu0 %v8093_v21 }
0x1bbc   : > { %8096 = vmatprep.subr.bf16.mxu0 %v8095_v26 }
0x1bbf   : > { %8098 = vmatpush1.bf16.msra.mxu0 %v8097_v29 }
0x1bc0   : > { %8100 = vmatprep.subr.bf16.mxu0 %v8099_v37 }
0x1bc3   : > { %8102 = vmatpush1.bf16.msra.mxu0 %v8101_v53 }
0x1bc4   : > { %8104 = vmatprep.subr.bf16.mxu0 %v8103_v45 }
0x1bc7   : > { %8106 = vmatpush1.bf16.msra.mxu0 %v8105_v62 }
0x1bc8   : > { %7299 = vmatprep.subr.mxu0 %v9221_v0 }
0x1c3f   : > { %v4456_v57 = vpop.xlane.xlu0 %4455 }
0x1c40   : > { %v4457_v59 = vmul.f32 0.015625, %v4456_v57 }
0x1c41   : > { %v4460_v54 = vpop.xlane.xlu1 %4459 }
0x1c42   : > { %v4462_v60 = vmul.f32 %v4457_v59, %v4457_v59  ;;  %v4461_v61 = vmul.f32 0.015625, %v4460_v54  ;;  %v4465_v5 = vsub.f32 %v10428_v39, %v4457_v59  ;;  %v4532_v39 = vld [vmem:[#allocation13 + $0x3] sm:$0x7] }
0x1c43   : > { %v4537_v11 = vrot.slane %v4532_v39, %v9852_v15  ;;  %v4541_v21 = vrot.slane %v4532_v39, %v9859_v18  ;;  %v4545_v16 = vrot.slane %v4532_v39, %v9873_v36  ;;  %v4697_v39 = vld [vmem:[#allocation15 + $0xb0] sm:$0xff] }
0x1c44   : > { %v4463_v63 = vsub.f32 %v4461_v61, %v4462_v60  ;;  %v4691_v61 = vld [vmem:[#allocation15 + $0x80] sm:$0xff] }
0x1c46   : > { %v4464_v51 = vmax.f32 %v4463_v63, 0.0  ;;  %v4692_v63 = vld [vmem:[#allocation15 + $0x88] sm:$0xff] }
0x1c48   : > { %v4466_v33 = vadd.f32 1e-05, %v4464_v51 }
0x1c4a   : > { %8617 = vrsqrt.f32 %v4466_v33  ;;  %v8132_v33 = vpack.c.bf16 %v4692_v63, %v4691_v61  ;;  %v5222_v63 = vld [vmem:[#allocation18 + $0x160] sm:$0xff] }
0x1c54   : > { %v8618_v9 = vpop.eup %8617 }
0x1c55   : > { %v4468_v10 = vmul.f32 %v8618_v9, %v4465_v5  ;;  %v4693_v5 = vld [vmem:[#allocation15 + $0x90] sm:$0xff] }
0x1c57   : > { %v4473_v50 = vmul.f32 %v4472_v30, %v4468_v10  ;;  %v4694_v30 = vld [vmem:[#allocation15 + $0x98] sm:$0xff]  ;;  %v4695_v10 = vld [vmem:[#allocation15 + $0xa0] sm:$0xff] }
0x1c58   : > { %v8135_v9 = vpack.c.bf16 %v4694_v30, %v4693_v5 }
0x1c59   : > { %v10444_v55 = vadd.f32 %v4477_v52, %v4473_v50  ;;  %v4696_v52 = vld [vmem:[#allocation15 + $0xa8] sm:$0xff] }
0x1c5a   : > { %v8138_v50 = vpack.c.bf16 %v4696_v52, %v4695_v10  ;;  %v5228_v10 = vld [vmem:[#allocation18 + $0x190] sm:$0xff]  ;;  %v5231_v52 = vld [vmem:[#allocation18 + $0x1a8] sm:$0xff] }
0x1c5b   : > { %4614 = vmatmul.mubr.f32.vlgmr.msra.gmra.mrb[40].mxu0 %v10444_v55  ;;  %7297 = vmatmul.mubr.f32.vlgmr.msra.gmra.mrb[34].mxu1 %v10444_v55 }
0x1c5c   : > { %7301 = vmatprep.mubr.msk.f32.mxu0 %vm9222_vm5, %v9221_v0  ;;  %7386 = vmatprep.mubr.msk.f32.mxu1 %vm9222_vm5, %v9221_v0 }
0x1d2e   : > { %v4615_v22 = vpop.f32.mrb[40].mxu0  ;;  %v4686_v8 = vpop.f32.mrb[34].mxu1 }
0x1d2f   : > { %v4616_v17 = vadd.f32 %v4615_v22, %v4537_v11  ;;  %v4617_v23 = vpop.f32.mrb[41].mxu0  ;;  %v7298_v26 = vpop.f32.mrb[35].mxu1  ;;  %v4687_v29 = vadd.f32 %v4686_v8, %v4545_v16  ;;  %v4698_v11 = vld [vmem:[#allocation15 + $0xb8] sm:$0xff]  ;;  %v4699_v22 = vld [vmem:[#allocation15 + $0xc0] sm:$0xff]  ;;  %v4700_v8 = vld [vmem:[#allocation15 + $0xc8] sm:$0xff] }
0x1d30   : > { %v4618_v27 = vadd.f32 %v4617_v23, %v4541_v21  ;;  %v8141_v21 = vpack.c.bf16 %v4698_v11, %v4697_v39  ;;  %v4701_v23 = vld [vmem:[#allocation15 + $0xd0] sm:$0xff]  ;;  %v4702_v26 = vld [vmem:[#allocation15 + $0xd8] sm:$0xff] }
0x1d31   : > { %v4707_v28 = vmul.f32 %v9862_v19, %v4616_v17  ;;  %v4790_v31 = vmul.f32 %v9865_v20, %v4616_v17  ;;  %v4872_v34 = vmul.f32 %v9865_v20, %v4687_v29  ;;  %v4789_v60 = vmul.f32 %v9862_v19, %v4687_v29 }
0x1d32   : > { %7300 = vmatpush3.xpose.msra.mxu0 %v4618_v27  ;;  %v8144_v17 = vpack.c.bf16 %v4700_v8, %v4699_v22  ;;  %v8147_v16 = vpack.c.bf16 %v4702_v26, %v4701_v23  ;;  %v5232_v22 = vld [vmem:[#allocation18 + $0x1b0] sm:$0xff]  ;;  %v5235_v8 = vld [vmem:[#allocation18 + $0x1c8] sm:$0xff] }
0x1d33   : > { %7304 = vmatprep.subr.mxu0 %v9221_v0 }
0x1d35   : > { %7302 = vmatmul.mubr.f32.vlgmr.msra.gmra.mrb[42].mxu0 %v4707_v28  ;;  %v4704_v28 = vld [vmem:[#allocation15 + $0xe8] sm:$0xff] }
0x1d36   : > { %7305 = vmatpush3.xpose.msra.mxu0 %v4618_v27  ;;  %7306 = vmatprep.mubr.msk.f32.mxu0 %vm9222_vm5, %v9221_v0  ;;  %v4703_v27 = vld [vmem:[#allocation15 + $0xe0] sm:$0xff] }
0x1d37   : > { %7309 = vmatprep.subr.mxu0 %v9221_v0  ;;  %v8150_v29 = vpack.c.bf16 %v4704_v28, %v4703_v27  ;;  %v5236_v27 = vld [vmem:[#allocation18 + $0x1d0] sm:$0xff]  ;;  %v5239_v28 = vld [vmem:[#allocation18 + $0x1e8] sm:$0xff] }
0x1d39   : > { %7307 = vmatmul.mubr.f32.vlgmr.msra.gmra.mrb[44].mxu0 %v4790_v31  ;;  %v4705_v31 = vld [vmem:[#allocation15 + $0xf0] sm:$0xff] }
0x1d3a   : > { %7310 = vmatpush3.msra.mxu0 %v4872_v34  ;;  %7311 = vmatprep.mubr.msk.f32.mxu0 %vm9222_vm5, %v9221_v0  ;;  %v4706_v34 = vld [vmem:[#allocation15 + $0xf8] sm:$0xff] }
0x1d3b   : > { %7314 = vmatprep.subr.mxu0 %v9221_v0 }
0x1e08   : > { %v4774_v14 = vpop.f32.mrb[42].mxu0 }
0x1e09   : > { %v4775_v35 = vadd.f32 %v4774_v14, %v10270_v25  ;;  %v7303_v37 = vpop.f32.mrb[43].mxu0  ;;  %v8153_v14 = vpack.c.bf16 %v4706_v34, %v4705_v31 }
0x1e0a   : > { %v5213_v37 = vld [vmem:[#allocation18 + $0x118] sm:$0xff] }
0x1e0b   : > { %v4778_v38 = vsel %vm3250_vm7, %v4775_v35, -inf }
0x1e0c   : > { %4779 = vmax.xlane.f32.xlu1 %v4778_v38  ;;  %v4857_v42 = vpop.f32.mrb[44].mxu0 }
0x1e0d   : > { %v4858_v44 = vadd.f32 %v4857_v42, %v10270_v25  ;;  %v7308_v1 = vpop.f32.mrb[45].mxu0  ;;  %v5210_v42 = vld [vmem:[#allocation18 + $0x100] sm:$0xff] }
0x1e0e   : > { %v5215_v1 = vld [vmem:[#allocation18 + $0x128] sm:$0xff] }
0x1e0f   : > { %v4861_v46 = vsel %vm3250_vm7, %v4858_v44, -inf }
0x1e10   : > { %4862 = vmax.xlane.f32.xlu0 %v4861_v46  ;;  %v5217_v46 = vld [vmem:[#allocation18 + $0x138] sm:$0xff] }
0x1e99   : > { %v4780_v3 = vpop.xlane.xlu1 %4779 }
0x1e9a   : > { %v4781_v53 = vsub.f32 %v4775_v35, %v4780_v3  ;;  %v5211_v35 = vld [vmem:[#allocation18 + $0x108] sm:$0xff] }
0x1e9b   : > { %v8179_v38 = vpack.c.bf16 %v5213_v37, %v5211_v35  ;;  %v5240_v35 = vld [vmem:[#allocation18 + $0x1f0] sm:$0xff] }
0x1e9c   : > { %v4782_v4 = vmul.f32 1.442695, %v4781_v53  ;;  %v8183_v53 = vpack.c.bf16 %v5217_v46, %v5215_v1  ;;  %v5122_v46 = vld [vmem:[#allocation16 + $0x98] sm:$0xff] }
0x1e9d   : > { %v4863_v45 = vpop.xlane.xlu0 %4862 }
0x1e9e   : > { %8619 = vpow2.f32 %v4782_v4  ;;  %v4864_v24 = vsub.f32 %v4858_v44, %v4863_v45  ;;  %v5212_v44 = vld [vmem:[#allocation18 + $0x110] sm:$0xff]  ;;  %v5214_v4 = vld [vmem:[#allocation18 + $0x120] sm:$0xff] }
0x1e9f   : > { %v8181_v3 = vpack.c.bf16 %v5212_v44, %v5210_v42  ;;  %v5216_v45 = vld [vmem:[#allocation18 + $0x130] sm:$0xff]  ;;  %v5120_v42 = vld [vmem:[#allocation16 + $0x88] sm:$0xff] }
0x1ea0   : > { %v4865_v6 = vmul.f32 1.442695, %v4864_v24  ;;  %v5121_v44 = vld [vmem:[#allocation16 + $0x90] sm:$0xff] }
0x1ea2   : > { %8621 = vpow2.f32 %v4865_v6  ;;  %v5219_v6 = vld [vmem:[#allocation18 + $0x148] sm:$0xff] }
0x1ea8   : > { %v8620_v7 = vpop.eup %8619 }
0x1ea9   : > { %v4784_v12 = vsel %vm3250_vm7, %v8620_v7, 0.0 }
0x1eaa   : > { %4785 = vadd.xlane.f32.xlu1 %v4784_v12 }
0x1eac   : > { %v8622_v62 = vpop.eup %8621 }
0x1ead   : > { %v4867_v56 = vsel %vm3250_vm7, %v8622_v62, 0.0 }
0x1eae   : > { %4868 = vadd.xlane.f32.xlu0 %v4867_v56 }
0x1f37   : > { %v4786_v57 = vpop.xlane.xlu1 %4785 }
0x1f3b   : > { %v4869_v25 = vpop.xlane.xlu0 %4868 }
0x1f3c   : > { %8623 = vrcp.f32 %v4869_v25  ;;  %v5218_v25 = vld [vmem:[#allocation18 + $0x140] sm:$0xff] }
0x1f3d   : > { %8625 = vrcp.f32 %v4786_v57  ;;  %v5220_v57 = vld [vmem:[#allocation18 + $0x150] sm:$0xff] }
0x1f46   : > { %v8624_v59 = vpop.eup %8623 }
0x1f47   : > { %v4871_v54 = vmul.f32 %v8624_v59, %v8622_v62  ;;  %v8626_v51 = vpop.eup %8625  ;;  %v8185_v62 = vpack.c.bf16 %v5216_v45, %v5214_v4  ;;  %v5223_v59 = vld [vmem:[#allocation18 + $0x168] sm:$0xff] }
0x1f48   : > { %v4788_v2 = vmul.f32 %v8626_v51, %v8620_v7  ;;  %v5221_v7 = vld [vmem:[#allocation18 + $0x158] sm:$0xff]  ;;  %v5224_v51 = vld [vmem:[#allocation18 + $0x170] sm:$0xff]  ;;  %v5124_v4 = vld [vmem:[#allocation16 + $0xa8] sm:$0xff] }
0x1f49   : > { %7312 = vmatmul.mubr.msk.f32.vlgmr.msra.gmra.mrb[46].mxu0 %vm3250_vm7, %v4871_v54  ;;  %v8187_v56 = vpack.c.bf16 %v5221_v7, %v5219_v6  ;;  %v5225_v54 = vld [vmem:[#allocation18 + $0x178] sm:$0xff]  ;;  %v8193_v5 = vpack.c.bf16 %v5224_v51, %v5222_v63  ;;  %v5129_v63 = vld [vmem:[#allocation16 + $0xd0] sm:$0xff] }
0x1f4a   : > { %7315 = vmatpush3.msra.mxu0 %v4789_v60  ;;  %7316 = vmatprep.mubr.msk.f32.mxu0 %vm9222_vm5, %v9221_v0  ;;  %v8189_v60 = vpack.c.bf16 %v5220_v57, %v5218_v25  ;;  %v8191_v61 = vpack.c.bf16 %v5225_v54, %v5223_v59  ;;  %v5126_v25 = vld [vmem:[#allocation16 + $0xb8] sm:$0xff]  ;;  %v5127_v59 = vld [vmem:[#allocation16 + $0xc0] sm:$0xff]  ;;  %v5128_v54 = vld [vmem:[#allocation16 + $0xc8] sm:$0xff] }
0x1f4b   : > { %8131 = vmatprep.subr.bf16.mxu0 %v9223_v49  ;;  %v5130_v51 = vld [vmem:[#allocation16 + $0xd8] sm:$0xff] }
0x1f51   : > { %7317 = vmatmul.mubr.msk.f32.vlgmr.msra.gmra.mrb[46].mxu0 %vm3250_vm7, %v4788_v2  ;;  %v5229_v2 = vld [vmem:[#allocation18 + $0x198] sm:$0xff] }
0x1f52   : > { %8133 = vmatpush3.bf16.msra.mxu0 %v8132_v33  ;;  %7351 = vmatprep.mubr.msk.f32.mxu0 %vm9222_vm5, %v9221_v0  ;;  %v5227_v33 = vld [vmem:[#allocation18 + $0x188] sm:$0xff] }
0x1f53   : > { %8134 = vmatprep.subr.bf16.mxu0 %v9223_v49  ;;  %v8195_v30 = vpack.c.bf16 %v5229_v2, %v5227_v33  ;;  %v8171_v33 = vpack.c.bf16 %v5130_v51, %v5129_v63  ;;  %v5132_v2 = vld [vmem:[#allocation16 + $0xe8] sm:$0xff] }
0x1f56   : > { %8136 = vmatpush3.bf16.msra.mxu0 %v8135_v9  ;;  %v5226_v9 = vld [vmem:[#allocation18 + $0x180] sm:$0xff] }
0x1f57   : > { %8137 = vmatprep.subr.bf16.mxu0 %v9223_v49  ;;  %v8197_v39 = vpack.c.bf16 %v5228_v10, %v5226_v9  ;;  %v5133_v9 = vld [vmem:[#allocation16 + $0xf0] sm:$0xff]  ;;  %v5134_v10 = vld [vmem:[#allocation16 + $0xf8] sm:$0xff] }
0x1f5a   : > { %8139 = vmatpush3.bf16.msra.mxu0 %v8138_v50  ;;  %v5233_v50 = vld [vmem:[#allocation18 + $0x1b8] sm:$0xff] }
0x1f5b   : > { %8140 = vmatprep.subr.bf16.mxu0 %v9223_v49  ;;  %v8199_v11 = vpack.c.bf16 %v5233_v50, %v5231_v52 }
0x1f5e   : > { %8142 = vmatpush3.bf16.msra.mxu0 %v8141_v21  ;;  %v5230_v21 = vld [vmem:[#allocation18 + $0x1a0] sm:$0xff] }
0x1f5f   : > { %8143 = vmatprep.subr.bf16.mxu0 %v9223_v49  ;;  %v8201_v23 = vpack.c.bf16 %v5232_v22, %v5230_v21  ;;  %v8177_v21 = vpack.c.bf16 %v5134_v10, %v5133_v9 }
0x1f62   : > { %8145 = vmatpush3.bf16.msra.mxu0 %v8144_v17  ;;  %v5237_v17 = vld [vmem:[#allocation18 + $0x1d8] sm:$0xff] }
0x1f63   : > { %8146 = vmatprep.subr.bf16.mxu0 %v9223_v49  ;;  %v8203_v26 = vpack.c.bf16 %v5237_v17, %v5235_v8 }
0x1f66   : > { %8148 = vmatpush3.bf16.msra.mxu0 %v8147_v16  ;;  %v5234_v16 = vld [vmem:[#allocation18 + $0x1c0] sm:$0xff] }
0x1f67   : > { %8149 = vmatprep.subr.bf16.mxu0 %v9223_v49  ;;  %v8205_v31 = vpack.c.bf16 %v5236_v27, %v5234_v16 }
0x1f6a   : > { %8151 = vmatpush3.bf16.msra.mxu0 %v8150_v29  ;;  %v5241_v29 = vld [vmem:[#allocation18 + $0x1f8] sm:$0xff] }
0x1f6b   : > { %8152 = vmatprep.subr.bf16.mxu0 %v9223_v49  ;;  %v8207_v34 = vpack.c.bf16 %v5241_v29, %v5239_v28 }
0x1f6e   : > { %8154 = vmatpush3.bf16.msra.mxu0 %v8153_v14  ;;  %v5238_v14 = vld [vmem:[#allocation18 + $0x1e0] sm:$0xff] }
0x1f6f   : > { %8180 = vmatprep.subr.bf16.mxu0 %v8179_v38  ;;  %v8209_v37 = vpack.c.bf16 %v5240_v35, %v5238_v14  ;;  %v5119_v38 = vld [vmem:[#allocation16 + $0x80] sm:$0xff] }
0x1f70   : > { %v8156_v1 = vpack.c.bf16 %v5120_v42, %v5119_v38 }
0x1f72   : > { %8157 = vmatpush3.bf16.msra.mxu1 %v8156_v1 }
0x1f73   : > { %8158 = vmatprep.subr.bf16.mxu1 %v9223_v49 }
0x2024   : > { %v5015_v24 = vpop.f32.mrb[46].mxu0 }
0x2025   : > { %v7318_v12 = vpop.f32.mrb[47].mxu0  ;;  %7352 = vmatmul.mubr.f32.vlgmr.msra.gmra.mrb[48].mxu0 %v5015_v24 }
0x2026   : > { %8182 = vmatpush1.bf16.msra.mxu0 %v8181_v3  ;;  %5319 = vmatprep.mubr.f32.mxu0 %v9221_v0  ;;  %v8159_v3 = vpack.c.bf16 %v5122_v46, %v5121_v44 }
0x2027   : > { %8184 = vmatprep.subr.bf16.mxu0 %v8183_v53  ;;  %v5123_v53 = vld [vmem:[#allocation16 + $0xa0] sm:$0xff] }
0x2028   : > { %8160 = vmatpush3.bf16.msra.mxu1 %v8159_v3 }
0x2029   : > { %8161 = vmatprep.subr.bf16.mxu1 %v9223_v49 }
0x202a   : > { %8186 = vmatpush1.bf16.msra.mxu0 %v8185_v62 }
0x202b   : > { %8188 = vmatprep.subr.bf16.mxu0 %v8187_v56  ;;  %v5125_v56 = vld [vmem:[#allocation16 + $0xb0] sm:$0xff] }
0x202c   : > { %v8165_v57 = vpack.c.bf16 %v5126_v25, %v5125_v56 }
0x202e   : > { %8190 = vmatpush1.bf16.msra.mxu0 %v8189_v60  ;;  %v8168_v60 = vpack.c.bf16 %v5128_v54, %v5127_v59 }
0x202f   : > { %8192 = vmatprep.subr.bf16.mxu0 %v8191_v61  ;;  %v5243_v61 = vld [vmem:[#allocation19 + $0x2] sm:$0x3] }
0x2030   : > { %v5248_v50 = vrot.slane %v5243_v61, %v9852_v15 }
0x2032   : > { %8194 = vmatpush1.bf16.msra.mxu0 %v8193_v5  ;;  %v5252_v5 = vrot.slane %v5243_v61, %v9859_v18 }
0x2033   : > { %8196 = vmatprep.subr.bf16.mxu0 %v8195_v30 }
0x2036   : > { %8198 = vmatpush1.bf16.msra.mxu0 %v8197_v39 }
0x2037   : > { %8200 = vmatprep.subr.bf16.mxu0 %v8199_v11 }
0x203a   : > { %8202 = vmatpush1.bf16.msra.mxu0 %v8201_v23 }
0x203b   : > { %8204 = vmatprep.subr.bf16.mxu0 %v8203_v26 }
0x203e   : > { %8206 = vmatpush1.bf16.msra.mxu0 %v8205_v31 }
0x203f   : > { %8208 = vmatprep.subr.bf16.mxu0 %v8207_v34 }
0x2042   : > { %8210 = vmatpush1.bf16.msra.mxu0 %v8209_v37 }
0x2043   : > { %8223 = vmatprep.subr.bf16.mxu0 %v9223_v49 }
0x2045   : > { %5320 = vmatmul.mubr.f32.vlgmr.msra.gmra.mrb[50].mxu0 %v10328_v43  ;;  %v8162_v43 = vpack.c.bf16 %v5124_v4, %v5123_v53 }
0x2046   : > { %5325 = vmatprep.mubr.f32.mxu0 %v9221_v0 }
0x2047   : > { %8163 = vmatpush3.bf16.msra.mxu1 %v8162_v43 }
0x2048   : > { %8164 = vmatprep.subr.bf16.mxu1 %v9223_v49 }
0x2049   : > { %5326 = vmatmul.mubr.f32.gmra.mrb[52].mxu0 %v10333_v47  ;;  %v10496_v47 = vld [vmem:[#allocation27 + $0x10] sm:$0xff] }
0x204a   : > { %7449 = vmatprep.mubr.msk.f32.mxu0 %vm9222_vm5, %v9221_v0  ;;  %v5022_v45 = vrot.slane %v10496_v47, %v9852_v15  ;;  %v5111_v4 = vrot.slane %v10496_v47, %v9859_v18 }
0x204b   : > { %8166 = vmatpush3.bf16.msra.mxu1 %v8165_v57 }
0x204c   : > { %8167 = vmatprep.subr.bf16.mxu1 %v9223_v49 }
0x204f   : > { %8169 = vmatpush3.bf16.msra.mxu1 %v8168_v60 }
0x2050   : > { %8170 = vmatprep.subr.bf16.mxu1 %v9223_v49 }
0x2053   : > { %8172 = vmatpush3.bf16.msra.mxu1 %v8171_v33 }
0x2054   : > { %8173 = vmatprep.subr.bf16.mxu1 %v9223_v49 }
0x20f8   : > { %v5089_v24 = vpop.f32.mrb[48].mxu0 }
0x20f9   : > { %v5090_v6 = vadd.f32 %v5089_v24, %v5022_v45  ;;  %v7353_v7 = vpop.f32.mrb[49].mxu0  ;;  %v5116_v24 = vrot.slane %v10496_v47, %v9873_v36 }
0x20fb   : > { %v5093_v12 = vadd.f32 %v5090_v6, %v10444_v55  ;;  %v5131_v55 = vld [vmem:[#allocation16 + $0xe0] sm:$0xff] }
0x20fc   : > { %v8174_v30 = vpack.c.bf16 %v5132_v2, %v5131_v55 }
0x20fd   : > { %5094 = vadd.xlane.f32.xlu0 %v5093_v12  ;;  %v5097_v62 = vmul.f32 %v5093_v12, %v5093_v12 }
0x20fe   : > { %8175 = vmatpush3.bf16.msra.mxu1 %v8174_v30 }
0x20ff   : > { %5098 = vadd.xlane.f32.xlu1 %v5097_v62  ;;  %8176 = vmatprep.subr.bf16.mxu1 %v9223_v49 }
0x2102   : > { %8178 = vmatpush3.bf16.msra.mxu1 %v8177_v21  ;;  %v5336_v21 = vld [vmem:[#allocation21 + $0x98] sm:$0xff] }
0x2103   : > { %8211 = vmatprep.subr.bf16.mxu1 %v9223_v49 }
0x2118   : > { %v5321_v52 = vpop.f32.mrb[50].mxu0 }
0x2119   : > { %v5323_v39 = vpop.f32.mrb[51].mxu0  ;;  %v5322_v8 = vadd.f32 %v5321_v52, %v5248_v50  ;;  %v5333_v52 = vld [vmem:[#allocation21 + $0x80] sm:$0xff] }
0x211a   : > { %v5324_v11 = vadd.f32 %v5323_v39, %v5252_v5  ;;  %v5335_v39 = vld [vmem:[#allocation21 + $0x90] sm:$0xff] }
0x211c   : > { %v5327_v22 = vpop.f32.mrb[52].mxu0  ;;  %v10509_v27 = vmul.f32 %v9862_v19, %v5324_v11  ;;  %v5515_v28 = vmul.f32 %v9865_v20, %v5324_v11 }
0x211d   : > { %v5328_v17 = vadd.f32 %v5327_v22, %v5248_v50  ;;  %v5329_v23 = vpop.f32.mrb[53].mxu0  ;;  %v5334_v50 = vld [vmem:[#allocation21 + $0x88] sm:$0xff]  ;;  %v8227_v22 = vpack.c.bf16 %v5336_v21, %v5335_v39  ;;  %v5778_v39 = vld [vmem:[#allocation22 + $0x178] sm:$0xff]  ;;  %v5775_v21 = vld [vmem:[#allocation22 + $0x160] sm:$0xff] }
0x211e   : > { %v5330_v26 = vadd.f32 %v5329_v23, %v5252_v5  ;;  %v8224_v11 = vpack.c.bf16 %v5334_v50, %v5333_v52  ;;  %v5773_v52 = vld [vmem:[#allocation22 + $0x150] sm:$0xff] }
0x211f   : > { %v8212_v16 = vpack.c.bf16 %v5328_v17, %v5322_v8  ;;  %v5337_v8 = vld [vmem:[#allocation21 + $0xa0] sm:$0xff]  ;;  %v5338_v17 = vld [vmem:[#allocation21 + $0xa8] sm:$0xff] }
0x2120   : > { %v10513_v29 = vmul.f32 %v9862_v19, %v5330_v26  ;;  %v5516_v31 = vmul.f32 %v9865_v20, %v5330_v26  ;;  %8225 = vmatpush3.bf16.msra.mxu0 %v8224_v11  ;;  %v8230_v23 = vpack.c.bf16 %v5338_v17, %v5337_v8  ;;  %v5339_v26 = vld [vmem:[#allocation21 + $0xb0] sm:$0xff]  ;;  %v5780_v17 = vld [vmem:[#allocation22 + $0x188] sm:$0xff] }
0x2121   : > { %8226 = vmatprep.subr.bf16.mxu0 %v9223_v49 }
0x2122   : > { %v8218_v34 = vpack.c.bf16 %v5516_v31, %v5515_v28  ;;  %v8221_v14 = vpack.c.bf16 %v10513_v29, %v10509_v27  ;;  %v5341_v31 = vld [vmem:[#allocation21 + $0xc0] sm:$0xff]  ;;  %v5770_v27 = vld [vmem:[#allocation22 + $0x138] sm:$0xff] }
0x2124   : > { %8228 = vmatpush3.bf16.msra.mxu0 %v8227_v22  ;;  %v5777_v22 = vld [vmem:[#allocation22 + $0x170] sm:$0xff] }
0x2125   : > { %8229 = vmatprep.subr.bf16.mxu0 %v9223_v49  ;;  %v8261_v8 = vpack.c.bf16 %v5777_v22, %v5775_v21  ;;  %v5890_v21 = vld [vmem:[#allocation25 + $0x140] sm:$0xff]  ;;  %v5891_v22 = vld [vmem:[#allocation25 + $0x148] sm:$0xff] }
0x2128   : > { %8231 = vmatpush3.bf16.msra.mxu0 %v8230_v23  ;;  %v5782_v23 = vld [vmem:[#allocation22 + $0x198] sm:$0xff] }
0x2129   : > { %8232 = vmatprep.subr.bf16.mxu0 %v9223_v49 }
0x218a   : > { %v5095_v35 = vpop.xlane.xlu0 %5094 }
0x218b   : > { %v5096_v37 = vmul.f32 0.015625, %v5095_v35 }
0x218c   : > { %v5099_v38 = vpop.xlane.xlu1 %5098 }
0x218d   : > { %v5101_v42 = vmul.f32 %v5096_v37, %v5096_v37  ;;  %v5100_v44 = vmul.f32 0.015625, %v5099_v38  ;;  %v5104_v53 = vsub.f32 %v5093_v12, %v5096_v37  ;;  %v5138_v12 = vrot.slane %v10496_v47, %v10034_v58  ;;  %v5343_v37 = vld [vmem:[#allocation21 + $0xd0] sm:$0xff]  ;;  %v5344_v38 = vld [vmem:[#allocation21 + $0xd8] sm:$0xff] }
0x218f   : > { %v5102_v1 = vsub.f32 %v5100_v44, %v5101_v42  ;;  %v8239_v42 = vpack.c.bf16 %v5344_v38, %v5343_v37  ;;  %v5345_v44 = vld [vmem:[#allocation21 + $0xe0] sm:$0xff]  ;;  %v5785_v38 = vld [vmem:[#allocation22 + $0x1b0] sm:$0xff] }
0x2190   : > { %v5783_v37 = vld [vmem:[#allocation22 + $0x1a0] sm:$0xff] }
0x2191   : > { %v5103_v46 = vmax.f32 %v5102_v1, 0.0  ;;  %v5346_v1 = vld [vmem:[#allocation21 + $0xe8] sm:$0xff] }
0x2193   : > { %v5105_v3 = vadd.f32 1e-05, %v5103_v46  ;;  %v8242_v46 = vpack.c.bf16 %v5346_v1, %v5345_v44  ;;  %v5788_v44 = vld [vmem:[#allocation22 + $0x1c8] sm:$0xff]  ;;  %v5790_v1 = vld [vmem:[#allocation22 + $0x1d8] sm:$0xff] }
0x2195   : > { %8627 = vrsqrt.f32 %v5105_v3  ;;  %v5347_v3 = vld [vmem:[#allocation21 + $0xf0] sm:$0xff] }
0x219f   : > { %v8628_v43 = vpop.eup %8627 }
0x21a0   : > { %v5107_v45 = vmul.f32 %v8628_v43, %v5104_v53  ;;  %v5348_v53 = vld [vmem:[#allocation21 + $0xf8] sm:$0xff] }
0x21a2   : > { %v5112_v6 = vmul.f32 %v5111_v4, %v5107_v45  ;;  %v8245_v4 = vpack.c.bf16 %v5348_v53, %v5347_v3  ;;  %v8271_v3 = vpack.c.bf16 %v5790_v1, %v5788_v44  ;;  %v5787_v53 = vld [vmem:[#allocation22 + $0x1c0] sm:$0xff] }
0x21a4   : > { %v10522_v7 = vadd.f32 %v5116_v24, %v5112_v6 }
0x21a6   : > { %7387 = vmatmul.mubr.f32.vlgmr.msra.gmra.mrb[36].mxu1 %v10522_v7 }
0x21a7   : > { %8213 = vmatpush3.bf16.xpose.msra.mxu1 %v8212_v16  ;;  %7393 = vmatprep.mubr.msk.f32.mxu1 %vm9222_vm5, %v9221_v0 }
0x21a8   : > { %8214 = vmatprep.subr.bf16.mxu1 %v9223_v49 }
0x2279   : > { %v5205_v62 = vpop.f32.mrb[36].mxu1 }
0x227a   : > { %v5206_v56 = vadd.f32 %v5205_v62, %v5138_v12  ;;  %v7388_v25 = vpop.f32.mrb[37].mxu1 }
0x227c   : > { %v5349_v57 = vmul.f32 %v9862_v19, %v5206_v56  ;;  %v5433_v36 = vmul.f32 %v9865_v20, %v5206_v56 }
0x227e   : > { %7394 = vmatmul.mubr.f32.vlgmr.msra.gmra.mrb[38].mxu1 %v5349_v57  ;;  %v5764_v57 = vld [vmem:[#allocation22 + $0x108] sm:$0xff] }
0x227f   : > { %8216 = vmatpush3.bf16.xpose.msra.mxu1 %v8212_v16  ;;  %7400 = vmatprep.mubr.msk.f32.mxu1 %vm9222_vm5, %v9221_v0  ;;  %v5340_v16 = vld [vmem:[#allocation21 + $0xb8] sm:$0xff] }
0x2280   : > { %8217 = vmatprep.subr.bf16.mxu1 %v9223_v49  ;;  %v8233_v28 = vpack.c.bf16 %v5340_v16, %v5339_v26  ;;  %v8263_v26 = vpack.c.bf16 %v5782_v23, %v5780_v17  ;;  %v5779_v16 = vld [vmem:[#allocation22 + $0x180] sm:$0xff]  ;;  %v8297_v23 = vpack.c.bf16 %v5891_v22, %v5890_v21  ;;  %v6018_v22 = vld [vmem:[#allocation28 + $0x28] sm:$0xff] }
0x2281   : > { %v5909_v17 = vld [vmem:[#allocation25 + $0x1d8] sm:$0xff]  ;;  %v6017_v21 = vld [vmem:[#allocation28 + $0x20] sm:$0xff] }
0x2282   : > { %8234 = vmatpush3.bf16.msra.mxu0 %v8233_v28  ;;  %v5781_v28 = vld [vmem:[#allocation22 + $0x190] sm:$0xff] }
0x2283   : > { %8235 = vmatprep.subr.bf16.mxu0 %v9223_v49 }
0x2286   : > { %7401 = vmatmul.mubr.f32.vlgmr.msra.gmra.mrb[40].mxu1 %v5433_v36  ;;  %v5766_v36 = vld [vmem:[#allocation22 + $0x118] sm:$0xff] }
0x2287   : > { %8219 = vmatpush3.bf16.msra.mxu1 %v8218_v34  ;;  %7407 = vmatprep.mubr.msk.f32.mxu1 %vm9222_vm5, %v9221_v0  ;;  %v5342_v34 = vld [vmem:[#allocation21 + $0xc8] sm:$0xff] }
0x2288   : > { %8220 = vmatprep.subr.bf16.mxu1 %v9223_v49  ;;  %v8236_v35 = vpack.c.bf16 %v5342_v34, %v5341_v31  ;;  %v5784_v31 = vld [vmem:[#allocation22 + $0x1a8] sm:$0xff]  ;;  %v8265_v34 = vpack.c.bf16 %v5781_v28, %v5779_v16  ;;  %v5892_v16 = vld [vmem:[#allocation25 + $0x150] sm:$0xff]  ;;  %v5893_v28 = vld [vmem:[#allocation25 + $0x158] sm:$0xff] }
0x228a   : > { %8237 = vmatpush3.bf16.msra.mxu0 %v8236_v35  ;;  %v5786_v35 = vld [vmem:[#allocation22 + $0x1b8] sm:$0xff] }
0x228b   : > { %8238 = vmatprep.subr.bf16.mxu0 %v9223_v49 }
0x228e   : > { %8240 = vmatpush3.bf16.msra.mxu0 %v8239_v42  ;;  %v8267_v42 = vpack.c.bf16 %v5786_v35, %v5784_v31  ;;  %v5910_v31 = vld [vmem:[#allocation25 + $0x1e0] sm:$0xff]  ;;  %v8301_v35 = vpack.c.bf16 %v5893_v28, %v5892_v16  ;;  %v6024_v28 = vld [vmem:[#allocation28 + $0x58] sm:$0xff] }
0x228f   : > { %8241 = vmatprep.subr.bf16.mxu0 %v9223_v49 }
0x2292   : > { %8243 = vmatpush3.bf16.msra.mxu0 %v8242_v46  ;;  %v8269_v46 = vpack.c.bf16 %v5785_v38, %v5783_v37 }
0x2293   : > { %8244 = vmatprep.subr.bf16.mxu0 %v9223_v49 }
0x2296   : > { %8246 = vmatpush3.bf16.msra.mxu0 %v8245_v4  ;;  %v5789_v4 = vld [vmem:[#allocation22 + $0x1d0] sm:$0xff] }
0x2351   : > { %v5416_v58 = vpop.f32.mrb[38].mxu1 }
0x2352   : > { %v7395_v59 = vpop.f32.mrb[39].mxu1  ;;  %v5420_v19 = vsel %vm1263_vm4, %v5416_v58, -inf }
0x2353   : > { %5421 = vmax.xlane.f32.xlu1 %v5420_v19  ;;  %v8247_v59 = vpack.c.bf16 %v5766_v36, %v5764_v57  ;;  %v5765_v19 = vld [vmem:[#allocation22 + $0x110] sm:$0xff]  ;;  %v5882_v36 = vld [vmem:[#allocation25 + $0x100] sm:$0xff] }
0x2354   : > { %v5899_v57 = vld [vmem:[#allocation25 + $0x188] sm:$0xff] }
0x2359   : > { %v5500_v54 = vpop.f32.mrb[40].mxu1 }
0x235a   : > { %v7402_v60 = vpop.f32.mrb[41].mxu1  ;;  %v5504_v61 = vsel %vm1263_vm4, %v5500_v54, -inf }
0x235b   : > { %5505 = vmax.xlane.f32.xlu0 %v5504_v61  ;;  %v5666_v60 = vrot.slane %v10496_v47, %v10051_v40  ;;  %v5771_v40 = vld [vmem:[#allocation22 + $0x140] sm:$0xff] }
0x235c   : > { %v8257_v50 = vpack.c.bf16 %v5773_v52, %v5771_v40  ;;  %v5888_v40 = vld [vmem:[#allocation25 + $0x130] sm:$0xff]  ;;  %v5889_v52 = vld [vmem:[#allocation25 + $0x138] sm:$0xff] }
0x23e0   : > { %v5422_v63 = vpop.xlane.xlu1 %5421 }
0x23e1   : > { %v5423_v51 = vsub.f32 %v5416_v58, %v5422_v63  ;;  %v5763_v58 = vld [vmem:[#allocation22 + $0x100] sm:$0xff] }
0x23e2   : > { %v8249_v29 = vpack.c.bf16 %v5765_v19, %v5763_v58  ;;  %v5900_v19 = vld [vmem:[#allocation25 + $0x190] sm:$0xff] }
0x23e3   : > { %v5424_v20 = vmul.f32 1.442695, %v5423_v51 }
0x23e5   : > { %8629 = vpow2.f32 %v5424_v20 }
0x23e8   : > { %v5506_v33 = vpop.xlane.xlu0 %5505 }
0x23e9   : > { %v5507_v55 = vsub.f32 %v5500_v54, %v5506_v33  ;;  %v5768_v54 = vld [vmem:[#allocation22 + $0x128] sm:$0xff] }
0x23eb   : > { %v5508_v2 = vmul.f32 1.442695, %v5507_v55  ;;  %v5767_v55 = vld [vmem:[#allocation22 + $0x120] sm:$0xff] }
0x23ed   : > { %8631 = vpow2.f32 %v5508_v2  ;;  %v5769_v2 = vld [vmem:[#allocation22 + $0x130] sm:$0xff] }
0x23ef   : > { %v8630_v5 = vpop.eup %8629 }
0x23f0   : > { %v5426_v30 = vsel %vm1263_vm4, %v8630_v5, 0.0 }
0x23f1   : > { %5427 = vadd.xlane.f32.xlu1 %v5426_v30  ;;  %v5772_v30 = vld [vmem:[#allocation22 + $0x148] sm:$0xff] }
0x23f7   : > { %v8632_v9 = vpop.eup %8631 }
0x23f8   : > { %v5510_v10 = vsel %vm1263_vm4, %v8632_v9, 0.0 }
0x23f9   : > { %5511 = vadd.xlane.f32.xlu0 %v5510_v10 }
0x247e   : > { %v5428_v45 = vpop.xlane.xlu1 %5427 }
0x2486   : > { %v5512_v43 = vpop.xlane.xlu0 %5511 }
0x2487   : > { %8633 = vrcp.f32 %v5512_v43  ;;  %v5792_v43 = vld [vmem:[#allocation22 + $0x1e8] sm:$0xff] }
0x2488   : > { %8635 = vrcp.f32 %v5428_v45  ;;  %v5794_v45 = vld [vmem:[#allocation22 + $0x1f8] sm:$0xff] }
0x2491   : > { %v8634_v24 = vpop.eup %8633 }
0x2492   : > { %v5514_v6 = vmul.f32 %v8634_v24, %v8632_v9  ;;  %v8636_v12 = vpop.eup %8635  ;;  %v5774_v9 = vld [vmem:[#allocation22 + $0x158] sm:$0xff]  ;;  %v8273_v24 = vpack.c.bf16 %v5789_v4, %v5787_v53 }
0x2493   : > { %v5430_v62 = vmul.f32 %v8636_v12, %v8630_v5  ;;  %v8253_v5 = vpack.c.bf16 %v5769_v2, %v5767_v55  ;;  %v8255_v10 = vpack.c.bf16 %v5774_v9, %v5772_v30  ;;  %v5791_v12 = vld [vmem:[#allocation22 + $0x1e0] sm:$0xff]  ;;  %v5887_v2 = vld [vmem:[#allocation25 + $0x128] sm:$0xff] }
0x2494   : > { %7408 = vmatmul.mubr.msk.f32.vlgmr.msra.gmra.mrb[42].mxu1 %vm1263_vm4, %v5514_v6  ;;  %v8275_v6 = vpack.c.bf16 %v5794_v45, %v5792_v43  ;;  %v5886_v55 = vld [vmem:[#allocation25 + $0x120] sm:$0xff]  ;;  %v5905_v30 = vld [vmem:[#allocation25 + $0x1b8] sm:$0xff]  ;;  %v5755_v45 = vrot.slane %v10496_v47, %v10054_v41  ;;  %v5896_v41 = vld [vmem:[#allocation25 + $0x170] sm:$0xff] }
0x2495   : > { %8222 = vmatpush3.bf16.msra.mxu1 %v8221_v14  ;;  %7414 = vmatprep.mubr.msk.f32.mxu1 %vm9222_vm5, %v9221_v0  ;;  %v8251_v14 = vpack.c.bf16 %v5770_v27, %v5768_v54  ;;  %v5901_v54 = vld [vmem:[#allocation25 + $0x198] sm:$0xff]  ;;  %v8289_v9 = vpack.c.bf16 %v5887_v2, %v5886_v55  ;;  %v6014_v55 = vld [vmem:[#allocation28 + $0x8] sm:$0xff] }
0x2496   : > { %8248 = vmatprep.subr.bf16.mxu1 %v8247_v59  ;;  %v5883_v59 = vld [vmem:[#allocation25 + $0x108] sm:$0xff] }
0x2497   : > { %v8281_v27 = vpack.c.bf16 %v5883_v59, %v5882_v36 }
0x249c   : > { %7415 = vmatmul.mubr.msk.f32.vlgmr.msra.gmra.mrb[42].mxu1 %vm1263_vm4, %v5430_v62  ;;  %v5793_v62 = vld [vmem:[#allocation22 + $0x1f0] sm:$0xff] }
0x249d   : > { %5872 = vmatprep.mubr.f32.mxu1 %v9221_v0  ;;  %8250 = vmatpush1.bf16.msra.mxu1 %v8249_v29  ;;  %v8283_v29 = vpack.c.bf16 %v5901_v54, %v5900_v19  ;;  %v5897_v19 = vld [vmem:[#allocation25 + $0x178] sm:$0xff] }
0x249e   : > { %8252 = vmatprep.subr.bf16.mxu1 %v8251_v14  ;;  %v5884_v14 = vld [vmem:[#allocation25 + $0x110] sm:$0xff]  ;;  %v8309_v54 = vpack.c.bf16 %v5897_v19, %v5896_v41 }
0x24a1   : > { %8254 = vmatpush1.bf16.msra.mxu1 %v8253_v5  ;;  %v5904_v5 = vld [vmem:[#allocation25 + $0x1b0] sm:$0xff] }
0x24a2   : > { %8256 = vmatprep.subr.bf16.mxu1 %v8255_v10  ;;  %v8291_v10 = vpack.c.bf16 %v5905_v30, %v5904_v5  ;;  %v5917_v30 = vrot.slane %v10496_v47, %v4382_v32  ;;  %v6020_v32 = vld [vmem:[#allocation28 + $0x38] sm:$0xff] }
0x24a5   : > { %8258 = vmatpush1.bf16.msra.mxu1 %v8257_v50  ;;  %v5906_v50 = vld [vmem:[#allocation25 + $0x1c0] sm:$0xff] }
0x256f   : > { %v5659_v56 = vpop.f32.mrb[42].mxu1 }
0x2570   : > { %v7416_v25 = vpop.f32.mrb[43].mxu1  ;;  %7450 = vmatmul.mubr.f32.vlgmr.msra.gmra.mrb[54].mxu0 %v5659_v56  ;;  %v8277_v56 = vpack.c.bf16 %v5793_v62, %v5791_v12  ;;  %v5760_v12 = vrot.slane %v10496_v47, %v4228_v48  ;;  %v8321_v47 = vpack.c.bf16 %v6020_v32, %v6019_v13 }
0x2571   : > { %v5898_v25 = vld [vmem:[#allocation25 + $0x180] sm:$0xff] }
0x2572   : > { %v8279_v58 = vpack.c.bf16 %v5899_v57, %v5898_v25  ;;  %v5894_v25 = vld [vmem:[#allocation25 + $0x160] sm:$0xff]  ;;  %v5895_v57 = vld [vmem:[#allocation25 + $0x168] sm:$0xff] }
0x2573   : > { %v8305_v36 = vpack.c.bf16 %v5895_v57, %v5894_v25 }
0x2574   : > { %8280 = vmatprep.subr.bf16.mxu0 %v8279_v58  ;;  %v5913_v58 = vld [vmem:[#allocation25 + $0x1f8] sm:$0xff] }
0x2575   : > { %8282 = vmatpush3.bf16.msra.mxu0 %v8281_v27  ;;  %v5796_v27 = vld [vmem:[#allocation24 + $0x2] sm:$0x3] }
0x2576   : > { %8284 = vmatprep.subr.bf16.mxu0 %v8283_v29  ;;  %v5801_v48 = vrot.slane %v5796_v27, %v9852_v15  ;;  %v5805_v29 = vrot.slane %v5796_v27, %v9859_v18 }
0x2643   : > { %v5733_v61 = vpop.f32.mrb[54].mxu0 }
0x2644   : > { %v5734_v63 = vadd.f32 %v5733_v61, %v5666_v60  ;;  %v7451_v51 = vpop.f32.mrb[55].mxu0  ;;  %v5885_v60 = vld [vmem:[#allocation25 + $0x118] sm:$0xff]  ;;  %v5902_v61 = vld [vmem:[#allocation25 + $0x1a0] sm:$0xff] }
0x2645   : > { %v8285_v51 = vpack.c.bf16 %v5885_v60, %v5884_v14 }
0x2646   : > { %v10560_v20 = vadd.f32 %v5734_v63, %v10522_v7  ;;  %v5776_v7 = vld [vmem:[#allocation22 + $0x168] sm:$0xff] }
0x2647   : > { %v8259_v11 = vpack.c.bf16 %v5778_v39, %v5776_v7  ;;  %v5903_v63 = vld [vmem:[#allocation25 + $0x1a8] sm:$0xff]  ;;  %8286 = vmatpush3.bf16.msra.mxu0 %v8285_v51  ;;  %v8293_v39 = vpack.c.bf16 %v5889_v52, %v5888_v40 }
0x2648   : > { %5738 = vadd.xlane.f32.xlu0 %v10560_v20  ;;  %v5741_v33 = vmul.f32 %v10560_v20, %v10560_v20  ;;  %v5907_v7 = vld [vmem:[#allocation25 + $0x1c8] sm:$0xff] }
0x2649   : > { %8260 = vmatprep.subr.bf16.mxu1 %v8259_v11  ;;  %v8295_v11 = vpack.c.bf16 %v5907_v7, %v5906_v50  ;;  %v6015_v7 = vld [vmem:[#allocation28 + $0x10] sm:$0xff] }
0x264a   : > { %5742 = vadd.xlane.f32.xlu1 %v5741_v33  ;;  %8262 = vmatpush1.bf16.msra.mxu1 %v8261_v8  ;;  %v8287_v33 = vpack.c.bf16 %v5903_v63, %v5902_v61  ;;  %v5908_v8 = vld [vmem:[#allocation25 + $0x1d0] sm:$0xff] }
0x264b   : > { %8264 = vmatprep.subr.bf16.mxu1 %v8263_v26  ;;  %v8299_v26 = vpack.c.bf16 %v5909_v17, %v5908_v8  ;;  %v8318_v8 = vpack.c.bf16 %v6018_v22, %v6017_v21  ;;  %v6021_v17 = vld [vmem:[#allocation28 + $0x40] sm:$0xff] }
0x264c   : > { %8288 = vmatprep.subr.bf16.mxu0 %v8287_v33  ;;  %v6013_v33 = vld [vmem:[#allocation28] sm:$0xff] }
0x264d   : > { %8290 = vmatpush3.bf16.msra.mxu0 %v8289_v9  ;;  %v8312_v2 = vpack.c.bf16 %v6014_v55, %v6013_v33 }
0x264e   : > { %8266 = vmatpush1.bf16.msra.mxu1 %v8265_v34  ;;  %8292 = vmatprep.subr.bf16.mxu0 %v8291_v10  ;;  %v5911_v34 = vld [vmem:[#allocation25 + $0x1e8] sm:$0xff] }
0x264f   : > { %8268 = vmatprep.subr.bf16.mxu1 %v8267_v42  ;;  %v8303_v37 = vpack.c.bf16 %v5911_v34, %v5910_v31  ;;  %v6025_v34 = vld [vmem:[#allocation28 + $0x60] sm:$0xff] }
0x2651   : > { %8294 = vmatpush3.bf16.msra.mxu0 %v8293_v39  ;;  %v6016_v39 = vld [vmem:[#allocation28 + $0x18] sm:$0xff] }
0x2652   : > { %8270 = vmatpush1.bf16.msra.mxu1 %v8269_v46  ;;  %8296 = vmatprep.subr.bf16.mxu0 %v8295_v11  ;;  %v8315_v11 = vpack.c.bf16 %v6016_v39, %v6015_v7 }
0x2653   : > { %8272 = vmatprep.subr.bf16.mxu1 %v8271_v3 }
0x2655   : > { %8298 = vmatpush3.bf16.msra.mxu0 %v8297_v23  ;;  %v6022_v23 = vld [vmem:[#allocation28 + $0x48] sm:$0xff] }
0x2656   : > { %8274 = vmatpush1.bf16.msra.mxu1 %v8273_v24  ;;  %8300 = vmatprep.subr.bf16.mxu0 %v8299_v26  ;;  %v6023_v26 = vld [vmem:[#allocation28 + $0x50] sm:$0xff]  ;;  %v8324_v16 = vpack.c.bf16 %v6022_v23, %v6021_v17 }
0x2657   : > { %8276 = vmatprep.subr.bf16.mxu1 %v8275_v6  ;;  %v8327_v31 = vpack.c.bf16 %v6024_v28, %v6023_v26 }
0x2659   : > { %8302 = vmatpush3.bf16.msra.mxu0 %v8301_v35  ;;  %v6026_v35 = vld [vmem:[#allocation28 + $0x68] sm:$0xff] }
0x265a   : > { %8278 = vmatpush1.bf16.msra.mxu1 %v8277_v56  ;;  %8304 = vmatprep.subr.bf16.mxu0 %v8303_v37  ;;  %v8330_v37 = vpack.c.bf16 %v6026_v35, %v6025_v34 }
0x265b   : > { %8311 = vmatprep.subr.bf16.mxu1 %v9223_v49 }
0x265d   : > { %8306 = vmatpush3.bf16.msra.mxu0 %v8305_v36 }
0x26d5   : > { %v5739_v38 = vpop.xlane.xlu0 %5738 }
0x26d6   : > { %v5740_v42 = vmul.f32 0.015625, %v5739_v38  ;;  %v6027_v38 = vld [vmem:[#allocation28 + $0x70] sm:$0xff] }
0x26d7   : > { %v5743_v44 = vpop.xlane.xlu1 %5742 }
0x26d8   : > { %v5745_v1 = vmul.f32 %v5740_v42, %v5740_v42  ;;  %v5744_v46 = vmul.f32 0.015625, %v5743_v44  ;;  %v5748_v43 = vsub.f32 %v10560_v20, %v5740_v42  ;;  %v5912_v20 = vld [vmem:[#allocation25 + $0x1f0] sm:$0xff]  ;;  %v6028_v42 = vld [vmem:[#allocation28 + $0x78] sm:$0xff] }
0x26d9   : > { %v8307_v59 = vpack.c.bf16 %v5913_v58, %v5912_v20  ;;  %v8333_v44 = vpack.c.bf16 %v6028_v42, %v6027_v38 }
0x26da   : > { %v5746_v3 = vsub.f32 %v5744_v46, %v5745_v1 }
0x26db   : > { %8308 = vmatprep.subr.bf16.mxu0 %v8307_v59 }
0x26dc   : > { %v5747_v53 = vmax.f32 %v5746_v3, 0.0  ;;  %8310 = vmatpush3.bf16.msra.mxu0 %v8309_v54 }
0x26de   : > { %v5749_v4 = vadd.f32 1e-05, %v5747_v53 }
0x26e0   : > { %8637 = vrsqrt.f32 %v5749_v4 }
0x26ea   : > { %v8638_v24 = vpop.eup %8637 }
0x26eb   : > { %v5751_v6 = vmul.f32 %v8638_v24, %v5748_v43 }
0x26ed   : > { %v5756_v62 = vmul.f32 %v5755_v45, %v5751_v6  ;;  %v4481_v6 = vld [vmem:[#allocation27 + $0x18] sm:$0xff] }
0x26ee   : > { %v6011_v57 = vrot.slane %v4481_v6, %v9859_v18 }
0x26ef   : > { %v5761_v56 = vadd.f32 %v5760_v12, %v5756_v62  ;;  %v6006_v62 = vrot.slane %v4481_v6, %v9852_v15 }
0x26f1   : > { %5873 = vmatmul.mubr.f32.vlgmr.msra.gmra.mrb[44].mxu1 %v5761_v56 }
0x26f2   : > { %7484 = vmatprep.mubr.msk.f32.mxu1 %vm9222_vm5, %v9221_v0  ;;  %8313 = vmatpush3.bf16.msra.mxu1 %v8312_v2 }
0x26f3   : > { %8314 = vmatprep.subr.bf16.mxu1 %v9223_v49 }
0x26f6   : > { %8316 = vmatpush3.bf16.msra.mxu1 %v8315_v11 }
0x26f7   : > { %8317 = vmatprep.subr.bf16.mxu1 %v9223_v49 }
0x26fa   : > { %8319 = vmatpush3.bf16.msra.mxu1 %v8318_v8 }
0x26fb   : > { %8320 = vmatprep.subr.bf16.mxu1 %v9223_v49 }
0x26fe   : > { %8322 = vmatpush3.bf16.msra.mxu1 %v8321_v47 }
0x26ff   : > { %8323 = vmatprep.subr.bf16.mxu1 %v9223_v49 }
0x2702   : > { %8325 = vmatpush3.bf16.msra.mxu1 %v8324_v16 }
0x2703   : > { %8326 = vmatprep.subr.bf16.mxu1 %v9223_v49 }
0x2706   : > { %8328 = vmatpush3.bf16.msra.mxu1 %v8327_v31 }
0x2707   : > { %8329 = vmatprep.subr.bf16.mxu1 %v9223_v49 }
0x270a   : > { %8331 = vmatpush3.bf16.msra.mxu1 %v8330_v37 }
0x270b   : > { %8332 = vmatprep.subr.bf16.mxu1 %v9223_v49 }
0x270e   : > { %8334 = vmatpush3.bf16.msra.mxu1 %v8333_v44 }
0x27c4   : > { %v5874_v14 = vpop.f32.mrb[44].mxu1 }
0x27c5   : > { %v5875_v60 = vadd.f32 %v5874_v14, %v5801_v48  ;;  %v5876_v0 = vpop.f32.mrb[45].mxu1 }
0x27c6   : > { %v5877_v61 = vadd.f32 %v5876_v0, %v5805_v29 }
0x27c7   : > { %v5879_v51 = vmax.f32 %v5875_v60, 0.0 }
0x27c8   : > { %v5880_v63 = vmax.f32 %v5877_v61, 0.0 }
0x27ca   : > { %5982 = vmatprep.mubr.f32.mxu0 %v5880_v63 }
0x27cb   : > { %5983 = vmatmul.mubr.f32.vlgmr.msra.gmra.mrb[56].mxu0 %v5879_v51 }
0x289e   : > { %v6860_v5 = vpop.f32.mrb[56].mxu0 }
0x289f   : > { %v6861_v9 = vpop.f32.mrb[57].mxu0 }
0x28a0   : > { %v6862_v10 = vadd.f32 %v6861_v9, %v6860_v5 }
0x28a2   : > { %v5985_v40 = vadd.f32 %v6862_v10, %v5917_v30 }
0x28a4   : > { %v5988_v52 = vadd.f32 %v5985_v40, %v5761_v56 }
0x28a6   : > { %5989 = vadd.xlane.f32.xlu0 %v5988_v52  ;;  %v5992_v50 = vmul.f32 %v5988_v52, %v5988_v52 }
0x28a8   : > { %5993 = vadd.xlane.f32.xlu1 %v5992_v50 }
0x2933   : > { %v5990_v1 = vpop.xlane.xlu0 %5989 }
0x2934   : > { %v5991_v46 = vmul.f32 0.015625, %v5990_v1 }
0x2935   : > { %v5994_v3 = vpop.xlane.xlu1 %5993 }
0x2936   : > { %v5996_v53 = vmul.f32 %v5991_v46, %v5991_v46  ;;  %v5995_v4 = vmul.f32 0.015625, %v5994_v3  ;;  %v5999_v12 = vsub.f32 %v5988_v52, %v5991_v46 }
0x2938   : > { %v5997_v43 = vsub.f32 %v5995_v4, %v5996_v53 }
0x293a   : > { %v5998_v45 = vmax.f32 %v5997_v43, 0.0 }
0x293c   : > { %v6000_v24 = vadd.f32 1e-05, %v5998_v45 }
0x293e   : > { %8639 = vrsqrt.f32 %v6000_v24 }
0x2948   : > { %v8640_v56 = vpop.eup %8639 }
0x2949   : > { %v6002_v25 = vmul.f32 %v8640_v56, %v5999_v12 }
0x294b   : > { %v6007_v49 = vmul.f32 %v6006_v62, %v6002_v25 }
0x294d   : > { %v6012_v36 = vadd.f32 %v6011_v57, %v6007_v49 }
0x294f   : > { %7485 = vmatmul.mubr.f32.vlgmr.msra.gmra.mrb[46].mxu1 %v6012_v36 }
0x2a22   : > { %v6095_v20 = vpop.f32.mrb[46].mxu1 }
0x2a23   : > { %6099 = vst [vmem:[%s933_s26] sm:$0xff] %v6095_v20  ;;  %v7486_v58 = vpop.f32.mrb[47].mxu1 }
0x2a24 PF: > { %s10706_s3 = sld [smem:[#allocation40_spill]] }
0x2a2a   : > { %s41_s2 = sadd.s32 1, %s10706_s3  }
0x2a2b   : > { %p38_p1 = scmp.ge.s32.totalorder %s41_s2, 4  }
0x2a2d   :  { %40 = sbr.rel (!%p38_p1) target bundleno = 24 (0x18), region = 228 }
0x2a34   :  { %6119 = vsyncpa [#allocation3], 1 }
0x2a35   :  { %6121 = vsyncpa [#allocation3 + $0x1], 1 }
0x2a36   :  { %6122 = vsyncpa [#allocation5], 1 }
0x2a37   :  { %6123 = vsyncpa [#allocation8], 1 }
0x2a38   :  { %6124 = vsyncpa [#allocation11], 1 }
0x2a39   :  { %6125 = vsyncpa [#allocation14], 1 }
0x2a3a   :  { %6126 = vsyncpa [#allocation17], 1 }
0x2a3b   :  { %6127 = vsyncpa [#allocation20], 1 }
0x2a3c   :  { %6128 = vsyncpa [#allocation23], 1 }
0x2a3d   :  { %6129 = vsyncpa [#allocation26], 1 }
0x2a3e   :  { %6130 = vsyncpa [#allocation29], 1 }

</bundles_post_ra>
